<compile_context>
chip_gen: v7x
topology: tpu7x:2x2x1
jax: 0.10.0
libtpu: 0.0.40
codegen_flags: <defaults>
</compile_context>

<pallas_src>
import math

import numpy as np
import jax
import jax.numpy as jnp
from jax.experimental import pallas as pl
from jax.experimental.pallas import tpu as pltpu

# ---- model hyper-parameters (small, consistent with the module) ----
D_MODEL = 32
D_FFN = 64
FFN_PAD = 128                     # hidden padded to a full 128-lane vreg
N_HEADS = 4
D_HEAD = D_MODEL // N_HEADS
N_LEVELS = 2
N_POINTS = 2
LN_EPS = 1e-5

SPATIAL_SHAPES = ((8, 8), (4, 4))                      # (H_l, W_l) per level
LEN_IN = sum(h * w for h, w in SPATIAL_SHAPES)
_starts, _acc = [], 0
for _h, _w in SPATIAL_SHAPES:
    _starts.append(_acc)
    _acc += _h * _w
LEVEL_STARTS = tuple(_starts)

LEN_Q = 8
HP = N_HEADS * N_POINTS                                # 8
N_OFF = N_LEVELS * N_HEADS * N_POINTS                  # 16 x (and 16 y) offsets

FUSED_KEYS = (
    "wqk", "bqk", "wv", "bv", "wo", "bo", "ln2g", "ln2b",
    "wsoaw", "bsoaw", "gmat", "wva", "bva", "wop", "bop", "ln1g", "ln1b",
    "w1", "b1", "w2", "b2", "ln3g", "ln3b",
)


# ----------------------------------------------------------------------------
# fused kernel
# ----------------------------------------------------------------------------
def _layer_norm(y, g, b):
    mu = jnp.mean(y, axis=-1, keepdims=True)
    yc = y - mu
    var = jnp.mean(yc * yc, axis=-1, keepdims=True)
    return yc * jax.lax.rsqrt(var + LN_EPS) * g + b


def _decoder_layer_kernel(tgt_ref, pos_ref, ref_ref, src_ref,
                          wqk_ref, bqk_ref, wv_ref, bv_ref, wo_ref, bo_ref,
                          ln2g_ref, ln2b_ref,
                          wsoaw_ref, bsoaw_ref, gmat_ref,
                          wva_ref, bva_ref, wop_ref, bop_ref,
                          ln1g_ref, ln1b_ref,
                          w1_ref, b1_ref, w2_ref, b2_ref,
                          ln3g_ref, ln3b_ref,
                          out_ref,
                          sa_buf, vop_buf, wst_buf):
    f32 = jnp.float32
    tgt = tgt_ref[0]                                   # (Lq, D)
    pos = pos_ref[0]                                   # (Lq, D)
    refp = ref_ref[0]                                  # (Lq, 2*NL)  [x0,y0,x1,y1]
    src = src_ref[0]                                   # (Lin, D)
    lq = tgt.shape[0]

    # ----------------- self attention (scale pre-folded into Wq/bq) ---------
    x = tgt + pos
    qk = jnp.dot(x, wqk_ref[...], preferred_element_type=f32) + bqk_ref[...]
    v = jnp.dot(tgt, wv_ref[...], preferred_element_type=f32) + bv_ref[...]
    q = qk[:, :D_MODEL]
    k = qk[:, D_MODEL:]
    for h in range(N_HEADS):
        lo = h * D_HEAD
        qh = q[:, lo:lo + D_HEAD]
        kh = k[:, lo:lo + D_HEAD]
        vh = v[:, lo:lo + D_HEAD]
        s = jax.lax.dot_general(qh, kh, (((1,), (1,)), ((), ())),
                                preferred_element_type=f32)          # (Lq, Lq)
        s = s - jnp.max(s, axis=-1, keepdims=True)
        e = jnp.exp(s)
        pw = e * pl.reciprocal(jnp.sum(e, axis=-1, keepdims=True), approx=True)
        sa_buf[:, lo:lo + D_HEAD] = jnp.dot(pw, vh, preferred_element_type=f32)
    # single concatenated out-projection
    sa = jnp.dot(sa_buf[...], wo_ref[...], preferred_element_type=f32) + bo_ref[...]
    tgt1 = _layer_norm(tgt + sa, ln2g_ref[...], ln2b_ref[...])

    # ----------------- deformable cross attention ---------------------------
    q2 = tgt1 + pos
    # fused sampling_offsets | attention_weights projection (Lq, 48)
    soaw = jnp.dot(q2, wsoaw_ref[...], preferred_element_type=f32) + bsoaw_ref[...]
    off = soaw[:, :2 * N_OFF]          # (Lq, 32) layout (xy, level, head, point)
    logits = soaw[:, 2 * N_OFF:]       # (Lq, 16) layout (level, head, point)

    # per-head softmax over (level, point): row-global max + group-sum matmul
    m = jnp.max(logits, axis=-1, keepdims=True)
    e = jnp.exp(logits - m)
    gs = jnp.dot(e, gmat_ref[...], preferred_element_type=f32)        # group sums
    attn = e * pl.reciprocal(gs, approx=True)                         # (Lq, 16)

    # value_proj, pre-multiplied per head by its output_proj block
    value = jnp.dot(src, wva_ref[...], preferred_element_type=f32) + bva_ref[...]
    wop = wop_ref[...]
    for h in range(N_HEADS):
        lo = h * D_HEAD
        vop_buf[h * LEN_IN:(h + 1) * LEN_IN, :] = jnp.dot(
            value[:, lo:lo + D_HEAD], wop[lo:lo + D_HEAD, :],
            preferred_element_type=f32)                               # (Lin, D)

    # build the combined (bilinear x attention) sampling matrix: one-hot -> MXU
    for l, (Hl, Wl) in enumerate(SPATIAL_SHAPES):
        Sl = Hl * Wl
        start_l = LEVEL_STARTS[l]
        iota_s = jax.lax.broadcasted_iota(jnp.int32, (lq, Sl), 1)
        # pixel coords: (ref + off/normalizer)*size - 0.5 == ref*size + off - 0.5
        px = refp[:, 2 * l:2 * l + 1] * Wl + off[:, l * HP:(l + 1) * HP] - 0.5
        py = (refp[:, 2 * l + 1:2 * l + 2] * Hl
              + off[:, N_OFF + l * HP:N_OFF + (l + 1) * HP] - 0.5)
        attn_l = attn[:, l * HP:(l + 1) * HP]                         # (Lq, 8)
        x0 = jnp.floor(px)
        y0 = jnp.floor(py)
        corners = []
        for dy in (0.0, 1.0):
            for dx in (0.0, 1.0):
                xi = x0 + dx
                yi = y0 + dy
                wgt = (1.0 - jnp.abs(px - xi)) * (1.0 - jnp.abs(py - yi))
                inb = ((xi >= 0.0) & (xi <= Wl - 1.0)
                       & (yi >= 0.0) & (yi <= Hl - 1.0))
                idx = (jnp.clip(yi, 0.0, Hl - 1.0) * Wl
                       + jnp.clip(xi, 0.0, Wl - 1.0)).astype(jnp.int32)
                corners.append((idx, jnp.where(inb, wgt * attn_l, 0.0)))
        for h in range(N_HEADS):
            acc = jnp.zeros((lq, Sl), f32)
            for pt in range(N_POINTS):
                c = h * N_POINTS + pt
                for idx, cw in corners:
                    onehot = (iota_s == idx[:, c:c + 1]).astype(f32)
                    acc = acc + onehot * cw[:, c:c + 1]
            col0 = h * LEN_IN + start_l
            wst_buf[:, col0:col0 + Sl] = acc

    # one lane-dense matmul does sampling + head mixing + output_proj
    cross = (jnp.dot(wst_buf[...], vop_buf[...], preferred_element_type=f32)
             + bop_ref[...])
    tgt2 = _layer_norm(tgt1 + cross, ln1g_ref[...], ln1b_ref[...])

    # ----------------- FFN (hidden zero-padded to 128 lanes) ----------------
    hid = jnp.maximum(
        jnp.dot(tgt2, w1_ref[...], preferred_element_type=f32) + b1_ref[...], 0.0)
    f2 = jnp.dot(hid, w2_ref[...], preferred_element_type=f32) + b2_ref[...]
    out_ref[0] = _layer_norm(tgt2 + f2, ln3g_ref[...], ln3b_ref[...])


# ----------------------------------------------------------------------------
# wrapper
# ----------------------------------------------------------------------------
def decoder_layer_forward(tgt, query_pos, reference_points, src, fused,
                          level_start_index=None):
    del level_start_index   # level splits are static (SPATIAL_SHAPES)
    B, Lq, D = tgt.shape
    ref2 = reference_points.reshape(B, Lq, N_LEVELS * 2)
    weights = [fused[k] for k in FUSED_KEYS]

    batch3 = lambda b: (b, 0, 0)
    full2 = lambda b: (0, 0)
    grid_spec = pltpu.PrefetchScalarGridSpec(
        num_scalar_prefetch=0,
        grid=(B,),
        in_specs=[
            pl.BlockSpec((1, Lq, D), batch3),
            pl.BlockSpec((1, Lq, D), batch3),
            pl.BlockSpec((1, Lq, 2 * N_LEVELS), batch3),
            pl.BlockSpec((1, LEN_IN, D), batch3),
        ] + [pl.BlockSpec(w.shape, full2) for w in weights],
        out_specs=pl.BlockSpec((1, Lq, D), batch3),
        scratch_shapes=[
            pltpu.VMEM((Lq, D), jnp.float32),                 # self-attn heads
            pltpu.VMEM((N_HEADS * LEN_IN, D), jnp.float32),   # per-head value@op
            pltpu.VMEM((Lq, N_HEADS * LEN_IN), jnp.float32),  # combined weights
        ],
    )
    return pl.pallas_call(
        _decoder_layer_kernel,
        out_shape=jax.ShapeDtypeStruct((B, Lq, D), jnp.float32),
        grid_spec=grid_spec,
        compiler_params=pltpu.CompilerParams(
            dimension_semantics=("parallel",)),
    )(tgt, query_pos, ref2, src, *weights)


# ----------------------------------------------------------------------------
# parameter preparation (permutation / fusion / padding, done once)
# ----------------------------------------------------------------------------
def prepare_params(p):
    D, F = D_MODEL, D_FFN
    scale = 1.0 / math.sqrt(D_HEAD)
    # q|k fused projection, scale folded into BOTH Wq and bq
    wqk = jnp.concatenate([p["sa_wq"] * scale, p["sa_wk"]], axis=1)
    bqk = jnp.concatenate([p["sa_bq"] * scale, p["sa_bk"]]).reshape(1, 2 * D)

    # permute sampling_offsets from (head, level, point, xy) -> (xy, level, head, point)
    so_perm = np.array(
        [((h * N_LEVELS + l) * N_POINTS + pt) * 2 + xy
         for xy in range(2) for l in range(N_LEVELS)
         for h in range(N_HEADS) for pt in range(N_POINTS)], np.int32)
    # permute attention_weights from (head, level, point) -> (level, head, point)
    aw_perm = np.array(
        [(h * N_LEVELS + l) * N_POINTS + pt
         for l in range(N_LEVELS) for h in range(N_HEADS)
         for pt in range(N_POINTS)], np.int32)
    wsoaw = jnp.concatenate([p["so_w"][:, so_perm], p["aw_w"][:, aw_perm]], axis=1)
    bsoaw = jnp.concatenate([p["so_b"][so_perm], p["aw_b"][aw_perm]]).reshape(1, -1)

    # block-diagonal group-sum matrix for the per-head softmax (layout (l,h,p))
    cols = np.arange(N_OFF)
    head_of = (cols % HP) // N_POINTS
    gmat = jnp.asarray((head_of[:, None] == head_of[None, :]).astype(np.float32))

    # FFN zero-padded to a full 128-lane hidden (mathematically identical)
    w1 = jnp.zeros((D, FFN_PAD), jnp.float32).at[:, :F].set(p["l1_w"])
    b1 = jnp.zeros((1, FFN_PAD), jnp.float32).at[:, :F].set(p["l1_b"])
    w2 = jnp.zeros((FFN_PAD, D), jnp.float32).at[:F, :].set(p["l2_w"])

    return {
        "wqk": wqk, "bqk": bqk,
        "wv": p["sa_wv"], "bv": p["sa_bv"].reshape(1, D),
        "wo": p["sa_wo"], "bo": p["sa_bo"].reshape(1, D),
        "ln2g": p["ln2_g"].reshape(1, D), "ln2b": p["ln2_b"].reshape(1, D),
        "wsoaw": wsoaw, "bsoaw": bsoaw, "gmat": gmat,
        "wva": p["va_w"], "bva": p["va_b"].reshape(1, D),
        "wop": p["op_w"], "bop": p["op_b"].reshape(1, D),
        "ln1g": p["ln1_g"].reshape(1, D), "ln1b": p["ln1_b"].reshape(1, D),
        "w1": w1, "b1": b1, "w2": w2, "b2": p["l2_b"].reshape(1, D),
        "ln3g": p["ln3_g"].reshape(1, D), "ln3b": p["ln3_b"].reshape(1, D),
    }


# ----------------------------------------------------------------------------
# deterministic parameter init (synthetic; shapes match the nn.Module)
# ----------------------------------------------------------------------------
def init_params(key):
    D, F = D_MODEL, D_FFN
    keys = jax.random.split(key, 12)
    w = lambda k, shape: (0.05 * jax.random.normal(k, shape)).astype(jnp.float32)
    zeros = lambda n: jnp.zeros((n,), jnp.float32)
    ones = lambda n: jnp.ones((n,), jnp.float32)
    return {
        "sa_wq": w(keys[0], (D, D)), "sa_bq": zeros(D),
        "sa_wk": w(keys[1], (D, D)), "sa_bk": zeros(D),
        "sa_wv": w(keys[2], (D, D)), "sa_bv": zeros(D),
        "sa_wo": w(keys[3], (D, D)), "sa_bo": zeros(D),
        "ln2_g": ones(D), "ln2_b": zeros(D),
        "va_w": w(keys[4], (D, D)), "va_b": zeros(D),
        "so_w": w(keys[5], (D, N_HEADS * N_LEVELS * N_POINTS * 2)),
        "so_b": zeros(N_HEADS * N_LEVELS * N_POINTS * 2),
        "aw_w": w(keys[6], (D, N_HEADS * N_LEVELS * N_POINTS)),
        "aw_b": zeros(N_HEADS * N_LEVELS * N_POINTS),
        "op_w": w(keys[7], (D, D)), "op_b": zeros(D),
        "ln1_g": ones(D), "ln1_b": zeros(D),
        "l1_w": w(keys[8], (D, F)), "l1_b": zeros(F),
        "l2_w": w(keys[9], (F, D)), "l2_b": zeros(D),
        "ln3_g": ones(D), "ln3_b": zeros(D),
    }


# ----------------------------------------------------------------------------
# pure-JAX reference (for a runtime sanity check only)
# ----------------------------------------------------------------------------
def reference_forward(tgt, query_pos, reference_points, src, p):
    B, Lq, D = tgt.shape
    scale = 1.0 / math.sqrt(D_HEAD)

    def layer_norm(y, g, b):
        mu = jnp.mean(y, axis=-1, keepdims=True)
        var = jnp.mean((y - mu) ** 2, axis=-1, keepdims=True)
        return (y - mu) * jax.lax.rsqrt(var + LN_EPS) * g + b

    x = tgt + query_pos
    q = x @ p["sa_wq"] + p["sa_bq"]
    k = x @ p["sa_wk"] + p["sa_bk"]
    v = tgt @ p["sa_wv"] + p["sa_bv"]
    qh = q.reshape(B, Lq, N_HEADS, D_HEAD).transpose(0, 2, 1, 3) * scale
    kh = k.reshape(B, Lq, N_HEADS, D_HEAD).transpose(0, 2, 1, 3)
    vh = v.reshape(B, Lq, N_HEADS, D_HEAD).transpose(0, 2, 1, 3)
    pr = jax.nn.softmax(jnp.einsum("bhqd,bhkd->bhqk", qh, kh), axis=-1)
    sa = jnp.einsum("bhqk,bhkd->bhqd", pr, vh).transpose(0, 2, 1, 3).reshape(B, Lq, D)
    sa = sa @ p["sa_wo"] + p["sa_bo"]
    tgt1 = layer_norm(tgt + sa, p["ln2_g"], p["ln2_b"])

    q2 = tgt1 + query_pos
    value = (src @ p["va_w"] + p["va_b"]).reshape(B, LEN_IN, N_HEADS, D_HEAD)
    off = (q2 @ p["so_w"] + p["so_b"]).reshape(B, Lq, N_HEADS, N_LEVELS, N_POINTS, 2)
    aw = (q2 @ p["aw_w"] + p["aw_b"]).reshape(B, Lq, N_HEADS, N_LEVELS * N_POINTS)
    aw = jax.nn.softmax(aw, axis=-1).reshape(B, Lq, N_HEADS, N_LEVELS, N_POINTS)
    normalizer = jnp.array([[w_, h_] for (h_, w_) in SPATIAL_SHAPES], jnp.float32)
    loc = (reference_points[:, :, None, :, None, :]
           + off / normalizer[None, None, None, :, None, :])
    outs, start = [], 0
    for l, (Hl, Wl) in enumerate(SPATIAL_SHAPES):
        Sl = Hl * Wl
        val_l = value[:, start:start + Sl].transpose(0, 2, 1, 3)
        start += Sl
        xl = loc[:, :, :, l, :, 0] * Wl - 0.5
        yl = loc[:, :, :, l, :, 1] * Hl - 0.5
        x0, y0 = jnp.floor(xl), jnp.floor(yl)
        acc = jnp.zeros((B, N_HEADS, Lq, N_POINTS, D_HEAD), jnp.float32)
        for dy in (0.0, 1.0):
            for dx in (0.0, 1.0):
                xi, yi = x0 + dx, y0 + dy
                wgt = (1 - jnp.abs(xl - xi)) * (1 - jnp.abs(yl - yi))
                inb = ((xi >= 0) & (xi <= Wl - 1) & (yi >= 0)
                       & (yi <= Hl - 1)).astype(jnp.float32)
                idx = (jnp.clip(yi, 0, Hl - 1) * Wl
                       + jnp.clip(xi, 0, Wl - 1)).astype(jnp.int32)
                idx_t = idx.transpose(0, 2, 1, 3).reshape(B, N_HEADS, Lq * N_POINTS)
                g = jnp.take_along_axis(
                    val_l, jnp.broadcast_to(idx_t[..., None],
                                            (B, N_HEADS, Lq * N_POINTS, D_HEAD)),
                    axis=2).reshape(B, N_HEADS, Lq, N_POINTS, D_HEAD)
                acc = acc + g * (wgt * inb).transpose(0, 2, 1, 3)[..., None]
        outs.append(acc)
    sampled = jnp.stack(outs, axis=3)
    cross = (sampled * aw.transpose(0, 2, 1, 3, 4)[..., None]).sum(axis=(3, 4))
    cross = cross.transpose(0, 2, 1, 3).reshape(B, Lq, D) @ p["op_w"] + p["op_b"]
    tgt2 = layer_norm(tgt1 + cross, p["ln1_g"], p["ln1_b"])

    hid = jnp.maximum(tgt2 @ p["l1_w"] + p["l1_b"], 0.0)
    return layer_norm(tgt2 + (hid @ p["l2_w"] + p["l2_b"]),
                      p["ln3_g"], p["ln3_b"])


if __name__ == "__main__":
    B = 2
    key = jax.random.PRNGKey(0)
    k_tgt, k_pos, k_ref, k_src, k_par = jax.random.split(key, 5)

    tgt = jax.random.normal(k_tgt, (B, LEN_Q, D_MODEL), jnp.float32)
    query_pos = jax.random.normal(k_pos, (B, LEN_Q, D_MODEL), jnp.float32)
    reference_points = jax.random.uniform(k_ref, (B, LEN_Q, N_LEVELS, 2),
                                          jnp.float32, 0.1, 0.9)
    src = jax.random.normal(k_src, (B, LEN_IN, D_MODEL), jnp.float32)
    level_start_index = jnp.array(LEVEL_STARTS, dtype=jnp.int32)

    params = init_params(k_par)
    fused = prepare_params(params)            # permute / fuse / pad weights once

    @jax.jit
    def run(tgt, query_pos, reference_points, src, fused):
        return decoder_layer_forward(tgt, query_pos, reference_points, src,
                                     fused, level_start_index)

    out = jax.block_until_ready(run(tgt, query_pos, reference_points, src, fused))

    assert out.shape == (B, LEN_Q, D_MODEL), out.shape
    assert out.dtype == jnp.float32
    assert bool(jnp.all(jnp.isfinite(out)))

    # sanity check against a pure-JAX reference (approx reciprocal => loose tol)
    ref_out = reference_forward(tgt, query_pos, reference_points, src, params)
    max_err = float(jnp.max(jnp.abs(out - ref_out)))
    assert max_err < 2e-2, f"mismatch vs reference: {max_err}"

    print("KERNEL_OK")
</pallas_src>

<mosaic_0001>
module attributes {stable_mosaic.version = 11 : i64} {
  func.func @_decoder_layer_kernel(%arg0: i32, %arg1: memref<1x8x32xf32, #tpu.memory_space<vmem>>, %arg2: memref<1x8x32xf32, #tpu.memory_space<vmem>>, %arg3: memref<1x8x4xf32, #tpu.memory_space<vmem>>, %arg4: memref<1x80x32xf32, #tpu.memory_space<vmem>>, %arg5: memref<32x64xf32, #tpu.memory_space<vmem>>, %arg6: memref<1x64xf32, #tpu.memory_space<vmem>>, %arg7: memref<32x32xf32, #tpu.memory_space<vmem>>, %arg8: memref<1x32xf32, #tpu.memory_space<vmem>>, %arg9: memref<32x32xf32, #tpu.memory_space<vmem>>, %arg10: memref<1x32xf32, #tpu.memory_space<vmem>>, %arg11: memref<1x32xf32, #tpu.memory_space<vmem>>, %arg12: memref<1x32xf32, #tpu.memory_space<vmem>>, %arg13: memref<32x48xf32, #tpu.memory_space<vmem>>, %arg14: memref<1x48xf32, #tpu.memory_space<vmem>>, %arg15: memref<16x16xf32, #tpu.memory_space<vmem>>, %arg16: memref<32x32xf32, #tpu.memory_space<vmem>>, %arg17: memref<1x32xf32, #tpu.memory_space<vmem>>, %arg18: memref<32x32xf32, #tpu.memory_space<vmem>>, %arg19: memref<1x32xf32, #tpu.memory_space<vmem>>, %arg20: memref<1x32xf32, #tpu.memory_space<vmem>>, %arg21: memref<1x32xf32, #tpu.memory_space<vmem>>, %arg22: memref<32x128xf32, #tpu.memory_space<vmem>>, %arg23: memref<1x128xf32, #tpu.memory_space<vmem>>, %arg24: memref<128x32xf32, #tpu.memory_space<vmem>>, %arg25: memref<1x32xf32, #tpu.memory_space<vmem>>, %arg26: memref<1x32xf32, #tpu.memory_space<vmem>>, %arg27: memref<1x32xf32, #tpu.memory_space<vmem>>, %arg28: memref<1x8x32xf32, #tpu.memory_space<vmem>>, %arg29: memref<8x32xf32, #tpu.memory_space<vmem>>, %arg30: memref<320x32xf32, #tpu.memory_space<vmem>>, %arg31: memref<8x320xf32, #tpu.memory_space<vmem>>) attributes {dimension_semantics = [#tpu.dimension_semantics<parallel>], iteration_bounds = array<i64: 2>, scalar_prefetch = 0 : i64, scratch_operands = 3 : i64, tpu.core_type = #tpu.core_type<tc>, window_params = [{transform_indices = @transform_0, window_bounds = array<i64: 1, 8, 32>}, {transform_indices = @transform_1, window_bounds = array<i64: 1, 8, 32>}, {transform_indices = @transform_2, window_bounds = array<i64: 1, 8, 4>}, {transform_indices = @transform_3, window_bounds = array<i64: 1, 80, 32>}, {pipeline_mode = #tpu.pipeline_mode<synchronous>, transform_indices = @transform_4, window_bounds = array<i64: 32, 64>}, {pipeline_mode = #tpu.pipeline_mode<synchronous>, transform_indices = @transform_5, window_bounds = array<i64: 1, 64>}, {pipeline_mode = #tpu.pipeline_mode<synchronous>, transform_indices = @transform_6, window_bounds = array<i64: 32, 32>}, {pipeline_mode = #tpu.pipeline_mode<synchronous>, transform_indices = @transform_7, window_bounds = array<i64: 1, 32>}, {pipeline_mode = #tpu.pipeline_mode<synchronous>, transform_indices = @transform_8, window_bounds = array<i64: 32, 32>}, {pipeline_mode = #tpu.pipeline_mode<synchronous>, transform_indices = @transform_9, window_bounds = array<i64: 1, 32>}, {pipeline_mode = #tpu.pipeline_mode<synchronous>, transform_indices = @transform_10, window_bounds = array<i64: 1, 32>}, {pipeline_mode = #tpu.pipeline_mode<synchronous>, transform_indices = @transform_11, window_bounds = array<i64: 1, 32>}, {pipeline_mode = #tpu.pipeline_mode<synchronous>, transform_indices = @transform_12, window_bounds = array<i64: 32, 48>}, {pipeline_mode = #tpu.pipeline_mode<synchronous>, transform_indices = @transform_13, window_bounds = array<i64: 1, 48>}, {pipeline_mode = #tpu.pipeline_mode<synchronous>, transform_indices = @transform_14, window_bounds = array<i64: 16, 16>}, {pipeline_mode = #tpu.pipeline_mode<synchronous>, transform_indices = @transform_15, window_bounds = array<i64: 32, 32>}, {pipeline_mode = #tpu.pipeline_mode<synchronous>, transform_indices = @transform_16, window_bounds = array<i64: 1, 32>}, {pipeline_mode = #tpu.pipeline_mode<synchronous>, transform_indices = @transform_17, window_bounds = array<i64: 32, 32>}, {pipeline_mode = #tpu.pipeline_mode<synchronous>, transform_indices = @transform_18, window_bounds = array<i64: 1, 32>}, {pipeline_mode = #tpu.pipeline_mode<synchronous>, transform_indices = @transform_19, window_bounds = array<i64: 1, 32>}, {pipeline_mode = #tpu.pipeline_mode<synchronous>, transform_indices = @transform_20, window_bounds = array<i64: 1, 32>}, {pipeline_mode = #tpu.pipeline_mode<synchronous>, transform_indices = @transform_21, window_bounds = array<i64: 32, 128>}, {pipeline_mode = #tpu.pipeline_mode<synchronous>, transform_indices = @transform_22, window_bounds = array<i64: 1, 128>}, {pipeline_mode = #tpu.pipeline_mode<synchronous>, transform_indices = @transform_23, window_bounds = array<i64: 128, 32>}, {pipeline_mode = #tpu.pipeline_mode<synchronous>, transform_indices = @transform_24, window_bounds = array<i64: 1, 32>}, {pipeline_mode = #tpu.pipeline_mode<synchronous>, transform_indices = @transform_25, window_bounds = array<i64: 1, 32>}, {pipeline_mode = #tpu.pipeline_mode<synchronous>, transform_indices = @transform_26, window_bounds = array<i64: 1, 32>}, {transform_indices = @transform_27, window_bounds = array<i64: 1, 8, 32>}]} {
    %c0 = arith.constant 0 : index
    %c0_0 = arith.constant 0 : index
    %c0_1 = arith.constant 0 : index
    %0 = vector.load %arg1[%c0, %c0_0, %c0_1] : memref<1x8x32xf32, #tpu.memory_space<vmem>>, vector<1x8x32xf32>
    %1 = vector.shape_cast %0 : vector<1x8x32xf32> to vector<8x32xf32>
    %c0_2 = arith.constant 0 : index
    %c0_3 = arith.constant 0 : index
    %c0_4 = arith.constant 0 : index
    %2 = vector.load %arg2[%c0_2, %c0_3, %c0_4] : memref<1x8x32xf32, #tpu.memory_space<vmem>>, vector<1x8x32xf32>
    %3 = vector.shape_cast %2 : vector<1x8x32xf32> to vector<8x32xf32>
    %c0_5 = arith.constant 0 : index
    %c0_6 = arith.constant 0 : index
    %c0_7 = arith.constant 0 : index
    %4 = vector.load %arg3[%c0_5, %c0_6, %c0_7] : memref<1x8x4xf32, #tpu.memory_space<vmem>>, vector<1x8x4xf32>
    %5 = vector.shape_cast %4 : vector<1x8x4xf32> to vector<8x4xf32>
    %c0_8 = arith.constant 0 : index
    %c0_9 = arith.constant 0 : index
    %c0_10 = arith.constant 0 : index
    %6 = vector.load %arg4[%c0_8, %c0_9, %c0_10] : memref<1x80x32xf32, #tpu.memory_space<vmem>>, vector<1x80x32xf32>
    %7 = vector.shape_cast %6 : vector<1x80x32xf32> to vector<80x32xf32>
    %8 = arith.addf %1, %3 : vector<8x32xf32>
    %c0_11 = arith.constant 0 : index
    %c0_12 = arith.constant 0 : index
    %9 = vector.load %arg5[%c0_11, %c0_12] : memref<32x64xf32, #tpu.memory_space<vmem>>, vector<32x64xf32>
    %cst = arith.constant dense<0.000000e+00> : vector<8x64xf32>
    %10 = tpu.matmul %8, %9, %cst {dimension_numbers = #tpu.dot_dimension_numbers<[1], [0], [0], [1], [0, 0, 1, 1], [], []>} : vector<8x32xf32>, vector<32x64xf32>, vector<8x64xf32> -> vector<8x64xf32>
    %c0_13 = arith.constant 0 : index
    %c0_14 = arith.constant 0 : index
    %11 = vector.load %arg6[%c0_13, %c0_14] : memref<1x64xf32, #tpu.memory_space<vmem>>, vector<1x64xf32>
    %12 = vector.broadcast %11 : vector<1x64xf32> to vector<8x64xf32>
    %13 = arith.addf %10, %12 : vector<8x64xf32>
    %c0_15 = arith.constant 0 : index
    %c0_16 = arith.constant 0 : index
    %14 = vector.load %arg7[%c0_15, %c0_16] : memref<32x32xf32, #tpu.memory_space<vmem>>, vector<32x32xf32>
    %cst_17 = arith.constant dense<0.000000e+00> : vector<8x32xf32>
    %15 = tpu.matmul %1, %14, %cst_17 {dimension_numbers = #tpu.dot_dimension_numbers<[1], [0], [0], [1], [0, 0, 1, 1], [], []>} : vector<8x32xf32>, vector<32x32xf32>, vector<8x32xf32> -> vector<8x32xf32>
    %c0_18 = arith.constant 0 : index
    %c0_19 = arith.constant 0 : index
    %16 = vector.load %arg8[%c0_18, %c0_19] : memref<1x32xf32, #tpu.memory_space<vmem>>, vector<1x32xf32>
    %17 = vector.broadcast %16 : vector<1x32xf32> to vector<8x32xf32>
    %18 = arith.addf %15, %17 : vector<8x32xf32>
    %19 = vector.extract_strided_slice %13 {offsets = [0, 0], sizes = [8, 32], strides = [1, 1]} : vector<8x64xf32> to vector<8x32xf32>
    %20 = vector.extract_strided_slice %13 {offsets = [0, 32], sizes = [8, 32], strides = [1, 1]} : vector<8x64xf32> to vector<8x32xf32>
    %21 = vector.extract_strided_slice %19 {offsets = [0, 0], sizes = [8, 8], strides = [1, 1]} : vector<8x32xf32> to vector<8x8xf32>
    %22 = vector.extract_strided_slice %20 {offsets = [0, 0], sizes = [8, 8], strides = [1, 1]} : vector<8x32xf32> to vector<8x8xf32>
    %23 = vector.extract_strided_slice %18 {offsets = [0, 0], sizes = [8, 8], strides = [1, 1]} : vector<8x32xf32> to vector<8x8xf32>
    %cst_20 = arith.constant dense<0.000000e+00> : vector<8x8xf32>
    %24 = tpu.matmul %21, %22, %cst_20 {dimension_numbers = #tpu.dot_dimension_numbers<[1], [1], [0], [0], [0, 0, 1, 0], [], []>} : vector<8x8xf32>, vector<8x8xf32>, vector<8x8xf32> -> vector<8x8xf32>
    %cst_21 = arith.constant dense<0xFF800000> : vector<8xf32>
    %25 = vector.multi_reduction <maximumf>, %24, %cst_21 [1] : vector<8x8xf32> to vector<8xf32>
    %26 = vector.shape_cast %25 : vector<8xf32> to vector<8x1xf32>
    %27 = vector.broadcast %26 : vector<8x1xf32> to vector<8x8xf32>
    %28 = arith.subf %24, %27 : vector<8x8xf32>
    %29 = math.exp %28 : vector<8x8xf32>
    %cst_22 = arith.constant dense<0.000000e+00> : vector<8xf32>
    %30 = vector.multi_reduction <add>, %29, %cst_22 [1] : vector<8x8xf32> to vector<8xf32>
    %31 = vector.shape_cast %30 : vector<8xf32> to vector<8x1xf32>
    %32 = tpu.reciprocal %31 {approx = true} : vector<8x1xf32> -> vector<8x1xf32>
    %33 = vector.broadcast %32 : vector<8x1xf32> to vector<8x8xf32>
    %34 = arith.mulf %29, %33 : vector<8x8xf32>
    %cst_23 = arith.constant dense<0.000000e+00> : vector<8x8xf32>
    %35 = tpu.matmul %34, %23, %cst_23 {dimension_numbers = #tpu.dot_dimension_numbers<[1], [0], [0], [1], [0, 0, 1, 1], [], []>} : vector<8x8xf32>, vector<8x8xf32>, vector<8x8xf32> -> vector<8x8xf32>
    %c0_24 = arith.constant 0 : index
    %c0_25 = arith.constant 0 : index
    %36 = vector.load %arg29[%c0_24, %c0_25] : memref<8x32xf32, #tpu.memory_space<vmem>>, vector<8x8xf32>
    tpu.vector_store %arg29[%c0_24, %c0_25], %35 {strides = array<i32>} : memref<8x32xf32, #tpu.memory_space<vmem>>, vector<8x8xf32>,
    %37 = vector.extract_strided_slice %19 {offsets = [0, 8], sizes = [8, 8], strides = [1, 1]} : vector<8x32xf32> to vector<8x8xf32>
    %38 = vector.extract_strided_slice %20 {offsets = [0, 8], sizes = [8, 8], strides = [1, 1]} : vector<8x32xf32> to vector<8x8xf32>
    %39 = vector.extract_strided_slice %18 {offsets = [0, 8], sizes = [8, 8], strides = [1, 1]} : vector<8x32xf32> to vector<8x8xf32>
    %cst_26 = arith.constant dense<0.000000e+00> : vector<8x8xf32>
    %40 = tpu.matmul %37, %38, %cst_26 {dimension_numbers = #tpu.dot_dimension_numbers<[1], [1], [0], [0], [0, 0, 1, 0], [], []>} : vector<8x8xf32>, vector<8x8xf32>, vector<8x8xf32> -> vector<8x8xf32>
    %cst_27 = arith.constant dense<0xFF800000> : vector<8xf32>
    %41 = vector.multi_reduction <maximumf>, %40, %cst_27 [1] : vector<8x8xf32> to vector<8xf32>
    %42 = vector.shape_cast %41 : vector<8xf32> to vector<8x1xf32>
    %43 = vector.broadcast %42 : vector<8x1xf32> to vector<8x8xf32>
    %44 = arith.subf %40, %43 : vector<8x8xf32>
    %45 = math.exp %44 : vector<8x8xf32>
    %cst_28 = arith.constant dense<0.000000e+00> : vector<8xf32>
    %46 = vector.multi_reduction <add>, %45, %cst_28 [1] : vector<8x8xf32> to vector<8xf32>
    %47 = vector.shape_cast %46 : vector<8xf32> to vector<8x1xf32>
    %48 = tpu.reciprocal %47 {approx = true} : vector<8x1xf32> -> vector<8x1xf32>
    %49 = vector.broadcast %48 : vector<8x1xf32> to vector<8x8xf32>
    %50 = arith.mulf %45, %49 : vector<8x8xf32>
    %cst_29 = arith.constant dense<0.000000e+00> : vector<8x8xf32>
    %51 = tpu.matmul %50, %39, %cst_29 {dimension_numbers = #tpu.dot_dimension_numbers<[1], [0], [0], [1], [0, 0, 1, 1], [], []>} : vector<8x8xf32>, vector<8x8xf32>, vector<8x8xf32> -> vector<8x8xf32>
    %c0_30 = arith.constant 0 : index
    %c8 = arith.constant 8 : index
    %52 = vector.load %arg29[%c0_30, %c8] : memref<8x32xf32, #tpu.memory_space<vmem>>, vector<8x8xf32>
    tpu.vector_store %arg29[%c0_30, %c8], %51 {strides = array<i32>} : memref<8x32xf32, #tpu.memory_space<vmem>>, vector<8x8xf32>,
    %53 = vector.extract_strided_slice %19 {offsets = [0, 16], sizes = [8, 8], strides = [1, 1]} : vector<8x32xf32> to vector<8x8xf32>
    %54 = vector.extract_strided_slice %20 {offsets = [0, 16], sizes = [8, 8], strides = [1, 1]} : vector<8x32xf32> to vector<8x8xf32>
    %55 = vector.extract_strided_slice %18 {offsets = [0, 16], sizes = [8, 8], strides = [1, 1]} : vector<8x32xf32> to vector<8x8xf32>
    %cst_31 = arith.constant dense<0.000000e+00> : vector<8x8xf32>
    %56 = tpu.matmul %53, %54, %cst_31 {dimension_numbers = #tpu.dot_dimension_numbers<[1], [1], [0], [0], [0, 0, 1, 0], [], []>} : vector<8x8xf32>, vector<8x8xf32>, vector<8x8xf32> -> vector<8x8xf32>
    %cst_32 = arith.constant dense<0xFF800000> : vector<8xf32>
    %57 = vector.multi_reduction <maximumf>, %56, %cst_32 [1] : vector<8x8xf32> to vector<8xf32>
    %58 = vector.shape_cast %57 : vector<8xf32> to vector<8x1xf32>
    %59 = vector.broadcast %58 : vector<8x1xf32> to vector<8x8xf32>
    %60 = arith.subf %56, %59 : vector<8x8xf32>
    %61 = math.exp %60 : vector<8x8xf32>
    %cst_33 = arith.constant dense<0.000000e+00> : vector<8xf32>
    %62 = vector.multi_reduction <add>, %61, %cst_33 [1] : vector<8x8xf32> to vector<8xf32>
    %63 = vector.shape_cast %62 : vector<8xf32> to vector<8x1xf32>
    %64 = tpu.reciprocal %63 {approx = true} : vector<8x1xf32> -> vector<8x1xf32>
    %65 = vector.broadcast %64 : vector<8x1xf32> to vector<8x8xf32>
    %66 = arith.mulf %61, %65 : vector<8x8xf32>
    %cst_34 = arith.constant dense<0.000000e+00> : vector<8x8xf32>
    %67 = tpu.matmul %66, %55, %cst_34 {dimension_numbers = #tpu.dot_dimension_numbers<[1], [0], [0], [1], [0, 0, 1, 1], [], []>} : vector<8x8xf32>, vector<8x8xf32>, vector<8x8xf32> -> vector<8x8xf32>
    %c0_35 = arith.constant 0 : index
    %c16 = arith.constant 16 : index
    %68 = vector.load %arg29[%c0_35, %c16] : memref<8x32xf32, #tpu.memory_space<vmem>>, vector<8x8xf32>
    tpu.vector_store %arg29[%c0_35, %c16], %67 {strides = array<i32>} : memref<8x32xf32, #tpu.memory_space<vmem>>, vector<8x8xf32>,
    %69 = vector.extract_strided_slice %19 {offsets = [0, 24], sizes = [8, 8], strides = [1, 1]} : vector<8x32xf32> to vector<8x8xf32>
    %70 = vector.extract_strided_slice %20 {offsets = [0, 24], sizes = [8, 8], strides = [1, 1]} : vector<8x32xf32> to vector<8x8xf32>
    %71 = vector.extract_strided_slice %18 {offsets = [0, 24], sizes = [8, 8], strides = [1, 1]} : vector<8x32xf32> to vector<8x8xf32>
    %cst_36 = arith.constant dense<0.000000e+00> : vector<8x8xf32>
    %72 = tpu.matmul %69, %70, %cst_36 {dimension_numbers = #tpu.dot_dimension_numbers<[1], [1], [0], [0], [0, 0, 1, 0], [], []>} : vector<8x8xf32>, vector<8x8xf32>, vector<8x8xf32> -> vector<8x8xf32>
    %cst_37 = arith.constant dense<0xFF800000> : vector<8xf32>
    %73 = vector.multi_reduction <maximumf>, %72, %cst_37 [1] : vector<8x8xf32> to vector<8xf32>
    %74 = vector.shape_cast %73 : vector<8xf32> to vector<8x1xf32>
    %75 = vector.broadcast %74 : vector<8x1xf32> to vector<8x8xf32>
    %76 = arith.subf %72, %75 : vector<8x8xf32>
    %77 = math.exp %76 : vector<8x8xf32>
    %cst_38 = arith.constant dense<0.000000e+00> : vector<8xf32>
    %78 = vector.multi_reduction <add>, %77, %cst_38 [1] : vector<8x8xf32> to vector<8xf32>
    %79 = vector.shape_cast %78 : vector<8xf32> to vector<8x1xf32>
    %80 = tpu.reciprocal %79 {approx = true} : vector<8x1xf32> -> vector<8x1xf32>
    %81 = vector.broadcast %80 : vector<8x1xf32> to vector<8x8xf32>
    %82 = arith.mulf %77, %81 : vector<8x8xf32>
    %cst_39 = arith.constant dense<0.000000e+00> : vector<8x8xf32>
    %83 = tpu.matmul %82, %71, %cst_39 {dimension_numbers = #tpu.dot_dimension_numbers<[1], [0], [0], [1], [0, 0, 1, 1], [], []>} : vector<8x8xf32>, vector<8x8xf32>, vector<8x8xf32> -> vector<8x8xf32>
    %c0_40 = arith.constant 0 : index
    %c24 = arith.constant 24 : index
    %84 = vector.load %arg29[%c0_40, %c24] : memref<8x32xf32, #tpu.memory_space<vmem>>, vector<8x8xf32>
    tpu.vector_store %arg29[%c0_40, %c24], %83 {strides = array<i32>} : memref<8x32xf32, #tpu.memory_space<vmem>>, vector<8x8xf32>,
    %c0_41 = arith.constant 0 : index
    %c0_42 = arith.constant 0 : index
    %85 = vector.load %arg29[%c0_41, %c0_42] : memref<8x32xf32, #tpu.memory_space<vmem>>, vector<8x32xf32>
    %c0_43 = arith.constant 0 : index
    %c0_44 = arith.constant 0 : index
    %86 = vector.load %arg9[%c0_43, %c0_44] : memref<32x32xf32, #tpu.memory_space<vmem>>, vector<32x32xf32>
    %cst_45 = arith.constant dense<0.000000e+00> : vector<8x32xf32>
    %87 = tpu.matmul %85, %86, %cst_45 {dimension_numbers = #tpu.dot_dimension_numbers<[1], [0], [0], [1], [0, 0, 1, 1], [], []>} : vector<8x32xf32>, vector<32x32xf32>, vector<8x32xf32> -> vector<8x32xf32>
    %c0_46 = arith.constant 0 : index
    %c0_47 = arith.constant 0 : index
    %88 = vector.load %arg10[%c0_46, %c0_47] : memref<1x32xf32, #tpu.memory_space<vmem>>, vector<1x32xf32>
    %89 = vector.broadcast %88 : vector<1x32xf32> to vector<8x32xf32>
    %90 = arith.addf %87, %89 : vector<8x32xf32>
    %91 = arith.addf %1, %90 : vector<8x32xf32>
    %c0_48 = arith.constant 0 : index
    %c0_49 = arith.constant 0 : index
    %92 = vector.load %arg11[%c0_48, %c0_49] : memref<1x32xf32, #tpu.memory_space<vmem>>, vector<1x32xf32>
    %c0_50 = arith.constant 0 : index
    %c0_51 = arith.constant 0 : index
    %93 = vector.load %arg12[%c0_50, %c0_51] : memref<1x32xf32, #tpu.memory_space<vmem>>, vector<1x32xf32>
    %cst_52 = arith.constant dense<0.000000e+00> : vector<8xf32>
    %94 = vector.multi_reduction <add>, %91, %cst_52 [1] : vector<8x32xf32> to vector<8xf32>
    %95 = vector.shape_cast %94 : vector<8xf32> to vector<8x1xf32>
    %cst_53 = arith.constant 3.200000e+01 : f32
    %96 = vector.broadcast %cst_53 : f32 to vector<8x1xf32>
    %97 = arith.divf %95, %96 : vector<8x1xf32>
    %98 = vector.broadcast %97 : vector<8x1xf32> to vector<8x32xf32>
    %99 = arith.subf %91, %98 : vector<8x32xf32>
    %100 = arith.mulf %99, %99 : vector<8x32xf32>
    %cst_54 = arith.constant dense<0.000000e+00> : vector<8xf32>
    %101 = vector.multi_reduction <add>, %100, %cst_54 [1] : vector<8x32xf32> to vector<8xf32>
    %102 = vector.shape_cast %101 : vector<8xf32> to vector<8x1xf32>
    %cst_55 = arith.constant 3.200000e+01 : f32
    %103 = vector.broadcast %cst_55 : f32 to vector<8x1xf32>
    %104 = arith.divf %102, %103 : vector<8x1xf32>
    %cst_56 = arith.constant 9.99999974E-6 : f32
    %105 = vector.broadcast %cst_56 : f32 to vector<8x1xf32>
    %106 = arith.addf %104, %105 : vector<8x1xf32>
    %107 = math.rsqrt %106 : vector<8x1xf32>
    %108 = vector.broadcast %107 : vector<8x1xf32> to vector<8x32xf32>
    %109 = arith.mulf %99, %108 : vector<8x32xf32>
    %110 = vector.broadcast %92 : vector<1x32xf32> to vector<8x32xf32>
    %111 = arith.mulf %109, %110 : vector<8x32xf32>
    %112 = vector.broadcast %93 : vector<1x32xf32> to vector<8x32xf32>
    %113 = arith.addf %111, %112 : vector<8x32xf32>
    %114 = arith.addf %113, %3 : vector<8x32xf32>
    %c0_57 = arith.constant 0 : index
    %c0_58 = arith.constant 0 : index
    %115 = vector.load %arg13[%c0_57, %c0_58] : memref<32x48xf32, #tpu.memory_space<vmem>>, vector<32x48xf32>
    %cst_59 = arith.constant dense<0.000000e+00> : vector<8x48xf32>
    %116 = tpu.matmul %114, %115, %cst_59 {dimension_numbers = #tpu.dot_dimension_numbers<[1], [0], [0], [1], [0, 0, 1, 1], [], []>} : vector<8x32xf32>, vector<32x48xf32>, vector<8x48xf32> -> vector<8x48xf32>
    %c0_60 = arith.constant 0 : index
    %c0_61 = arith.constant 0 : index
    %117 = vector.load %arg14[%c0_60, %c0_61] : memref<1x48xf32, #tpu.memory_space<vmem>>, vector<1x48xf32>
    %118 = vector.broadcast %117 : vector<1x48xf32> to vector<8x48xf32>
    %119 = arith.addf %116, %118 : vector<8x48xf32>
    %120 = vector.extract_strided_slice %119 {offsets = [0, 0], sizes = [8, 32], strides = [1, 1]} : vector<8x48xf32> to vector<8x32xf32>
    %121 = vector.extract_strided_slice %119 {offsets = [0, 32], sizes = [8, 16], strides = [1, 1]} : vector<8x48xf32> to vector<8x16xf32>
    %cst_62 = arith.constant dense<0xFF800000> : vector<8xf32>
    %122 = vector.multi_reduction <maximumf>, %121, %cst_62 [1] : vector<8x16xf32> to vector<8xf32>
    %123 = vector.shape_cast %122 : vector<8xf32> to vector<8x1xf32>
    %124 = vector.broadcast %123 : vector<8x1xf32> to vector<8x16xf32>
    %125 = arith.subf %121, %124 : vector<8x16xf32>
    %126 = math.exp %125 : vector<8x16xf32>
    %c0_63 = arith.constant 0 : index
    %c0_64 = arith.constant 0 : index
    %127 = vector.load %arg15[%c0_63, %c0_64] : memref<16x16xf32, #tpu.memory_space<vmem>>, vector<16x16xf32>
    %cst_65 = arith.constant dense<0.000000e+00> : vector<8x16xf32>
    %128 = tpu.matmul %126, %127, %cst_65 {dimension_numbers = #tpu.dot_dimension_numbers<[1], [0], [0], [1], [0, 0, 1, 1], [], []>} : vector<8x16xf32>, vector<16x16xf32>, vector<8x16xf32> -> vector<8x16xf32>
    %129 = tpu.reciprocal %128 {approx = true} : vector<8x16xf32> -> vector<8x16xf32>
    %130 = arith.mulf %126, %129 : vector<8x16xf32>
    %c0_66 = arith.constant 0 : index
    %c0_67 = arith.constant 0 : index
    %131 = vector.load %arg16[%c0_66, %c0_67] : memref<32x32xf32, #tpu.memory_space<vmem>>, vector<32x32xf32>
    %cst_68 = arith.constant dense<0.000000e+00> : vector<80x32xf32>
    %132 = tpu.matmul %7, %131, %cst_68 {dimension_numbers = #tpu.dot_dimension_numbers<[1], [0], [0], [1], [0, 0, 1, 1], [], []>} : vector<80x32xf32>, vector<32x32xf32>, vector<80x32xf32> -> vector<80x32xf32>
    %c0_69 = arith.constant 0 : index
    %c0_70 = arith.constant 0 : index
    %133 = vector.load %arg17[%c0_69, %c0_70] : memref<1x32xf32, #tpu.memory_space<vmem>>, vector<1x32xf32>
    %134 = vector.broadcast %133 : vector<1x32xf32> to vector<80x32xf32>
    %135 = arith.addf %132, %134 : vector<80x32xf32>
    %c0_71 = arith.constant 0 : index
    %c0_72 = arith.constant 0 : index
    %136 = vector.load %arg18[%c0_71, %c0_72] : memref<32x32xf32, #tpu.memory_space<vmem>>, vector<32x32xf32>
    %137 = vector.extract_strided_slice %135 {offsets = [0, 0], sizes = [80, 8], strides = [1, 1]} : vector<80x32xf32> to vector<80x8xf32>
    %138 = vector.extract_strided_slice %136 {offsets = [0, 0], sizes = [8, 32], strides = [1, 1]} : vector<32x32xf32> to vector<8x32xf32>
    %cst_73 = arith.constant dense<0.000000e+00> : vector<80x32xf32>
    %139 = tpu.matmul %137, %138, %cst_73 {dimension_numbers = #tpu.dot_dimension_numbers<[1], [0], [0], [1], [0, 0, 1, 1], [], []>} : vector<80x8xf32>, vector<8x32xf32>, vector<80x32xf32> -> vector<80x32xf32>
    %c0_74 = arith.constant 0 : index
    %c0_75 = arith.constant 0 : index
    %140 = vector.load %arg30[%c0_74, %c0_75] : memref<320x32xf32, #tpu.memory_space<vmem>>, vector<80x32xf32>
    tpu.vector_store %arg30[%c0_74, %c0_75], %139 {strides = array<i32>} : memref<320x32xf32, #tpu.memory_space<vmem>>, vector<80x32xf32>,
    %141 = vector.extract_strided_slice %135 {offsets = [0, 8], sizes = [80, 8], strides = [1, 1]} : vector<80x32xf32> to vector<80x8xf32>
    %142 = vector.extract_strided_slice %136 {offsets = [8, 0], sizes = [8, 32], strides = [1, 1]} : vector<32x32xf32> to vector<8x32xf32>
    %cst_76 = arith.constant dense<0.000000e+00> : vector<80x32xf32>
    %143 = tpu.matmul %141, %142, %cst_76 {dimension_numbers = #tpu.dot_dimension_numbers<[1], [0], [0], [1], [0, 0, 1, 1], [], []>} : vector<80x8xf32>, vector<8x32xf32>, vector<80x32xf32> -> vector<80x32xf32>
    %c80 = arith.constant 80 : index
    %c0_77 = arith.constant 0 : index
    %144 = vector.load %arg30[%c80, %c0_77] : memref<320x32xf32, #tpu.memory_space<vmem>>, vector<80x32xf32>
    tpu.vector_store %arg30[%c80, %c0_77], %143 {strides = array<i32>} : memref<320x32xf32, #tpu.memory_space<vmem>>, vector<80x32xf32>,
    %145 = vector.extract_strided_slice %135 {offsets = [0, 16], sizes = [80, 8], strides = [1, 1]} : vector<80x32xf32> to vector<80x8xf32>
    %146 = vector.extract_strided_slice %136 {offsets = [16, 0], sizes = [8, 32], strides = [1, 1]} : vector<32x32xf32> to vector<8x32xf32>
    %cst_78 = arith.constant dense<0.000000e+00> : vector<80x32xf32>
    %147 = tpu.matmul %145, %146, %cst_78 {dimension_numbers = #tpu.dot_dimension_numbers<[1], [0], [0], [1], [0, 0, 1, 1], [], []>} : vector<80x8xf32>, vector<8x32xf32>, vector<80x32xf32> -> vector<80x32xf32>
    %c160 = arith.constant 160 : index
    %c0_79 = arith.constant 0 : index
    %148 = vector.load %arg30[%c160, %c0_79] : memref<320x32xf32, #tpu.memory_space<vmem>>, vector<80x32xf32>
    tpu.vector_store %arg30[%c160, %c0_79], %147 {strides = array<i32>} : memref<320x32xf32, #tpu.memory_space<vmem>>, vector<80x32xf32>,
    %149 = vector.extract_strided_slice %135 {offsets = [0, 24], sizes = [80, 8], strides = [1, 1]} : vector<80x32xf32> to vector<80x8xf32>
    %150 = vector.extract_strided_slice %136 {offsets = [24, 0], sizes = [8, 32], strides = [1, 1]} : vector<32x32xf32> to vector<8x32xf32>
    %cst_80 = arith.constant dense<0.000000e+00> : vector<80x32xf32>
    %151 = tpu.matmul %149, %150, %cst_80 {dimension_numbers = #tpu.dot_dimension_numbers<[1], [0], [0], [1], [0, 0, 1, 1], [], []>} : vector<80x8xf32>, vector<8x32xf32>, vector<80x32xf32> -> vector<80x32xf32>
    %c240 = arith.constant 240 : index
    %c0_81 = arith.constant 0 : index
    %152 = vector.load %arg30[%c240, %c0_81] : memref<320x32xf32, #tpu.memory_space<vmem>>, vector<80x32xf32>
    tpu.vector_store %arg30[%c240, %c0_81], %151 {strides = array<i32>} : memref<320x32xf32, #tpu.memory_space<vmem>>, vector<80x32xf32>,
    %153 = tpu.iota {dimensions = array<i32: 1>} : vector<8x64xi32>
    %154 = vector.extract_strided_slice %5 {offsets = [0, 0], sizes = [8, 1], strides = [1, 1]} : vector<8x4xf32> to vector<8x1xf32>
    %cst_82 = arith.constant 8.000000e+00 : f32
    %155 = vector.broadcast %cst_82 : f32 to vector<8x1xf32>
    %156 = arith.mulf %154, %155 : vector<8x1xf32>
    %157 = vector.extract_strided_slice %120 {offsets = [0, 0], sizes = [8, 8], strides = [1, 1]} : vector<8x32xf32> to vector<8x8xf32>
    %158 = vector.broadcast %156 : vector<8x1xf32> to vector<8x8xf32>
    %159 = arith.addf %158, %157 : vector<8x8xf32>
    %cst_83 = arith.constant 5.000000e-01 : f32
    %160 = vector.broadcast %cst_83 : f32 to vector<8x8xf32>
    %161 = arith.subf %159, %160 : vector<8x8xf32>
    %162 = vector.extract_strided_slice %5 {offsets = [0, 1], sizes = [8, 1], strides = [1, 1]} : vector<8x4xf32> to vector<8x1xf32>
    %cst_84 = arith.constant 8.000000e+00 : f32
    %163 = vector.broadcast %cst_84 : f32 to vector<8x1xf32>
    %164 = arith.mulf %162, %163 : vector<8x1xf32>
    %165 = vector.extract_strided_slice %120 {offsets = [0, 16], sizes = [8, 8], strides = [1, 1]} : vector<8x32xf32> to vector<8x8xf32>
    %166 = vector.broadcast %164 : vector<8x1xf32> to vector<8x8xf32>
    %167 = arith.addf %166, %165 : vector<8x8xf32>
    %cst_85 = arith.constant 5.000000e-01 : f32
    %168 = vector.broadcast %cst_85 : f32 to vector<8x8xf32>
    %169 = arith.subf %167, %168 : vector<8x8xf32>
    %170 = vector.extract_strided_slice %130 {offsets = [0, 0], sizes = [8, 8], strides = [1, 1]} : vector<8x16xf32> to vector<8x8xf32>
    %171 = math.floor %161 : vector<8x8xf32>
    %172 = math.floor %169 : vector<8x8xf32>
    %cst_86 = arith.constant 0.000000e+00 : f32
    %173 = vector.broadcast %cst_86 : f32 to vector<8x8xf32>
    %174 = arith.addf %171, %173 : vector<8x8xf32>
    %cst_87 = arith.constant 0.000000e+00 : f32
    %175 = vector.broadcast %cst_87 : f32 to vector<8x8xf32>
    %176 = arith.addf %172, %175 : vector<8x8xf32>
    %177 = arith.subf %161, %174 : vector<8x8xf32>
    %178 = math.absf %177 : vector<8x8xf32>
    %cst_88 = arith.constant 1.000000e+00 : f32
    %179 = vector.broadcast %cst_88 : f32 to vector<8x8xf32>
    %180 = arith.subf %179, %178 : vector<8x8xf32>
    %181 = arith.subf %169, %176 : vector<8x8xf32>
    %182 = math.absf %181 : vector<8x8xf32>
    %cst_89 = arith.constant 1.000000e+00 : f32
    %183 = vector.broadcast %cst_89 : f32 to vector<8x8xf32>
    %184 = arith.subf %183, %182 : vector<8x8xf32>
    %185 = arith.mulf %180, %184 : vector<8x8xf32>
    %cst_90 = arith.constant 0.000000e+00 : f32
    %186 = vector.broadcast %cst_90 : f32 to vector<8x8xf32>
    %187 = arith.cmpf oge, %174, %186 : vector<8x8xf32>
    %cst_91 = arith.constant 7.000000e+00 : f32
    %188 = vector.broadcast %cst_91 : f32 to vector<8x8xf32>
    %189 = arith.cmpf ole, %174, %188 : vector<8x8xf32>
    %190 = arith.andi %187, %189 : vector<8x8xi1>
    %cst_92 = arith.constant 0.000000e+00 : f32
    %191 = vector.broadcast %cst_92 : f32 to vector<8x8xf32>
    %192 = arith.cmpf oge, %176, %191 : vector<8x8xf32>
    %193 = arith.andi %190, %192 : vector<8x8xi1>
    %cst_93 = arith.constant 7.000000e+00 : f32
    %194 = vector.broadcast %cst_93 : f32 to vector<8x8xf32>
    %195 = arith.cmpf ole, %176, %194 : vector<8x8xf32>
    %196 = arith.andi %193, %195 : vector<8x8xi1>
    %cst_94 = arith.constant 0.000000e+00 : f32
    %cst_95 = arith.constant 7.000000e+00 : f32
    %197 = vector.broadcast %cst_94 : f32 to vector<8x8xf32>
    %198 = arith.maximumf %197, %176 : vector<8x8xf32>
    %199 = vector.broadcast %cst_95 : f32 to vector<8x8xf32>
    %200 = arith.minimumf %199, %198 : vector<8x8xf32>
    %cst_96 = arith.constant 8.000000e+00 : f32
    %201 = vector.broadcast %cst_96 : f32 to vector<8x8xf32>
    %202 = arith.mulf %200, %201 : vector<8x8xf32>
    %cst_97 = arith.constant 0.000000e+00 : f32
    %cst_98 = arith.constant 7.000000e+00 : f32
    %203 = vector.broadcast %cst_97 : f32 to vector<8x8xf32>
    %204 = arith.maximumf %203, %174 : vector<8x8xf32>
    %205 = vector.broadcast %cst_98 : f32 to vector<8x8xf32>
    %206 = arith.minimumf %205, %204 : vector<8x8xf32>
    %207 = arith.addf %202, %206 : vector<8x8xf32>
    %208 = arith.fptosi %207 : vector<8x8xf32> to vector<8x8xi32>
    %209 = arith.mulf %185, %170 : vector<8x8xf32>
    %cst_99 = arith.constant 0.000000e+00 : f32
    %210 = vector.broadcast %cst_99 : f32 to vector<8x8xf32>
    %211 = arith.select %196, %209, %210 : vector<8x8xi1>, vector<8x8xf32>
    %cst_100 = arith.constant 1.000000e+00 : f32
    %212 = vector.broadcast %cst_100 : f32 to vector<8x8xf32>
    %213 = arith.addf %171, %212 : vector<8x8xf32>
    %cst_101 = arith.constant 0.000000e+00 : f32
    %214 = vector.broadcast %cst_101 : f32 to vector<8x8xf32>
    %215 = arith.addf %172, %214 : vector<8x8xf32>
    %216 = arith.subf %161, %213 : vector<8x8xf32>
    %217 = math.absf %216 : vector<8x8xf32>
    %cst_102 = arith.constant 1.000000e+00 : f32
    %218 = vector.broadcast %cst_102 : f32 to vector<8x8xf32>
    %219 = arith.subf %218, %217 : vector<8x8xf32>
    %220 = arith.subf %169, %215 : vector<8x8xf32>
    %221 = math.absf %220 : vector<8x8xf32>
    %cst_103 = arith.constant 1.000000e+00 : f32
    %222 = vector.broadcast %cst_103 : f32 to vector<8x8xf32>
    %223 = arith.subf %222, %221 : vector<8x8xf32>
    %224 = arith.mulf %219, %223 : vector<8x8xf32>
    %cst_104 = arith.constant 0.000000e+00 : f32
    %225 = vector.broadcast %cst_104 : f32 to vector<8x8xf32>
    %226 = arith.cmpf oge, %213, %225 : vector<8x8xf32>
    %cst_105 = arith.constant 7.000000e+00 : f32
    %227 = vector.broadcast %cst_105 : f32 to vector<8x8xf32>
    %228 = arith.cmpf ole, %213, %227 : vector<8x8xf32>
    %229 = arith.andi %226, %228 : vector<8x8xi1>
    %cst_106 = arith.constant 0.000000e+00 : f32
    %230 = vector.broadcast %cst_106 : f32 to vector<8x8xf32>
    %231 = arith.cmpf oge, %215, %230 : vector<8x8xf32>
    %232 = arith.andi %229, %231 : vector<8x8xi1>
    %cst_107 = arith.constant 7.000000e+00 : f32
    %233 = vector.broadcast %cst_107 : f32 to vector<8x8xf32>
    %234 = arith.cmpf ole, %215, %233 : vector<8x8xf32>
    %235 = arith.andi %232, %234 : vector<8x8xi1>
    %cst_108 = arith.constant 0.000000e+00 : f32
    %cst_109 = arith.constant 7.000000e+00 : f32
    %236 = vector.broadcast %cst_108 : f32 to vector<8x8xf32>
    %237 = arith.maximumf %236, %215 : vector<8x8xf32>
    %238 = vector.broadcast %cst_109 : f32 to vector<8x8xf32>
    %239 = arith.minimumf %238, %237 : vector<8x8xf32>
    %cst_110 = arith.constant 8.000000e+00 : f32
    %240 = vector.broadcast %cst_110 : f32 to vector<8x8xf32>
    %241 = arith.mulf %239, %240 : vector<8x8xf32>
    %cst_111 = arith.constant 0.000000e+00 : f32
    %cst_112 = arith.constant 7.000000e+00 : f32
    %242 = vector.broadcast %cst_111 : f32 to vector<8x8xf32>
    %243 = arith.maximumf %242, %213 : vector<8x8xf32>
    %244 = vector.broadcast %cst_112 : f32 to vector<8x8xf32>
    %245 = arith.minimumf %244, %243 : vector<8x8xf32>
    %246 = arith.addf %241, %245 : vector<8x8xf32>
    %247 = arith.fptosi %246 : vector<8x8xf32> to vector<8x8xi32>
    %248 = arith.mulf %224, %170 : vector<8x8xf32>
    %cst_113 = arith.constant 0.000000e+00 : f32
    %249 = vector.broadcast %cst_113 : f32 to vector<8x8xf32>
    %250 = arith.select %235, %248, %249 : vector<8x8xi1>, vector<8x8xf32>
    %cst_114 = arith.constant 0.000000e+00 : f32
    %251 = vector.broadcast %cst_114 : f32 to vector<8x8xf32>
    %252 = arith.addf %171, %251 : vector<8x8xf32>
    %cst_115 = arith.constant 1.000000e+00 : f32
    %253 = vector.broadcast %cst_115 : f32 to vector<8x8xf32>
    %254 = arith.addf %172, %253 : vector<8x8xf32>
    %255 = arith.subf %161, %252 : vector<8x8xf32>
    %256 = math.absf %255 : vector<8x8xf32>
    %cst_116 = arith.constant 1.000000e+00 : f32
    %257 = vector.broadcast %cst_116 : f32 to vector<8x8xf32>
    %258 = arith.subf %257, %256 : vector<8x8xf32>
    %259 = arith.subf %169, %254 : vector<8x8xf32>
    %260 = math.absf %259 : vector<8x8xf32>
    %cst_117 = arith.constant 1.000000e+00 : f32
    %261 = vector.broadcast %cst_117 : f32 to vector<8x8xf32>
    %262 = arith.subf %261, %260 : vector<8x8xf32>
    %263 = arith.mulf %258, %262 : vector<8x8xf32>
    %cst_118 = arith.constant 0.000000e+00 : f32
    %264 = vector.broadcast %cst_118 : f32 to vector<8x8xf32>
    %265 = arith.cmpf oge, %252, %264 : vector<8x8xf32>
    %cst_119 = arith.constant 7.000000e+00 : f32
    %266 = vector.broadcast %cst_119 : f32 to vector<8x8xf32>
    %267 = arith.cmpf ole, %252, %266 : vector<8x8xf32>
    %268 = arith.andi %265, %267 : vector<8x8xi1>
    %cst_120 = arith.constant 0.000000e+00 : f32
    %269 = vector.broadcast %cst_120 : f32 to vector<8x8xf32>
    %270 = arith.cmpf oge, %254, %269 : vector<8x8xf32>
    %271 = arith.andi %268, %270 : vector<8x8xi1>
    %cst_121 = arith.constant 7.000000e+00 : f32
    %272 = vector.broadcast %cst_121 : f32 to vector<8x8xf32>
    %273 = arith.cmpf ole, %254, %272 : vector<8x8xf32>
    %274 = arith.andi %271, %273 : vector<8x8xi1>
    %cst_122 = arith.constant 0.000000e+00 : f32
    %cst_123 = arith.constant 7.000000e+00 : f32
    %275 = vector.broadcast %cst_122 : f32 to vector<8x8xf32>
    %276 = arith.maximumf %275, %254 : vector<8x8xf32>
    %277 = vector.broadcast %cst_123 : f32 to vector<8x8xf32>
    %278 = arith.minimumf %277, %276 : vector<8x8xf32>
    %cst_124 = arith.constant 8.000000e+00 : f32
    %279 = vector.broadcast %cst_124 : f32 to vector<8x8xf32>
    %280 = arith.mulf %278, %279 : vector<8x8xf32>
    %cst_125 = arith.constant 0.000000e+00 : f32
    %cst_126 = arith.constant 7.000000e+00 : f32
    %281 = vector.broadcast %cst_125 : f32 to vector<8x8xf32>
    %282 = arith.maximumf %281, %252 : vector<8x8xf32>
    %283 = vector.broadcast %cst_126 : f32 to vector<8x8xf32>
    %284 = arith.minimumf %283, %282 : vector<8x8xf32>
    %285 = arith.addf %280, %284 : vector<8x8xf32>
    %286 = arith.fptosi %285 : vector<8x8xf32> to vector<8x8xi32>
    %287 = arith.mulf %263, %170 : vector<8x8xf32>
    %cst_127 = arith.constant 0.000000e+00 : f32
    %288 = vector.broadcast %cst_127 : f32 to vector<8x8xf32>
    %289 = arith.select %274, %287, %288 : vector<8x8xi1>, vector<8x8xf32>
    %cst_128 = arith.constant 1.000000e+00 : f32
    %290 = vector.broadcast %cst_128 : f32 to vector<8x8xf32>
    %291 = arith.addf %171, %290 : vector<8x8xf32>
    %cst_129 = arith.constant 1.000000e+00 : f32
    %292 = vector.broadcast %cst_129 : f32 to vector<8x8xf32>
    %293 = arith.addf %172, %292 : vector<8x8xf32>
    %294 = arith.subf %161, %291 : vector<8x8xf32>
    %295 = math.absf %294 : vector<8x8xf32>
    %cst_130 = arith.constant 1.000000e+00 : f32
    %296 = vector.broadcast %cst_130 : f32 to vector<8x8xf32>
    %297 = arith.subf %296, %295 : vector<8x8xf32>
    %298 = arith.subf %169, %293 : vector<8x8xf32>
    %299 = math.absf %298 : vector<8x8xf32>
    %cst_131 = arith.constant 1.000000e+00 : f32
    %300 = vector.broadcast %cst_131 : f32 to vector<8x8xf32>
    %301 = arith.subf %300, %299 : vector<8x8xf32>
    %302 = arith.mulf %297, %301 : vector<8x8xf32>
    %cst_132 = arith.constant 0.000000e+00 : f32
    %303 = vector.broadcast %cst_132 : f32 to vector<8x8xf32>
    %304 = arith.cmpf oge, %291, %303 : vector<8x8xf32>
    %cst_133 = arith.constant 7.000000e+00 : f32
    %305 = vector.broadcast %cst_133 : f32 to vector<8x8xf32>
    %306 = arith.cmpf ole, %291, %305 : vector<8x8xf32>
    %307 = arith.andi %304, %306 : vector<8x8xi1>
    %cst_134 = arith.constant 0.000000e+00 : f32
    %308 = vector.broadcast %cst_134 : f32 to vector<8x8xf32>
    %309 = arith.cmpf oge, %293, %308 : vector<8x8xf32>
    %310 = arith.andi %307, %309 : vector<8x8xi1>
    %cst_135 = arith.constant 7.000000e+00 : f32
    %311 = vector.broadcast %cst_135 : f32 to vector<8x8xf32>
    %312 = arith.cmpf ole, %293, %311 : vector<8x8xf32>
    %313 = arith.andi %310, %312 : vector<8x8xi1>
    %cst_136 = arith.constant 0.000000e+00 : f32
    %cst_137 = arith.constant 7.000000e+00 : f32
    %314 = vector.broadcast %cst_136 : f32 to vector<8x8xf32>
    %315 = arith.maximumf %314, %293 : vector<8x8xf32>
    %316 = vector.broadcast %cst_137 : f32 to vector<8x8xf32>
    %317 = arith.minimumf %316, %315 : vector<8x8xf32>
    %cst_138 = arith.constant 8.000000e+00 : f32
    %318 = vector.broadcast %cst_138 : f32 to vector<8x8xf32>
    %319 = arith.mulf %317, %318 : vector<8x8xf32>
    %cst_139 = arith.constant 0.000000e+00 : f32
    %cst_140 = arith.constant 7.000000e+00 : f32
    %320 = vector.broadcast %cst_139 : f32 to vector<8x8xf32>
    %321 = arith.maximumf %320, %291 : vector<8x8xf32>
    %322 = vector.broadcast %cst_140 : f32 to vector<8x8xf32>
    %323 = arith.minimumf %322, %321 : vector<8x8xf32>
    %324 = arith.addf %319, %323 : vector<8x8xf32>
    %325 = arith.fptosi %324 : vector<8x8xf32> to vector<8x8xi32>
    %326 = arith.mulf %302, %170 : vector<8x8xf32>
    %cst_141 = arith.constant 0.000000e+00 : f32
    %327 = vector.broadcast %cst_141 : f32 to vector<8x8xf32>
    %328 = arith.select %313, %326, %327 : vector<8x8xi1>, vector<8x8xf32>
    %cst_142 = arith.constant 0.000000e+00 : f32
    %329 = vector.broadcast %cst_142 : f32 to vector<8x64xf32>
    %330 = vector.extract_strided_slice %208 {offsets = [0, 0], sizes = [8, 1], strides = [1, 1]} : vector<8x8xi32> to vector<8x1xi32>
    %331 = vector.broadcast %330 : vector<8x1xi32> to vector<8x64xi32>
    %332 = arith.cmpi eq, %153, %331 : vector<8x64xi32>
    %333 = arith.extui %332 : vector<8x64xi1> to vector<8x64xi32>
    %334 = arith.sitofp %333 : vector<8x64xi32> to vector<8x64xf32>
    %335 = vector.extract_strided_slice %211 {offsets = [0, 0], sizes = [8, 1], strides = [1, 1]} : vector<8x8xf32> to vector<8x1xf32>
    %336 = vector.broadcast %335 : vector<8x1xf32> to vector<8x64xf32>
    %337 = arith.mulf %334, %336 : vector<8x64xf32>
    %338 = arith.addf %329, %337 : vector<8x64xf32>
    %339 = vector.extract_strided_slice %247 {offsets = [0, 0], sizes = [8, 1], strides = [1, 1]} : vector<8x8xi32> to vector<8x1xi32>
    %340 = vector.broadcast %339 : vector<8x1xi32> to vector<8x64xi32>
    %341 = arith.cmpi eq, %153, %340 : vector<8x64xi32>
    %342 = arith.extui %341 : vector<8x64xi1> to vector<8x64xi32>
    %343 = arith.sitofp %342 : vector<8x64xi32> to vector<8x64xf32>
    %344 = vector.extract_strided_slice %250 {offsets = [0, 0], sizes = [8, 1], strides = [1, 1]} : vector<8x8xf32> to vector<8x1xf32>
    %345 = vector.broadcast %344 : vector<8x1xf32> to vector<8x64xf32>
    %346 = arith.mulf %343, %345 : vector<8x64xf32>
    %347 = arith.addf %338, %346 : vector<8x64xf32>
    %348 = vector.extract_strided_slice %286 {offsets = [0, 0], sizes = [8, 1], strides = [1, 1]} : vector<8x8xi32> to vector<8x1xi32>
    %349 = vector.broadcast %348 : vector<8x1xi32> to vector<8x64xi32>
    %350 = arith.cmpi eq, %153, %349 : vector<8x64xi32>
    %351 = arith.extui %350 : vector<8x64xi1> to vector<8x64xi32>
    %352 = arith.sitofp %351 : vector<8x64xi32> to vector<8x64xf32>
    %353 = vector.extract_strided_slice %289 {offsets = [0, 0], sizes = [8, 1], strides = [1, 1]} : vector<8x8xf32> to vector<8x1xf32>
    %354 = vector.broadcast %353 : vector<8x1xf32> to vector<8x64xf32>
    %355 = arith.mulf %352, %354 : vector<8x64xf32>
    %356 = arith.addf %347, %355 : vector<8x64xf32>
    %357 = vector.extract_strided_slice %325 {offsets = [0, 0], sizes = [8, 1], strides = [1, 1]} : vector<8x8xi32> to vector<8x1xi32>
    %358 = vector.broadcast %357 : vector<8x1xi32> to vector<8x64xi32>
    %359 = arith.cmpi eq, %153, %358 : vector<8x64xi32>
    %360 = arith.extui %359 : vector<8x64xi1> to vector<8x64xi32>
    %361 = arith.sitofp %360 : vector<8x64xi32> to vector<8x64xf32>
    %362 = vector.extract_strided_slice %328 {offsets = [0, 0], sizes = [8, 1], strides = [1, 1]} : vector<8x8xf32> to vector<8x1xf32>
    %363 = vector.broadcast %362 : vector<8x1xf32> to vector<8x64xf32>
    %364 = arith.mulf %361, %363 : vector<8x64xf32>
    %365 = arith.addf %356, %364 : vector<8x64xf32>
    %366 = vector.extract_strided_slice %208 {offsets = [0, 1], sizes = [8, 1], strides = [1, 1]} : vector<8x8xi32> to vector<8x1xi32>
    %367 = vector.broadcast %366 : vector<8x1xi32> to vector<8x64xi32>
    %368 = arith.cmpi eq, %153, %367 : vector<8x64xi32>
    %369 = arith.extui %368 : vector<8x64xi1> to vector<8x64xi32>
    %370 = arith.sitofp %369 : vector<8x64xi32> to vector<8x64xf32>
    %371 = vector.extract_strided_slice %211 {offsets = [0, 1], sizes = [8, 1], strides = [1, 1]} : vector<8x8xf32> to vector<8x1xf32>
    %372 = vector.broadcast %371 : vector<8x1xf32> to vector<8x64xf32>
    %373 = arith.mulf %370, %372 : vector<8x64xf32>
    %374 = arith.addf %365, %373 : vector<8x64xf32>
    %375 = vector.extract_strided_slice %247 {offsets = [0, 1], sizes = [8, 1], strides = [1, 1]} : vector<8x8xi32> to vector<8x1xi32>
    %376 = vector.broadcast %375 : vector<8x1xi32> to vector<8x64xi32>
    %377 = arith.cmpi eq, %153, %376 : vector<8x64xi32>
    %378 = arith.extui %377 : vector<8x64xi1> to vector<8x64xi32>
    %379 = arith.sitofp %378 : vector<8x64xi32> to vector<8x64xf32>
    %380 = vector.extract_strided_slice %250 {offsets = [0, 1], sizes = [8, 1], strides = [1, 1]} : vector<8x8xf32> to vector<8x1xf32>
    %381 = vector.broadcast %380 : vector<8x1xf32> to vector<8x64xf32>
    %382 = arith.mulf %379, %381 : vector<8x64xf32>
    %383 = arith.addf %374, %382 : vector<8x64xf32>
    %384 = vector.extract_strided_slice %286 {offsets = [0, 1], sizes = [8, 1], strides = [1, 1]} : vector<8x8xi32> to vector<8x1xi32>
    %385 = vector.broadcast %384 : vector<8x1xi32> to vector<8x64xi32>
    %386 = arith.cmpi eq, %153, %385 : vector<8x64xi32>
    %387 = arith.extui %386 : vector<8x64xi1> to vector<8x64xi32>
    %388 = arith.sitofp %387 : vector<8x64xi32> to vector<8x64xf32>
    %389 = vector.extract_strided_slice %289 {offsets = [0, 1], sizes = [8, 1], strides = [1, 1]} : vector<8x8xf32> to vector<8x1xf32>
    %390 = vector.broadcast %389 : vector<8x1xf32> to vector<8x64xf32>
    %391 = arith.mulf %388, %390 : vector<8x64xf32>
    %392 = arith.addf %383, %391 : vector<8x64xf32>
    %393 = vector.extract_strided_slice %325 {offsets = [0, 1], sizes = [8, 1], strides = [1, 1]} : vector<8x8xi32> to vector<8x1xi32>
    %394 = vector.broadcast %393 : vector<8x1xi32> to vector<8x64xi32>
    %395 = arith.cmpi eq, %153, %394 : vector<8x64xi32>
    %396 = arith.extui %395 : vector<8x64xi1> to vector<8x64xi32>
    %397 = arith.sitofp %396 : vector<8x64xi32> to vector<8x64xf32>
    %398 = vector.extract_strided_slice %328 {offsets = [0, 1], sizes = [8, 1], strides = [1, 1]} : vector<8x8xf32> to vector<8x1xf32>
    %399 = vector.broadcast %398 : vector<8x1xf32> to vector<8x64xf32>
    %400 = arith.mulf %397, %399 : vector<8x64xf32>
    %401 = arith.addf %392, %400 : vector<8x64xf32>
    %c0_143 = arith.constant 0 : index
    %c0_144 = arith.constant 0 : index
    %402 = vector.load %arg31[%c0_143, %c0_144] : memref<8x320xf32, #tpu.memory_space<vmem>>, vector<8x64xf32>
    tpu.vector_store %arg31[%c0_143, %c0_144], %401 {strides = array<i32>} : memref<8x320xf32, #tpu.memory_space<vmem>>, vector<8x64xf32>,
    %cst_145 = arith.constant 0.000000e+00 : f32
    %403 = vector.broadcast %cst_145 : f32 to vector<8x64xf32>
    %404 = vector.extract_strided_slice %208 {offsets = [0, 2], sizes = [8, 1], strides = [1, 1]} : vector<8x8xi32> to vector<8x1xi32>
    %405 = vector.broadcast %404 : vector<8x1xi32> to vector<8x64xi32>
    %406 = arith.cmpi eq, %153, %405 : vector<8x64xi32>
    %407 = arith.extui %406 : vector<8x64xi1> to vector<8x64xi32>
    %408 = arith.sitofp %407 : vector<8x64xi32> to vector<8x64xf32>
    %409 = vector.extract_strided_slice %211 {offsets = [0, 2], sizes = [8, 1], strides = [1, 1]} : vector<8x8xf32> to vector<8x1xf32>
    %410 = vector.broadcast %409 : vector<8x1xf32> to vector<8x64xf32>
    %411 = arith.mulf %408, %410 : vector<8x64xf32>
    %412 = arith.addf %403, %411 : vector<8x64xf32>
    %413 = vector.extract_strided_slice %247 {offsets = [0, 2], sizes = [8, 1], strides = [1, 1]} : vector<8x8xi32> to vector<8x1xi32>
    %414 = vector.broadcast %413 : vector<8x1xi32> to vector<8x64xi32>
    %415 = arith.cmpi eq, %153, %414 : vector<8x64xi32>
    %416 = arith.extui %415 : vector<8x64xi1> to vector<8x64xi32>
    %417 = arith.sitofp %416 : vector<8x64xi32> to vector<8x64xf32>
    %418 = vector.extract_strided_slice %250 {offsets = [0, 2], sizes = [8, 1], strides = [1, 1]} : vector<8x8xf32> to vector<8x1xf32>
    %419 = vector.broadcast %418 : vector<8x1xf32> to vector<8x64xf32>
    %420 = arith.mulf %417, %419 : vector<8x64xf32>
    %421 = arith.addf %412, %420 : vector<8x64xf32>
    %422 = vector.extract_strided_slice %286 {offsets = [0, 2], sizes = [8, 1], strides = [1, 1]} : vector<8x8xi32> to vector<8x1xi32>
    %423 = vector.broadcast %422 : vector<8x1xi32> to vector<8x64xi32>
    %424 = arith.cmpi eq, %153, %423 : vector<8x64xi32>
    %425 = arith.extui %424 : vector<8x64xi1> to vector<8x64xi32>
    %426 = arith.sitofp %425 : vector<8x64xi32> to vector<8x64xf32>
    %427 = vector.extract_strided_slice %289 {offsets = [0, 2], sizes = [8, 1], strides = [1, 1]} : vector<8x8xf32> to vector<8x1xf32>
    %428 = vector.broadcast %427 : vector<8x1xf32> to vector<8x64xf32>
    %429 = arith.mulf %426, %428 : vector<8x64xf32>
    %430 = arith.addf %421, %429 : vector<8x64xf32>
    %431 = vector.extract_strided_slice %325 {offsets = [0, 2], sizes = [8, 1], strides = [1, 1]} : vector<8x8xi32> to vector<8x1xi32>
    %432 = vector.broadcast %431 : vector<8x1xi32> to vector<8x64xi32>
    %433 = arith.cmpi eq, %153, %432 : vector<8x64xi32>
    %434 = arith.extui %433 : vector<8x64xi1> to vector<8x64xi32>
    %435 = arith.sitofp %434 : vector<8x64xi32> to vector<8x64xf32>
    %436 = vector.extract_strided_slice %328 {offsets = [0, 2], sizes = [8, 1], strides = [1, 1]} : vector<8x8xf32> to vector<8x1xf32>
    %437 = vector.broadcast %436 : vector<8x1xf32> to vector<8x64xf32>
    %438 = arith.mulf %435, %437 : vector<8x64xf32>
    %439 = arith.addf %430, %438 : vector<8x64xf32>
    %440 = vector.extract_strided_slice %208 {offsets = [0, 3], sizes = [8, 1], strides = [1, 1]} : vector<8x8xi32> to vector<8x1xi32>
    %441 = vector.broadcast %440 : vector<8x1xi32> to vector<8x64xi32>
    %442 = arith.cmpi eq, %153, %441 : vector<8x64xi32>
    %443 = arith.extui %442 : vector<8x64xi1> to vector<8x64xi32>
    %444 = arith.sitofp %443 : vector<8x64xi32> to vector<8x64xf32>
    %445 = vector.extract_strided_slice %211 {offsets = [0, 3], sizes = [8, 1], strides = [1, 1]} : vector<8x8xf32> to vector<8x1xf32>
    %446 = vector.broadcast %445 : vector<8x1xf32> to vector<8x64xf32>
    %447 = arith.mulf %444, %446 : vector<8x64xf32>
    %448 = arith.addf %439, %447 : vector<8x64xf32>
    %449 = vector.extract_strided_slice %247 {offsets = [0, 3], sizes = [8, 1], strides = [1, 1]} : vector<8x8xi32> to vector<8x1xi32>
    %450 = vector.broadcast %449 : vector<8x1xi32> to vector<8x64xi32>
    %451 = arith.cmpi eq, %153, %450 : vector<8x64xi32>
    %452 = arith.extui %451 : vector<8x64xi1> to vector<8x64xi32>
    %453 = arith.sitofp %452 : vector<8x64xi32> to vector<8x64xf32>
    %454 = vector.extract_strided_slice %250 {offsets = [0, 3], sizes = [8, 1], strides = [1, 1]} : vector<8x8xf32> to vector<8x1xf32>
    %455 = vector.broadcast %454 : vector<8x1xf32> to vector<8x64xf32>
    %456 = arith.mulf %453, %455 : vector<8x64xf32>
    %457 = arith.addf %448, %456 : vector<8x64xf32>
    %458 = vector.extract_strided_slice %286 {offsets = [0, 3], sizes = [8, 1], strides = [1, 1]} : vector<8x8xi32> to vector<8x1xi32>
    %459 = vector.broadcast %458 : vector<8x1xi32> to vector<8x64xi32>
    %460 = arith.cmpi eq, %153, %459 : vector<8x64xi32>
    %461 = arith.extui %460 : vector<8x64xi1> to vector<8x64xi32>
    %462 = arith.sitofp %461 : vector<8x64xi32> to vector<8x64xf32>
    %463 = vector.extract_strided_slice %289 {offsets = [0, 3], sizes = [8, 1], strides = [1, 1]} : vector<8x8xf32> to vector<8x1xf32>
    %464 = vector.broadcast %463 : vector<8x1xf32> to vector<8x64xf32>
    %465 = arith.mulf %462, %464 : vector<8x64xf32>
    %466 = arith.addf %457, %465 : vector<8x64xf32>
    %467 = vector.extract_strided_slice %325 {offsets = [0, 3], sizes = [8, 1], strides = [1, 1]} : vector<8x8xi32> to vector<8x1xi32>
    %468 = vector.broadcast %467 : vector<8x1xi32> to vector<8x64xi32>
    %469 = arith.cmpi eq, %153, %468 : vector<8x64xi32>
    %470 = arith.extui %469 : vector<8x64xi1> to vector<8x64xi32>
    %471 = arith.sitofp %470 : vector<8x64xi32> to vector<8x64xf32>
    %472 = vector.extract_strided_slice %328 {offsets = [0, 3], sizes = [8, 1], strides = [1, 1]} : vector<8x8xf32> to vector<8x1xf32>
    %473 = vector.broadcast %472 : vector<8x1xf32> to vector<8x64xf32>
    %474 = arith.mulf %471, %473 : vector<8x64xf32>
    %475 = arith.addf %466, %474 : vector<8x64xf32>
    %c0_146 = arith.constant 0 : index
    %c80_147 = arith.constant 80 : index
    %476 = vector.load %arg31[%c0_146, %c80_147] : memref<8x320xf32, #tpu.memory_space<vmem>>, vector<8x64xf32>
    tpu.vector_store %arg31[%c0_146, %c80_147], %475 {strides = array<i32>} : memref<8x320xf32, #tpu.memory_space<vmem>>, vector<8x64xf32>,
    %cst_148 = arith.constant 0.000000e+00 : f32
    %477 = vector.broadcast %cst_148 : f32 to vector<8x64xf32>
    %478 = vector.extract_strided_slice %208 {offsets = [0, 4], sizes = [8, 1], strides = [1, 1]} : vector<8x8xi32> to vector<8x1xi32>
    %479 = vector.broadcast %478 : vector<8x1xi32> to vector<8x64xi32>
    %480 = arith.cmpi eq, %153, %479 : vector<8x64xi32>
    %481 = arith.extui %480 : vector<8x64xi1> to vector<8x64xi32>
    %482 = arith.sitofp %481 : vector<8x64xi32> to vector<8x64xf32>
    %483 = vector.extract_strided_slice %211 {offsets = [0, 4], sizes = [8, 1], strides = [1, 1]} : vector<8x8xf32> to vector<8x1xf32>
    %484 = vector.broadcast %483 : vector<8x1xf32> to vector<8x64xf32>
    %485 = arith.mulf %482, %484 : vector<8x64xf32>
    %486 = arith.addf %477, %485 : vector<8x64xf32>
    %487 = vector.extract_strided_slice %247 {offsets = [0, 4], sizes = [8, 1], strides = [1, 1]} : vector<8x8xi32> to vector<8x1xi32>
    %488 = vector.broadcast %487 : vector<8x1xi32> to vector<8x64xi32>
    %489 = arith.cmpi eq, %153, %488 : vector<8x64xi32>
    %490 = arith.extui %489 : vector<8x64xi1> to vector<8x64xi32>
    %491 = arith.sitofp %490 : vector<8x64xi32> to vector<8x64xf32>
    %492 = vector.extract_strided_slice %250 {offsets = [0, 4], sizes = [8, 1], strides = [1, 1]} : vector<8x8xf32> to vector<8x1xf32>
    %493 = vector.broadcast %492 : vector<8x1xf32> to vector<8x64xf32>
    %494 = arith.mulf %491, %493 : vector<8x64xf32>
    %495 = arith.addf %486, %494 : vector<8x64xf32>
    %496 = vector.extract_strided_slice %286 {offsets = [0, 4], sizes = [8, 1], strides = [1, 1]} : vector<8x8xi32> to vector<8x1xi32>
    %497 = vector.broadcast %496 : vector<8x1xi32> to vector<8x64xi32>
    %498 = arith.cmpi eq, %153, %497 : vector<8x64xi32>
    %499 = arith.extui %498 : vector<8x64xi1> to vector<8x64xi32>
    %500 = arith.sitofp %499 : vector<8x64xi32> to vector<8x64xf32>
    %501 = vector.extract_strided_slice %289 {offsets = [0, 4], sizes = [8, 1], strides = [1, 1]} : vector<8x8xf32> to vector<8x1xf32>
    %502 = vector.broadcast %501 : vector<8x1xf32> to vector<8x64xf32>
    %503 = arith.mulf %500, %502 : vector<8x64xf32>
    %504 = arith.addf %495, %503 : vector<8x64xf32>
    %505 = vector.extract_strided_slice %325 {offsets = [0, 4], sizes = [8, 1], strides = [1, 1]} : vector<8x8xi32> to vector<8x1xi32>
    %506 = vector.broadcast %505 : vector<8x1xi32> to vector<8x64xi32>
    %507 = arith.cmpi eq, %153, %506 : vector<8x64xi32>
    %508 = arith.extui %507 : vector<8x64xi1> to vector<8x64xi32>
    %509 = arith.sitofp %508 : vector<8x64xi32> to vector<8x64xf32>
    %510 = vector.extract_strided_slice %328 {offsets = [0, 4], sizes = [8, 1], strides = [1, 1]} : vector<8x8xf32> to vector<8x1xf32>
    %511 = vector.broadcast %510 : vector<8x1xf32> to vector<8x64xf32>
    %512 = arith.mulf %509, %511 : vector<8x64xf32>
    %513 = arith.addf %504, %512 : vector<8x64xf32>
    %514 = vector.extract_strided_slice %208 {offsets = [0, 5], sizes = [8, 1], strides = [1, 1]} : vector<8x8xi32> to vector<8x1xi32>
    %515 = vector.broadcast %514 : vector<8x1xi32> to vector<8x64xi32>
    %516 = arith.cmpi eq, %153, %515 : vector<8x64xi32>
    %517 = arith.extui %516 : vector<8x64xi1> to vector<8x64xi32>
    %518 = arith.sitofp %517 : vector<8x64xi32> to vector<8x64xf32>
    %519 = vector.extract_strided_slice %211 {offsets = [0, 5], sizes = [8, 1], strides = [1, 1]} : vector<8x8xf32> to vector<8x1xf32>
    %520 = vector.broadcast %519 : vector<8x1xf32> to vector<8x64xf32>
    %521 = arith.mulf %518, %520 : vector<8x64xf32>
    %522 = arith.addf %513, %521 : vector<8x64xf32>
    %523 = vector.extract_strided_slice %247 {offsets = [0, 5], sizes = [8, 1], strides = [1, 1]} : vector<8x8xi32> to vector<8x1xi32>
    %524 = vector.broadcast %523 : vector<8x1xi32> to vector<8x64xi32>
    %525 = arith.cmpi eq, %153, %524 : vector<8x64xi32>
    %526 = arith.extui %525 : vector<8x64xi1> to vector<8x64xi32>
    %527 = arith.sitofp %526 : vector<8x64xi32> to vector<8x64xf32>
    %528 = vector.extract_strided_slice %250 {offsets = [0, 5], sizes = [8, 1], strides = [1, 1]} : vector<8x8xf32> to vector<8x1xf32>
    %529 = vector.broadcast %528 : vector<8x1xf32> to vector<8x64xf32>
    %530 = arith.mulf %527, %529 : vector<8x64xf32>
    %531 = arith.addf %522, %530 : vector<8x64xf32>
    %532 = vector.extract_strided_slice %286 {offsets = [0, 5], sizes = [8, 1], strides = [1, 1]} : vector<8x8xi32> to vector<8x1xi32>
    %533 = vector.broadcast %532 : vector<8x1xi32> to vector<8x64xi32>
    %534 = arith.cmpi eq, %153, %533 : vector<8x64xi32>
    %535 = arith.extui %534 : vector<8x64xi1> to vector<8x64xi32>
    %536 = arith.sitofp %535 : vector<8x64xi32> to vector<8x64xf32>
    %537 = vector.extract_strided_slice %289 {offsets = [0, 5], sizes = [8, 1], strides = [1, 1]} : vector<8x8xf32> to vector<8x1xf32>
    %538 = vector.broadcast %537 : vector<8x1xf32> to vector<8x64xf32>
    %539 = arith.mulf %536, %538 : vector<8x64xf32>
    %540 = arith.addf %531, %539 : vector<8x64xf32>
    %541 = vector.extract_strided_slice %325 {offsets = [0, 5], sizes = [8, 1], strides = [1, 1]} : vector<8x8xi32> to vector<8x1xi32>
    %542 = vector.broadcast %541 : vector<8x1xi32> to vector<8x64xi32>
    %543 = arith.cmpi eq, %153, %542 : vector<8x64xi32>
    %544 = arith.extui %543 : vector<8x64xi1> to vector<8x64xi32>
    %545 = arith.sitofp %544 : vector<8x64xi32> to vector<8x64xf32>
    %546 = vector.extract_strided_slice %328 {offsets = [0, 5], sizes = [8, 1], strides = [1, 1]} : vector<8x8xf32> to vector<8x1xf32>
    %547 = vector.broadcast %546 : vector<8x1xf32> to vector<8x64xf32>
    %548 = arith.mulf %545, %547 : vector<8x64xf32>
    %549 = arith.addf %540, %548 : vector<8x64xf32>
    %c0_149 = arith.constant 0 : index
    %c160_150 = arith.constant 160 : index
    %550 = vector.load %arg31[%c0_149, %c160_150] : memref<8x320xf32, #tpu.memory_space<vmem>>, vector<8x64xf32>
    tpu.vector_store %arg31[%c0_149, %c160_150], %549 {strides = array<i32>} : memref<8x320xf32, #tpu.memory_space<vmem>>, vector<8x64xf32>,
    %cst_151 = arith.constant 0.000000e+00 : f32
    %551 = vector.broadcast %cst_151 : f32 to vector<8x64xf32>
    %552 = vector.extract_strided_slice %208 {offsets = [0, 6], sizes = [8, 1], strides = [1, 1]} : vector<8x8xi32> to vector<8x1xi32>
    %553 = vector.broadcast %552 : vector<8x1xi32> to vector<8x64xi32>
    %554 = arith.cmpi eq, %153, %553 : vector<8x64xi32>
    %555 = arith.extui %554 : vector<8x64xi1> to vector<8x64xi32>
    %556 = arith.sitofp %555 : vector<8x64xi32> to vector<8x64xf32>
    %557 = vector.extract_strided_slice %211 {offsets = [0, 6], sizes = [8, 1], strides = [1, 1]} : vector<8x8xf32> to vector<8x1xf32>
    %558 = vector.broadcast %557 : vector<8x1xf32> to vector<8x64xf32>
    %559 = arith.mulf %556, %558 : vector<8x64xf32>
    %560 = arith.addf %551, %559 : vector<8x64xf32>
    %561 = vector.extract_strided_slice %247 {offsets = [0, 6], sizes = [8, 1], strides = [1, 1]} : vector<8x8xi32> to vector<8x1xi32>
    %562 = vector.broadcast %561 : vector<8x1xi32> to vector<8x64xi32>
    %563 = arith.cmpi eq, %153, %562 : vector<8x64xi32>
    %564 = arith.extui %563 : vector<8x64xi1> to vector<8x64xi32>
    %565 = arith.sitofp %564 : vector<8x64xi32> to vector<8x64xf32>
    %566 = vector.extract_strided_slice %250 {offsets = [0, 6], sizes = [8, 1], strides = [1, 1]} : vector<8x8xf32> to vector<8x1xf32>
    %567 = vector.broadcast %566 : vector<8x1xf32> to vector<8x64xf32>
    %568 = arith.mulf %565, %567 : vector<8x64xf32>
    %569 = arith.addf %560, %568 : vector<8x64xf32>
    %570 = vector.extract_strided_slice %286 {offsets = [0, 6], sizes = [8, 1], strides = [1, 1]} : vector<8x8xi32> to vector<8x1xi32>
    %571 = vector.broadcast %570 : vector<8x1xi32> to vector<8x64xi32>
    %572 = arith.cmpi eq, %153, %571 : vector<8x64xi32>
    %573 = arith.extui %572 : vector<8x64xi1> to vector<8x64xi32>
    %574 = arith.sitofp %573 : vector<8x64xi32> to vector<8x64xf32>
    %575 = vector.extract_strided_slice %289 {offsets = [0, 6], sizes = [8, 1], strides = [1, 1]} : vector<8x8xf32> to vector<8x1xf32>
    %576 = vector.broadcast %575 : vector<8x1xf32> to vector<8x64xf32>
    %577 = arith.mulf %574, %576 : vector<8x64xf32>
    %578 = arith.addf %569, %577 : vector<8x64xf32>
    %579 = vector.extract_strided_slice %325 {offsets = [0, 6], sizes = [8, 1], strides = [1, 1]} : vector<8x8xi32> to vector<8x1xi32>
    %580 = vector.broadcast %579 : vector<8x1xi32> to vector<8x64xi32>
    %581 = arith.cmpi eq, %153, %580 : vector<8x64xi32>
    %582 = arith.extui %581 : vector<8x64xi1> to vector<8x64xi32>
    %583 = arith.sitofp %582 : vector<8x64xi32> to vector<8x64xf32>
    %584 = vector.extract_strided_slice %328 {offsets = [0, 6], sizes = [8, 1], strides = [1, 1]} : vector<8x8xf32> to vector<8x1xf32>
    %585 = vector.broadcast %584 : vector<8x1xf32> to vector<8x64xf32>
    %586 = arith.mulf %583, %585 : vector<8x64xf32>
    %587 = arith.addf %578, %586 : vector<8x64xf32>
    %588 = vector.extract_strided_slice %208 {offsets = [0, 7], sizes = [8, 1], strides = [1, 1]} : vector<8x8xi32> to vector<8x1xi32>
    %589 = vector.broadcast %588 : vector<8x1xi32> to vector<8x64xi32>
    %590 = arith.cmpi eq, %153, %589 : vector<8x64xi32>
    %591 = arith.extui %590 : vector<8x64xi1> to vector<8x64xi32>
    %592 = arith.sitofp %591 : vector<8x64xi32> to vector<8x64xf32>
    %593 = vector.extract_strided_slice %211 {offsets = [0, 7], sizes = [8, 1], strides = [1, 1]} : vector<8x8xf32> to vector<8x1xf32>
    %594 = vector.broadcast %593 : vector<8x1xf32> to vector<8x64xf32>
    %595 = arith.mulf %592, %594 : vector<8x64xf32>
    %596 = arith.addf %587, %595 : vector<8x64xf32>
    %597 = vector.extract_strided_slice %247 {offsets = [0, 7], sizes = [8, 1], strides = [1, 1]} : vector<8x8xi32> to vector<8x1xi32>
    %598 = vector.broadcast %597 : vector<8x1xi32> to vector<8x64xi32>
    %599 = arith.cmpi eq, %153, %598 : vector<8x64xi32>
    %600 = arith.extui %599 : vector<8x64xi1> to vector<8x64xi32>
    %601 = arith.sitofp %600 : vector<8x64xi32> to vector<8x64xf32>
    %602 = vector.extract_strided_slice %250 {offsets = [0, 7], sizes = [8, 1], strides = [1, 1]} : vector<8x8xf32> to vector<8x1xf32>
    %603 = vector.broadcast %602 : vector<8x1xf32> to vector<8x64xf32>
    %604 = arith.mulf %601, %603 : vector<8x64xf32>
    %605 = arith.addf %596, %604 : vector<8x64xf32>
    %606 = vector.extract_strided_slice %286 {offsets = [0, 7], sizes = [8, 1], strides = [1, 1]} : vector<8x8xi32> to vector<8x1xi32>
    %607 = vector.broadcast %606 : vector<8x1xi32> to vector<8x64xi32>
    %608 = arith.cmpi eq, %153, %607 : vector<8x64xi32>
    %609 = arith.extui %608 : vector<8x64xi1> to vector<8x64xi32>
    %610 = arith.sitofp %609 : vector<8x64xi32> to vector<8x64xf32>
    %611 = vector.extract_strided_slice %289 {offsets = [0, 7], sizes = [8, 1], strides = [1, 1]} : vector<8x8xf32> to vector<8x1xf32>
    %612 = vector.broadcast %611 : vector<8x1xf32> to vector<8x64xf32>
    %613 = arith.mulf %610, %612 : vector<8x64xf32>
    %614 = arith.addf %605, %613 : vector<8x64xf32>
    %615 = vector.extract_strided_slice %325 {offsets = [0, 7], sizes = [8, 1], strides = [1, 1]} : vector<8x8xi32> to vector<8x1xi32>
    %616 = vector.broadcast %615 : vector<8x1xi32> to vector<8x64xi32>
    %617 = arith.cmpi eq, %153, %616 : vector<8x64xi32>
    %618 = arith.extui %617 : vector<8x64xi1> to vector<8x64xi32>
    %619 = arith.sitofp %618 : vector<8x64xi32> to vector<8x64xf32>
    %620 = vector.extract_strided_slice %328 {offsets = [0, 7], sizes = [8, 1], strides = [1, 1]} : vector<8x8xf32> to vector<8x1xf32>
    %621 = vector.broadcast %620 : vector<8x1xf32> to vector<8x64xf32>
    %622 = arith.mulf %619, %621 : vector<8x64xf32>
    %623 = arith.addf %614, %622 : vector<8x64xf32>
    %c0_152 = arith.constant 0 : index
    %c240_153 = arith.constant 240 : index
    %624 = vector.load %arg31[%c0_152, %c240_153] : memref<8x320xf32, #tpu.memory_space<vmem>>, vector<8x64xf32>
    tpu.vector_store %arg31[%c0_152, %c240_153], %623 {strides = array<i32>} : memref<8x320xf32, #tpu.memory_space<vmem>>, vector<8x64xf32>,
    %625 = tpu.iota {dimensions = array<i32: 1>} : vector<8x16xi32>
    %626 = vector.extract_strided_slice %5 {offsets = [0, 2], sizes = [8, 1], strides = [1, 1]} : vector<8x4xf32> to vector<8x1xf32>
    %cst_154 = arith.constant 4.000000e+00 : f32
    %627 = vector.broadcast %cst_154 : f32 to vector<8x1xf32>
    %628 = arith.mulf %626, %627 : vector<8x1xf32>
    %629 = vector.extract_strided_slice %120 {offsets = [0, 8], sizes = [8, 8], strides = [1, 1]} : vector<8x32xf32> to vector<8x8xf32>
    %630 = vector.broadcast %628 : vector<8x1xf32> to vector<8x8xf32>
    %631 = arith.addf %630, %629 : vector<8x8xf32>
    %cst_155 = arith.constant 5.000000e-01 : f32
    %632 = vector.broadcast %cst_155 : f32 to vector<8x8xf32>
    %633 = arith.subf %631, %632 : vector<8x8xf32>
    %634 = vector.extract_strided_slice %5 {offsets = [0, 3], sizes = [8, 1], strides = [1, 1]} : vector<8x4xf32> to vector<8x1xf32>
    %cst_156 = arith.constant 4.000000e+00 : f32
    %635 = vector.broadcast %cst_156 : f32 to vector<8x1xf32>
    %636 = arith.mulf %634, %635 : vector<8x1xf32>
    %637 = vector.extract_strided_slice %120 {offsets = [0, 24], sizes = [8, 8], strides = [1, 1]} : vector<8x32xf32> to vector<8x8xf32>
    %638 = vector.broadcast %636 : vector<8x1xf32> to vector<8x8xf32>
    %639 = arith.addf %638, %637 : vector<8x8xf32>
    %cst_157 = arith.constant 5.000000e-01 : f32
    %640 = vector.broadcast %cst_157 : f32 to vector<8x8xf32>
    %641 = arith.subf %639, %640 : vector<8x8xf32>
    %642 = vector.extract_strided_slice %130 {offsets = [0, 8], sizes = [8, 8], strides = [1, 1]} : vector<8x16xf32> to vector<8x8xf32>
    %643 = math.floor %633 : vector<8x8xf32>
    %644 = math.floor %641 : vector<8x8xf32>
    %cst_158 = arith.constant 0.000000e+00 : f32
    %645 = vector.broadcast %cst_158 : f32 to vector<8x8xf32>
    %646 = arith.addf %643, %645 : vector<8x8xf32>
    %cst_159 = arith.constant 0.000000e+00 : f32
    %647 = vector.broadcast %cst_159 : f32 to vector<8x8xf32>
    %648 = arith.addf %644, %647 : vector<8x8xf32>
    %649 = arith.subf %633, %646 : vector<8x8xf32>
    %650 = math.absf %649 : vector<8x8xf32>
    %cst_160 = arith.constant 1.000000e+00 : f32
    %651 = vector.broadcast %cst_160 : f32 to vector<8x8xf32>
    %652 = arith.subf %651, %650 : vector<8x8xf32>
    %653 = arith.subf %641, %648 : vector<8x8xf32>
    %654 = math.absf %653 : vector<8x8xf32>
    %cst_161 = arith.constant 1.000000e+00 : f32
    %655 = vector.broadcast %cst_161 : f32 to vector<8x8xf32>
    %656 = arith.subf %655, %654 : vector<8x8xf32>
    %657 = arith.mulf %652, %656 : vector<8x8xf32>
    %cst_162 = arith.constant 0.000000e+00 : f32
    %658 = vector.broadcast %cst_162 : f32 to vector<8x8xf32>
    %659 = arith.cmpf oge, %646, %658 : vector<8x8xf32>
    %cst_163 = arith.constant 3.000000e+00 : f32
    %660 = vector.broadcast %cst_163 : f32 to vector<8x8xf32>
    %661 = arith.cmpf ole, %646, %660 : vector<8x8xf32>
    %662 = arith.andi %659, %661 : vector<8x8xi1>
    %cst_164 = arith.constant 0.000000e+00 : f32
    %663 = vector.broadcast %cst_164 : f32 to vector<8x8xf32>
    %664 = arith.cmpf oge, %648, %663 : vector<8x8xf32>
    %665 = arith.andi %662, %664 : vector<8x8xi1>
    %cst_165 = arith.constant 3.000000e+00 : f32
    %666 = vector.broadcast %cst_165 : f32 to vector<8x8xf32>
    %667 = arith.cmpf ole, %648, %666 : vector<8x8xf32>
    %668 = arith.andi %665, %667 : vector<8x8xi1>
    %cst_166 = arith.constant 0.000000e+00 : f32
    %cst_167 = arith.constant 3.000000e+00 : f32
    %669 = vector.broadcast %cst_166 : f32 to vector<8x8xf32>
    %670 = arith.maximumf %669, %648 : vector<8x8xf32>
    %671 = vector.broadcast %cst_167 : f32 to vector<8x8xf32>
    %672 = arith.minimumf %671, %670 : vector<8x8xf32>
    %cst_168 = arith.constant 4.000000e+00 : f32
    %673 = vector.broadcast %cst_168 : f32 to vector<8x8xf32>
    %674 = arith.mulf %672, %673 : vector<8x8xf32>
    %cst_169 = arith.constant 0.000000e+00 : f32
    %cst_170 = arith.constant 3.000000e+00 : f32
    %675 = vector.broadcast %cst_169 : f32 to vector<8x8xf32>
    %676 = arith.maximumf %675, %646 : vector<8x8xf32>
    %677 = vector.broadcast %cst_170 : f32 to vector<8x8xf32>
    %678 = arith.minimumf %677, %676 : vector<8x8xf32>
    %679 = arith.addf %674, %678 : vector<8x8xf32>
    %680 = arith.fptosi %679 : vector<8x8xf32> to vector<8x8xi32>
    %681 = arith.mulf %657, %642 : vector<8x8xf32>
    %cst_171 = arith.constant 0.000000e+00 : f32
    %682 = vector.broadcast %cst_171 : f32 to vector<8x8xf32>
    %683 = arith.select %668, %681, %682 : vector<8x8xi1>, vector<8x8xf32>
    %cst_172 = arith.constant 1.000000e+00 : f32
    %684 = vector.broadcast %cst_172 : f32 to vector<8x8xf32>
    %685 = arith.addf %643, %684 : vector<8x8xf32>
    %cst_173 = arith.constant 0.000000e+00 : f32
    %686 = vector.broadcast %cst_173 : f32 to vector<8x8xf32>
    %687 = arith.addf %644, %686 : vector<8x8xf32>
    %688 = arith.subf %633, %685 : vector<8x8xf32>
    %689 = math.absf %688 : vector<8x8xf32>
    %cst_174 = arith.constant 1.000000e+00 : f32
    %690 = vector.broadcast %cst_174 : f32 to vector<8x8xf32>
    %691 = arith.subf %690, %689 : vector<8x8xf32>
    %692 = arith.subf %641, %687 : vector<8x8xf32>
    %693 = math.absf %692 : vector<8x8xf32>
    %cst_175 = arith.constant 1.000000e+00 : f32
    %694 = vector.broadcast %cst_175 : f32 to vector<8x8xf32>
    %695 = arith.subf %694, %693 : vector<8x8xf32>
    %696 = arith.mulf %691, %695 : vector<8x8xf32>
    %cst_176 = arith.constant 0.000000e+00 : f32
    %697 = vector.broadcast %cst_176 : f32 to vector<8x8xf32>
    %698 = arith.cmpf oge, %685, %697 : vector<8x8xf32>
    %cst_177 = arith.constant 3.000000e+00 : f32
    %699 = vector.broadcast %cst_177 : f32 to vector<8x8xf32>
    %700 = arith.cmpf ole, %685, %699 : vector<8x8xf32>
    %701 = arith.andi %698, %700 : vector<8x8xi1>
    %cst_178 = arith.constant 0.000000e+00 : f32
    %702 = vector.broadcast %cst_178 : f32 to vector<8x8xf32>
    %703 = arith.cmpf oge, %687, %702 : vector<8x8xf32>
    %704 = arith.andi %701, %703 : vector<8x8xi1>
    %cst_179 = arith.constant 3.000000e+00 : f32
    %705 = vector.broadcast %cst_179 : f32 to vector<8x8xf32>
    %706 = arith.cmpf ole, %687, %705 : vector<8x8xf32>
    %707 = arith.andi %704, %706 : vector<8x8xi1>
    %cst_180 = arith.constant 0.000000e+00 : f32
    %cst_181 = arith.constant 3.000000e+00 : f32
    %708 = vector.broadcast %cst_180 : f32 to vector<8x8xf32>
    %709 = arith.maximumf %708, %687 : vector<8x8xf32>
    %710 = vector.broadcast %cst_181 : f32 to vector<8x8xf32>
    %711 = arith.minimumf %710, %709 : vector<8x8xf32>
    %cst_182 = arith.constant 4.000000e+00 : f32
    %712 = vector.broadcast %cst_182 : f32 to vector<8x8xf32>
    %713 = arith.mulf %711, %712 : vector<8x8xf32>
    %cst_183 = arith.constant 0.000000e+00 : f32
    %cst_184 = arith.constant 3.000000e+00 : f32
    %714 = vector.broadcast %cst_183 : f32 to vector<8x8xf32>
    %715 = arith.maximumf %714, %685 : vector<8x8xf32>
    %716 = vector.broadcast %cst_184 : f32 to vector<8x8xf32>
    %717 = arith.minimumf %716, %715 : vector<8x8xf32>
    %718 = arith.addf %713, %717 : vector<8x8xf32>
    %719 = arith.fptosi %718 : vector<8x8xf32> to vector<8x8xi32>
    %720 = arith.mulf %696, %642 : vector<8x8xf32>
    %cst_185 = arith.constant 0.000000e+00 : f32
    %721 = vector.broadcast %cst_185 : f32 to vector<8x8xf32>
    %722 = arith.select %707, %720, %721 : vector<8x8xi1>, vector<8x8xf32>
    %cst_186 = arith.constant 0.000000e+00 : f32
    %723 = vector.broadcast %cst_186 : f32 to vector<8x8xf32>
    %724 = arith.addf %643, %723 : vector<8x8xf32>
    %cst_187 = arith.constant 1.000000e+00 : f32
    %725 = vector.broadcast %cst_187 : f32 to vector<8x8xf32>
    %726 = arith.addf %644, %725 : vector<8x8xf32>
    %727 = arith.subf %633, %724 : vector<8x8xf32>
    %728 = math.absf %727 : vector<8x8xf32>
    %cst_188 = arith.constant 1.000000e+00 : f32
    %729 = vector.broadcast %cst_188 : f32 to vector<8x8xf32>
    %730 = arith.subf %729, %728 : vector<8x8xf32>
    %731 = arith.subf %641, %726 : vector<8x8xf32>
    %732 = math.absf %731 : vector<8x8xf32>
    %cst_189 = arith.constant 1.000000e+00 : f32
    %733 = vector.broadcast %cst_189 : f32 to vector<8x8xf32>
    %734 = arith.subf %733, %732 : vector<8x8xf32>
    %735 = arith.mulf %730, %734 : vector<8x8xf32>
    %cst_190 = arith.constant 0.000000e+00 : f32
    %736 = vector.broadcast %cst_190 : f32 to vector<8x8xf32>
    %737 = arith.cmpf oge, %724, %736 : vector<8x8xf32>
    %cst_191 = arith.constant 3.000000e+00 : f32
    %738 = vector.broadcast %cst_191 : f32 to vector<8x8xf32>
    %739 = arith.cmpf ole, %724, %738 : vector<8x8xf32>
    %740 = arith.andi %737, %739 : vector<8x8xi1>
    %cst_192 = arith.constant 0.000000e+00 : f32
    %741 = vector.broadcast %cst_192 : f32 to vector<8x8xf32>
    %742 = arith.cmpf oge, %726, %741 : vector<8x8xf32>
    %743 = arith.andi %740, %742 : vector<8x8xi1>
    %cst_193 = arith.constant 3.000000e+00 : f32
    %744 = vector.broadcast %cst_193 : f32 to vector<8x8xf32>
    %745 = arith.cmpf ole, %726, %744 : vector<8x8xf32>
    %746 = arith.andi %743, %745 : vector<8x8xi1>
    %cst_194 = arith.constant 0.000000e+00 : f32
    %cst_195 = arith.constant 3.000000e+00 : f32
    %747 = vector.broadcast %cst_194 : f32 to vector<8x8xf32>
    %748 = arith.maximumf %747, %726 : vector<8x8xf32>
    %749 = vector.broadcast %cst_195 : f32 to vector<8x8xf32>
    %750 = arith.minimumf %749, %748 : vector<8x8xf32>
    %cst_196 = arith.constant 4.000000e+00 : f32
    %751 = vector.broadcast %cst_196 : f32 to vector<8x8xf32>
    %752 = arith.mulf %750, %751 : vector<8x8xf32>
    %cst_197 = arith.constant 0.000000e+00 : f32
    %cst_198 = arith.constant 3.000000e+00 : f32
    %753 = vector.broadcast %cst_197 : f32 to vector<8x8xf32>
    %754 = arith.maximumf %753, %724 : vector<8x8xf32>
    %755 = vector.broadcast %cst_198 : f32 to vector<8x8xf32>
    %756 = arith.minimumf %755, %754 : vector<8x8xf32>
    %757 = arith.addf %752, %756 : vector<8x8xf32>
    %758 = arith.fptosi %757 : vector<8x8xf32> to vector<8x8xi32>
    %759 = arith.mulf %735, %642 : vector<8x8xf32>
    %cst_199 = arith.constant 0.000000e+00 : f32
    %760 = vector.broadcast %cst_199 : f32 to vector<8x8xf32>
    %761 = arith.select %746, %759, %760 : vector<8x8xi1>, vector<8x8xf32>
    %cst_200 = arith.constant 1.000000e+00 : f32
    %762 = vector.broadcast %cst_200 : f32 to vector<8x8xf32>
    %763 = arith.addf %643, %762 : vector<8x8xf32>
    %cst_201 = arith.constant 1.000000e+00 : f32
    %764 = vector.broadcast %cst_201 : f32 to vector<8x8xf32>
    %765 = arith.addf %644, %764 : vector<8x8xf32>
    %766 = arith.subf %633, %763 : vector<8x8xf32>
    %767 = math.absf %766 : vector<8x8xf32>
    %cst_202 = arith.constant 1.000000e+00 : f32
    %768 = vector.broadcast %cst_202 : f32 to vector<8x8xf32>
    %769 = arith.subf %768, %767 : vector<8x8xf32>
    %770 = arith.subf %641, %765 : vector<8x8xf32>
    %771 = math.absf %770 : vector<8x8xf32>
    %cst_203 = arith.constant 1.000000e+00 : f32
    %772 = vector.broadcast %cst_203 : f32 to vector<8x8xf32>
    %773 = arith.subf %772, %771 : vector<8x8xf32>
    %774 = arith.mulf %769, %773 : vector<8x8xf32>
    %cst_204 = arith.constant 0.000000e+00 : f32
    %775 = vector.broadcast %cst_204 : f32 to vector<8x8xf32>
    %776 = arith.cmpf oge, %763, %775 : vector<8x8xf32>
    %cst_205 = arith.constant 3.000000e+00 : f32
    %777 = vector.broadcast %cst_205 : f32 to vector<8x8xf32>
    %778 = arith.cmpf ole, %763, %777 : vector<8x8xf32>
    %779 = arith.andi %776, %778 : vector<8x8xi1>
    %cst_206 = arith.constant 0.000000e+00 : f32
    %780 = vector.broadcast %cst_206 : f32 to vector<8x8xf32>
    %781 = arith.cmpf oge, %765, %780 : vector<8x8xf32>
    %782 = arith.andi %779, %781 : vector<8x8xi1>
    %cst_207 = arith.constant 3.000000e+00 : f32
    %783 = vector.broadcast %cst_207 : f32 to vector<8x8xf32>
    %784 = arith.cmpf ole, %765, %783 : vector<8x8xf32>
    %785 = arith.andi %782, %784 : vector<8x8xi1>
    %cst_208 = arith.constant 0.000000e+00 : f32
    %cst_209 = arith.constant 3.000000e+00 : f32
    %786 = vector.broadcast %cst_208 : f32 to vector<8x8xf32>
    %787 = arith.maximumf %786, %765 : vector<8x8xf32>
    %788 = vector.broadcast %cst_209 : f32 to vector<8x8xf32>
    %789 = arith.minimumf %788, %787 : vector<8x8xf32>
    %cst_210 = arith.constant 4.000000e+00 : f32
    %790 = vector.broadcast %cst_210 : f32 to vector<8x8xf32>
    %791 = arith.mulf %789, %790 : vector<8x8xf32>
    %cst_211 = arith.constant 0.000000e+00 : f32
    %cst_212 = arith.constant 3.000000e+00 : f32
    %792 = vector.broadcast %cst_211 : f32 to vector<8x8xf32>
    %793 = arith.maximumf %792, %763 : vector<8x8xf32>
    %794 = vector.broadcast %cst_212 : f32 to vector<8x8xf32>
    %795 = arith.minimumf %794, %793 : vector<8x8xf32>
    %796 = arith.addf %791, %795 : vector<8x8xf32>
    %797 = arith.fptosi %796 : vector<8x8xf32> to vector<8x8xi32>
    %798 = arith.mulf %774, %642 : vector<8x8xf32>
    %cst_213 = arith.constant 0.000000e+00 : f32
    %799 = vector.broadcast %cst_213 : f32 to vector<8x8xf32>
    %800 = arith.select %785, %798, %799 : vector<8x8xi1>, vector<8x8xf32>
    %cst_214 = arith.constant 0.000000e+00 : f32
    %801 = vector.broadcast %cst_214 : f32 to vector<8x16xf32>
    %802 = vector.extract_strided_slice %680 {offsets = [0, 0], sizes = [8, 1], strides = [1, 1]} : vector<8x8xi32> to vector<8x1xi32>
    %803 = vector.broadcast %802 : vector<8x1xi32> to vector<8x16xi32>
    %804 = arith.cmpi eq, %625, %803 : vector<8x16xi32>
    %805 = arith.extui %804 : vector<8x16xi1> to vector<8x16xi32>
    %806 = arith.sitofp %805 : vector<8x16xi32> to vector<8x16xf32>
    %807 = vector.extract_strided_slice %683 {offsets = [0, 0], sizes = [8, 1], strides = [1, 1]} : vector<8x8xf32> to vector<8x1xf32>
    %808 = vector.broadcast %807 : vector<8x1xf32> to vector<8x16xf32>
    %809 = arith.mulf %806, %808 : vector<8x16xf32>
    %810 = arith.addf %801, %809 : vector<8x16xf32>
    %811 = vector.extract_strided_slice %719 {offsets = [0, 0], sizes = [8, 1], strides = [1, 1]} : vector<8x8xi32> to vector<8x1xi32>
    %812 = vector.broadcast %811 : vector<8x1xi32> to vector<8x16xi32>
    %813 = arith.cmpi eq, %625, %812 : vector<8x16xi32>
    %814 = arith.extui %813 : vector<8x16xi1> to vector<8x16xi32>
    %815 = arith.sitofp %814 : vector<8x16xi32> to vector<8x16xf32>
    %816 = vector.extract_strided_slice %722 {offsets = [0, 0], sizes = [8, 1], strides = [1, 1]} : vector<8x8xf32> to vector<8x1xf32>
    %817 = vector.broadcast %816 : vector<8x1xf32> to vector<8x16xf32>
    %818 = arith.mulf %815, %817 : vector<8x16xf32>
    %819 = arith.addf %810, %818 : vector<8x16xf32>
    %820 = vector.extract_strided_slice %758 {offsets = [0, 0], sizes = [8, 1], strides = [1, 1]} : vector<8x8xi32> to vector<8x1xi32>
    %821 = vector.broadcast %820 : vector<8x1xi32> to vector<8x16xi32>
    %822 = arith.cmpi eq, %625, %821 : vector<8x16xi32>
    %823 = arith.extui %822 : vector<8x16xi1> to vector<8x16xi32>
    %824 = arith.sitofp %823 : vector<8x16xi32> to vector<8x16xf32>
    %825 = vector.extract_strided_slice %761 {offsets = [0, 0], sizes = [8, 1], strides = [1, 1]} : vector<8x8xf32> to vector<8x1xf32>
    %826 = vector.broadcast %825 : vector<8x1xf32> to vector<8x16xf32>
    %827 = arith.mulf %824, %826 : vector<8x16xf32>
    %828 = arith.addf %819, %827 : vector<8x16xf32>
    %829 = vector.extract_strided_slice %797 {offsets = [0, 0], sizes = [8, 1], strides = [1, 1]} : vector<8x8xi32> to vector<8x1xi32>
    %830 = vector.broadcast %829 : vector<8x1xi32> to vector<8x16xi32>
    %831 = arith.cmpi eq, %625, %830 : vector<8x16xi32>
    %832 = arith.extui %831 : vector<8x16xi1> to vector<8x16xi32>
    %833 = arith.sitofp %832 : vector<8x16xi32> to vector<8x16xf32>
    %834 = vector.extract_strided_slice %800 {offsets = [0, 0], sizes = [8, 1], strides = [1, 1]} : vector<8x8xf32> to vector<8x1xf32>
    %835 = vector.broadcast %834 : vector<8x1xf32> to vector<8x16xf32>
    %836 = arith.mulf %833, %835 : vector<8x16xf32>
    %837 = arith.addf %828, %836 : vector<8x16xf32>
    %838 = vector.extract_strided_slice %680 {offsets = [0, 1], sizes = [8, 1], strides = [1, 1]} : vector<8x8xi32> to vector<8x1xi32>
    %839 = vector.broadcast %838 : vector<8x1xi32> to vector<8x16xi32>
    %840 = arith.cmpi eq, %625, %839 : vector<8x16xi32>
    %841 = arith.extui %840 : vector<8x16xi1> to vector<8x16xi32>
    %842 = arith.sitofp %841 : vector<8x16xi32> to vector<8x16xf32>
    %843 = vector.extract_strided_slice %683 {offsets = [0, 1], sizes = [8, 1], strides = [1, 1]} : vector<8x8xf32> to vector<8x1xf32>
    %844 = vector.broadcast %843 : vector<8x1xf32> to vector<8x16xf32>
    %845 = arith.mulf %842, %844 : vector<8x16xf32>
    %846 = arith.addf %837, %845 : vector<8x16xf32>
    %847 = vector.extract_strided_slice %719 {offsets = [0, 1], sizes = [8, 1], strides = [1, 1]} : vector<8x8xi32> to vector<8x1xi32>
    %848 = vector.broadcast %847 : vector<8x1xi32> to vector<8x16xi32>
    %849 = arith.cmpi eq, %625, %848 : vector<8x16xi32>
    %850 = arith.extui %849 : vector<8x16xi1> to vector<8x16xi32>
    %851 = arith.sitofp %850 : vector<8x16xi32> to vector<8x16xf32>
    %852 = vector.extract_strided_slice %722 {offsets = [0, 1], sizes = [8, 1], strides = [1, 1]} : vector<8x8xf32> to vector<8x1xf32>
    %853 = vector.broadcast %852 : vector<8x1xf32> to vector<8x16xf32>
    %854 = arith.mulf %851, %853 : vector<8x16xf32>
    %855 = arith.addf %846, %854 : vector<8x16xf32>
    %856 = vector.extract_strided_slice %758 {offsets = [0, 1], sizes = [8, 1], strides = [1, 1]} : vector<8x8xi32> to vector<8x1xi32>
    %857 = vector.broadcast %856 : vector<8x1xi32> to vector<8x16xi32>
    %858 = arith.cmpi eq, %625, %857 : vector<8x16xi32>
    %859 = arith.extui %858 : vector<8x16xi1> to vector<8x16xi32>
    %860 = arith.sitofp %859 : vector<8x16xi32> to vector<8x16xf32>
    %861 = vector.extract_strided_slice %761 {offsets = [0, 1], sizes = [8, 1], strides = [1, 1]} : vector<8x8xf32> to vector<8x1xf32>
    %862 = vector.broadcast %861 : vector<8x1xf32> to vector<8x16xf32>
    %863 = arith.mulf %860, %862 : vector<8x16xf32>
    %864 = arith.addf %855, %863 : vector<8x16xf32>
    %865 = vector.extract_strided_slice %797 {offsets = [0, 1], sizes = [8, 1], strides = [1, 1]} : vector<8x8xi32> to vector<8x1xi32>
    %866 = vector.broadcast %865 : vector<8x1xi32> to vector<8x16xi32>
    %867 = arith.cmpi eq, %625, %866 : vector<8x16xi32>
    %868 = arith.extui %867 : vector<8x16xi1> to vector<8x16xi32>
    %869 = arith.sitofp %868 : vector<8x16xi32> to vector<8x16xf32>
    %870 = vector.extract_strided_slice %800 {offsets = [0, 1], sizes = [8, 1], strides = [1, 1]} : vector<8x8xf32> to vector<8x1xf32>
    %871 = vector.broadcast %870 : vector<8x1xf32> to vector<8x16xf32>
    %872 = arith.mulf %869, %871 : vector<8x16xf32>
    %873 = arith.addf %864, %872 : vector<8x16xf32>
    %c0_215 = arith.constant 0 : index
    %c64 = arith.constant 64 : index
    %874 = vector.load %arg31[%c0_215, %c64] : memref<8x320xf32, #tpu.memory_space<vmem>>, vector<8x16xf32>
    tpu.vector_store %arg31[%c0_215, %c64], %873 {strides = array<i32>} : memref<8x320xf32, #tpu.memory_space<vmem>>, vector<8x16xf32>,
    %cst_216 = arith.constant 0.000000e+00 : f32
    %875 = vector.broadcast %cst_216 : f32 to vector<8x16xf32>
    %876 = vector.extract_strided_slice %680 {offsets = [0, 2], sizes = [8, 1], strides = [1, 1]} : vector<8x8xi32> to vector<8x1xi32>
    %877 = vector.broadcast %876 : vector<8x1xi32> to vector<8x16xi32>
    %878 = arith.cmpi eq, %625, %877 : vector<8x16xi32>
    %879 = arith.extui %878 : vector<8x16xi1> to vector<8x16xi32>
    %880 = arith.sitofp %879 : vector<8x16xi32> to vector<8x16xf32>
    %881 = vector.extract_strided_slice %683 {offsets = [0, 2], sizes = [8, 1], strides = [1, 1]} : vector<8x8xf32> to vector<8x1xf32>
    %882 = vector.broadcast %881 : vector<8x1xf32> to vector<8x16xf32>
    %883 = arith.mulf %880, %882 : vector<8x16xf32>
    %884 = arith.addf %875, %883 : vector<8x16xf32>
    %885 = vector.extract_strided_slice %719 {offsets = [0, 2], sizes = [8, 1], strides = [1, 1]} : vector<8x8xi32> to vector<8x1xi32>
    %886 = vector.broadcast %885 : vector<8x1xi32> to vector<8x16xi32>
    %887 = arith.cmpi eq, %625, %886 : vector<8x16xi32>
    %888 = arith.extui %887 : vector<8x16xi1> to vector<8x16xi32>
    %889 = arith.sitofp %888 : vector<8x16xi32> to vector<8x16xf32>
    %890 = vector.extract_strided_slice %722 {offsets = [0, 2], sizes = [8, 1], strides = [1, 1]} : vector<8x8xf32> to vector<8x1xf32>
    %891 = vector.broadcast %890 : vector<8x1xf32> to vector<8x16xf32>
    %892 = arith.mulf %889, %891 : vector<8x16xf32>
    %893 = arith.addf %884, %892 : vector<8x16xf32>
    %894 = vector.extract_strided_slice %758 {offsets = [0, 2], sizes = [8, 1], strides = [1, 1]} : vector<8x8xi32> to vector<8x1xi32>
    %895 = vector.broadcast %894 : vector<8x1xi32> to vector<8x16xi32>
    %896 = arith.cmpi eq, %625, %895 : vector<8x16xi32>
    %897 = arith.extui %896 : vector<8x16xi1> to vector<8x16xi32>
    %898 = arith.sitofp %897 : vector<8x16xi32> to vector<8x16xf32>
    %899 = vector.extract_strided_slice %761 {offsets = [0, 2], sizes = [8, 1], strides = [1, 1]} : vector<8x8xf32> to vector<8x1xf32>
    %900 = vector.broadcast %899 : vector<8x1xf32> to vector<8x16xf32>
    %901 = arith.mulf %898, %900 : vector<8x16xf32>
    %902 = arith.addf %893, %901 : vector<8x16xf32>
    %903 = vector.extract_strided_slice %797 {offsets = [0, 2], sizes = [8, 1], strides = [1, 1]} : vector<8x8xi32> to vector<8x1xi32>
    %904 = vector.broadcast %903 : vector<8x1xi32> to vector<8x16xi32>
    %905 = arith.cmpi eq, %625, %904 : vector<8x16xi32>
    %906 = arith.extui %905 : vector<8x16xi1> to vector<8x16xi32>
    %907 = arith.sitofp %906 : vector<8x16xi32> to vector<8x16xf32>
    %908 = vector.extract_strided_slice %800 {offsets = [0, 2], sizes = [8, 1], strides = [1, 1]} : vector<8x8xf32> to vector<8x1xf32>
    %909 = vector.broadcast %908 : vector<8x1xf32> to vector<8x16xf32>
    %910 = arith.mulf %907, %909 : vector<8x16xf32>
    %911 = arith.addf %902, %910 : vector<8x16xf32>
    %912 = vector.extract_strided_slice %680 {offsets = [0, 3], sizes = [8, 1], strides = [1, 1]} : vector<8x8xi32> to vector<8x1xi32>
    %913 = vector.broadcast %912 : vector<8x1xi32> to vector<8x16xi32>
    %914 = arith.cmpi eq, %625, %913 : vector<8x16xi32>
    %915 = arith.extui %914 : vector<8x16xi1> to vector<8x16xi32>
    %916 = arith.sitofp %915 : vector<8x16xi32> to vector<8x16xf32>
    %917 = vector.extract_strided_slice %683 {offsets = [0, 3], sizes = [8, 1], strides = [1, 1]} : vector<8x8xf32> to vector<8x1xf32>
    %918 = vector.broadcast %917 : vector<8x1xf32> to vector<8x16xf32>
    %919 = arith.mulf %916, %918 : vector<8x16xf32>
    %920 = arith.addf %911, %919 : vector<8x16xf32>
    %921 = vector.extract_strided_slice %719 {offsets = [0, 3], sizes = [8, 1], strides = [1, 1]} : vector<8x8xi32> to vector<8x1xi32>
    %922 = vector.broadcast %921 : vector<8x1xi32> to vector<8x16xi32>
    %923 = arith.cmpi eq, %625, %922 : vector<8x16xi32>
    %924 = arith.extui %923 : vector<8x16xi1> to vector<8x16xi32>
    %925 = arith.sitofp %924 : vector<8x16xi32> to vector<8x16xf32>
    %926 = vector.extract_strided_slice %722 {offsets = [0, 3], sizes = [8, 1], strides = [1, 1]} : vector<8x8xf32> to vector<8x1xf32>
    %927 = vector.broadcast %926 : vector<8x1xf32> to vector<8x16xf32>
    %928 = arith.mulf %925, %927 : vector<8x16xf32>
    %929 = arith.addf %920, %928 : vector<8x16xf32>
    %930 = vector.extract_strided_slice %758 {offsets = [0, 3], sizes = [8, 1], strides = [1, 1]} : vector<8x8xi32> to vector<8x1xi32>
    %931 = vector.broadcast %930 : vector<8x1xi32> to vector<8x16xi32>
    %932 = arith.cmpi eq, %625, %931 : vector<8x16xi32>
    %933 = arith.extui %932 : vector<8x16xi1> to vector<8x16xi32>
    %934 = arith.sitofp %933 : vector<8x16xi32> to vector<8x16xf32>
    %935 = vector.extract_strided_slice %761 {offsets = [0, 3], sizes = [8, 1], strides = [1, 1]} : vector<8x8xf32> to vector<8x1xf32>
    %936 = vector.broadcast %935 : vector<8x1xf32> to vector<8x16xf32>
    %937 = arith.mulf %934, %936 : vector<8x16xf32>
    %938 = arith.addf %929, %937 : vector<8x16xf32>
    %939 = vector.extract_strided_slice %797 {offsets = [0, 3], sizes = [8, 1], strides = [1, 1]} : vector<8x8xi32> to vector<8x1xi32>
    %940 = vector.broadcast %939 : vector<8x1xi32> to vector<8x16xi32>
    %941 = arith.cmpi eq, %625, %940 : vector<8x16xi32>
    %942 = arith.extui %941 : vector<8x16xi1> to vector<8x16xi32>
    %943 = arith.sitofp %942 : vector<8x16xi32> to vector<8x16xf32>
    %944 = vector.extract_strided_slice %800 {offsets = [0, 3], sizes = [8, 1], strides = [1, 1]} : vector<8x8xf32> to vector<8x1xf32>
    %945 = vector.broadcast %944 : vector<8x1xf32> to vector<8x16xf32>
    %946 = arith.mulf %943, %945 : vector<8x16xf32>
    %947 = arith.addf %938, %946 : vector<8x16xf32>
    %c0_217 = arith.constant 0 : index
    %c144 = arith.constant 144 : index
    %948 = vector.load %arg31[%c0_217, %c144] : memref<8x320xf32, #tpu.memory_space<vmem>>, vector<8x16xf32>
    tpu.vector_store %arg31[%c0_217, %c144], %947 {strides = array<i32>} : memref<8x320xf32, #tpu.memory_space<vmem>>, vector<8x16xf32>,
    %cst_218 = arith.constant 0.000000e+00 : f32
    %949 = vector.broadcast %cst_218 : f32 to vector<8x16xf32>
    %950 = vector.extract_strided_slice %680 {offsets = [0, 4], sizes = [8, 1], strides = [1, 1]} : vector<8x8xi32> to vector<8x1xi32>
    %951 = vector.broadcast %950 : vector<8x1xi32> to vector<8x16xi32>
    %952 = arith.cmpi eq, %625, %951 : vector<8x16xi32>
    %953 = arith.extui %952 : vector<8x16xi1> to vector<8x16xi32>
    %954 = arith.sitofp %953 : vector<8x16xi32> to vector<8x16xf32>
    %955 = vector.extract_strided_slice %683 {offsets = [0, 4], sizes = [8, 1], strides = [1, 1]} : vector<8x8xf32> to vector<8x1xf32>
    %956 = vector.broadcast %955 : vector<8x1xf32> to vector<8x16xf32>
    %957 = arith.mulf %954, %956 : vector<8x16xf32>
    %958 = arith.addf %949, %957 : vector<8x16xf32>
    %959 = vector.extract_strided_slice %719 {offsets = [0, 4], sizes = [8, 1], strides = [1, 1]} : vector<8x8xi32> to vector<8x1xi32>
    %960 = vector.broadcast %959 : vector<8x1xi32> to vector<8x16xi32>
    %961 = arith.cmpi eq, %625, %960 : vector<8x16xi32>
    %962 = arith.extui %961 : vector<8x16xi1> to vector<8x16xi32>
    %963 = arith.sitofp %962 : vector<8x16xi32> to vector<8x16xf32>
    %964 = vector.extract_strided_slice %722 {offsets = [0, 4], sizes = [8, 1], strides = [1, 1]} : vector<8x8xf32> to vector<8x1xf32>
    %965 = vector.broadcast %964 : vector<8x1xf32> to vector<8x16xf32>
    %966 = arith.mulf %963, %965 : vector<8x16xf32>
    %967 = arith.addf %958, %966 : vector<8x16xf32>
    %968 = vector.extract_strided_slice %758 {offsets = [0, 4], sizes = [8, 1], strides = [1, 1]} : vector<8x8xi32> to vector<8x1xi32>
    %969 = vector.broadcast %968 : vector<8x1xi32> to vector<8x16xi32>
    %970 = arith.cmpi eq, %625, %969 : vector<8x16xi32>
    %971 = arith.extui %970 : vector<8x16xi1> to vector<8x16xi32>
    %972 = arith.sitofp %971 : vector<8x16xi32> to vector<8x16xf32>
    %973 = vector.extract_strided_slice %761 {offsets = [0, 4], sizes = [8, 1], strides = [1, 1]} : vector<8x8xf32> to vector<8x1xf32>
    %974 = vector.broadcast %973 : vector<8x1xf32> to vector<8x16xf32>
    %975 = arith.mulf %972, %974 : vector<8x16xf32>
    %976 = arith.addf %967, %975 : vector<8x16xf32>
    %977 = vector.extract_strided_slice %797 {offsets = [0, 4], sizes = [8, 1], strides = [1, 1]} : vector<8x8xi32> to vector<8x1xi32>
    %978 = vector.broadcast %977 : vector<8x1xi32> to vector<8x16xi32>
    %979 = arith.cmpi eq, %625, %978 : vector<8x16xi32>
    %980 = arith.extui %979 : vector<8x16xi1> to vector<8x16xi32>
    %981 = arith.sitofp %980 : vector<8x16xi32> to vector<8x16xf32>
    %982 = vector.extract_strided_slice %800 {offsets = [0, 4], sizes = [8, 1], strides = [1, 1]} : vector<8x8xf32> to vector<8x1xf32>
    %983 = vector.broadcast %982 : vector<8x1xf32> to vector<8x16xf32>
    %984 = arith.mulf %981, %983 : vector<8x16xf32>
    %985 = arith.addf %976, %984 : vector<8x16xf32>
    %986 = vector.extract_strided_slice %680 {offsets = [0, 5], sizes = [8, 1], strides = [1, 1]} : vector<8x8xi32> to vector<8x1xi32>
    %987 = vector.broadcast %986 : vector<8x1xi32> to vector<8x16xi32>
    %988 = arith.cmpi eq, %625, %987 : vector<8x16xi32>
    %989 = arith.extui %988 : vector<8x16xi1> to vector<8x16xi32>
    %990 = arith.sitofp %989 : vector<8x16xi32> to vector<8x16xf32>
    %991 = vector.extract_strided_slice %683 {offsets = [0, 5], sizes = [8, 1], strides = [1, 1]} : vector<8x8xf32> to vector<8x1xf32>
    %992 = vector.broadcast %991 : vector<8x1xf32> to vector<8x16xf32>
    %993 = arith.mulf %990, %992 : vector<8x16xf32>
    %994 = arith.addf %985, %993 : vector<8x16xf32>
    %995 = vector.extract_strided_slice %719 {offsets = [0, 5], sizes = [8, 1], strides = [1, 1]} : vector<8x8xi32> to vector<8x1xi32>
    %996 = vector.broadcast %995 : vector<8x1xi32> to vector<8x16xi32>
    %997 = arith.cmpi eq, %625, %996 : vector<8x16xi32>
    %998 = arith.extui %997 : vector<8x16xi1> to vector<8x16xi32>
    %999 = arith.sitofp %998 : vector<8x16xi32> to vector<8x16xf32>
    %1000 = vector.extract_strided_slice %722 {offsets = [0, 5], sizes = [8, 1], strides = [1, 1]} : vector<8x8xf32> to vector<8x1xf32>
    %1001 = vector.broadcast %1000 : vector<8x1xf32> to vector<8x16xf32>
    %1002 = arith.mulf %999, %1001 : vector<8x16xf32>
    %1003 = arith.addf %994, %1002 : vector<8x16xf32>
    %1004 = vector.extract_strided_slice %758 {offsets = [0, 5], sizes = [8, 1], strides = [1, 1]} : vector<8x8xi32> to vector<8x1xi32>
    %1005 = vector.broadcast %1004 : vector<8x1xi32> to vector<8x16xi32>
    %1006 = arith.cmpi eq, %625, %1005 : vector<8x16xi32>
    %1007 = arith.extui %1006 : vector<8x16xi1> to vector<8x16xi32>
    %1008 = arith.sitofp %1007 : vector<8x16xi32> to vector<8x16xf32>
    %1009 = vector.extract_strided_slice %761 {offsets = [0, 5], sizes = [8, 1], strides = [1, 1]} : vector<8x8xf32> to vector<8x1xf32>
    %1010 = vector.broadcast %1009 : vector<8x1xf32> to vector<8x16xf32>
    %1011 = arith.mulf %1008, %1010 : vector<8x16xf32>
    %1012 = arith.addf %1003, %1011 : vector<8x16xf32>
    %1013 = vector.extract_strided_slice %797 {offsets = [0, 5], sizes = [8, 1], strides = [1, 1]} : vector<8x8xi32> to vector<8x1xi32>
    %1014 = vector.broadcast %1013 : vector<8x1xi32> to vector<8x16xi32>
    %1015 = arith.cmpi eq, %625, %1014 : vector<8x16xi32>
    %1016 = arith.extui %1015 : vector<8x16xi1> to vector<8x16xi32>
    %1017 = arith.sitofp %1016 : vector<8x16xi32> to vector<8x16xf32>
    %1018 = vector.extract_strided_slice %800 {offsets = [0, 5], sizes = [8, 1], strides = [1, 1]} : vector<8x8xf32> to vector<8x1xf32>
    %1019 = vector.broadcast %1018 : vector<8x1xf32> to vector<8x16xf32>
    %1020 = arith.mulf %1017, %1019 : vector<8x16xf32>
    %1021 = arith.addf %1012, %1020 : vector<8x16xf32>
    %c0_219 = arith.constant 0 : index
    %c224 = arith.constant 224 : index
    %1022 = vector.load %arg31[%c0_219, %c224] : memref<8x320xf32, #tpu.memory_space<vmem>>, vector<8x16xf32>
    tpu.vector_store %arg31[%c0_219, %c224], %1021 {strides = array<i32>} : memref<8x320xf32, #tpu.memory_space<vmem>>, vector<8x16xf32>,
    %cst_220 = arith.constant 0.000000e+00 : f32
    %1023 = vector.broadcast %cst_220 : f32 to vector<8x16xf32>
    %1024 = vector.extract_strided_slice %680 {offsets = [0, 6], sizes = [8, 1], strides = [1, 1]} : vector<8x8xi32> to vector<8x1xi32>
    %1025 = vector.broadcast %1024 : vector<8x1xi32> to vector<8x16xi32>
    %1026 = arith.cmpi eq, %625, %1025 : vector<8x16xi32>
    %1027 = arith.extui %1026 : vector<8x16xi1> to vector<8x16xi32>
    %1028 = arith.sitofp %1027 : vector<8x16xi32> to vector<8x16xf32>
    %1029 = vector.extract_strided_slice %683 {offsets = [0, 6], sizes = [8, 1], strides = [1, 1]} : vector<8x8xf32> to vector<8x1xf32>
    %1030 = vector.broadcast %1029 : vector<8x1xf32> to vector<8x16xf32>
    %1031 = arith.mulf %1028, %1030 : vector<8x16xf32>
    %1032 = arith.addf %1023, %1031 : vector<8x16xf32>
    %1033 = vector.extract_strided_slice %719 {offsets = [0, 6], sizes = [8, 1], strides = [1, 1]} : vector<8x8xi32> to vector<8x1xi32>
    %1034 = vector.broadcast %1033 : vector<8x1xi32> to vector<8x16xi32>
    %1035 = arith.cmpi eq, %625, %1034 : vector<8x16xi32>
    %1036 = arith.extui %1035 : vector<8x16xi1> to vector<8x16xi32>
    %1037 = arith.sitofp %1036 : vector<8x16xi32> to vector<8x16xf32>
    %1038 = vector.extract_strided_slice %722 {offsets = [0, 6], sizes = [8, 1], strides = [1, 1]} : vector<8x8xf32> to vector<8x1xf32>
    %1039 = vector.broadcast %1038 : vector<8x1xf32> to vector<8x16xf32>
    %1040 = arith.mulf %1037, %1039 : vector<8x16xf32>
    %1041 = arith.addf %1032, %1040 : vector<8x16xf32>
    %1042 = vector.extract_strided_slice %758 {offsets = [0, 6], sizes = [8, 1], strides = [1, 1]} : vector<8x8xi32> to vector<8x1xi32>
    %1043 = vector.broadcast %1042 : vector<8x1xi32> to vector<8x16xi32>
    %1044 = arith.cmpi eq, %625, %1043 : vector<8x16xi32>
    %1045 = arith.extui %1044 : vector<8x16xi1> to vector<8x16xi32>
    %1046 = arith.sitofp %1045 : vector<8x16xi32> to vector<8x16xf32>
    %1047 = vector.extract_strided_slice %761 {offsets = [0, 6], sizes = [8, 1], strides = [1, 1]} : vector<8x8xf32> to vector<8x1xf32>
    %1048 = vector.broadcast %1047 : vector<8x1xf32> to vector<8x16xf32>
    %1049 = arith.mulf %1046, %1048 : vector<8x16xf32>
    %1050 = arith.addf %1041, %1049 : vector<8x16xf32>
    %1051 = vector.extract_strided_slice %797 {offsets = [0, 6], sizes = [8, 1], strides = [1, 1]} : vector<8x8xi32> to vector<8x1xi32>
    %1052 = vector.broadcast %1051 : vector<8x1xi32> to vector<8x16xi32>
    %1053 = arith.cmpi eq, %625, %1052 : vector<8x16xi32>
    %1054 = arith.extui %1053 : vector<8x16xi1> to vector<8x16xi32>
    %1055 = arith.sitofp %1054 : vector<8x16xi32> to vector<8x16xf32>
    %1056 = vector.extract_strided_slice %800 {offsets = [0, 6], sizes = [8, 1], strides = [1, 1]} : vector<8x8xf32> to vector<8x1xf32>
    %1057 = vector.broadcast %1056 : vector<8x1xf32> to vector<8x16xf32>
    %1058 = arith.mulf %1055, %1057 : vector<8x16xf32>
    %1059 = arith.addf %1050, %1058 : vector<8x16xf32>
    %1060 = vector.extract_strided_slice %680 {offsets = [0, 7], sizes = [8, 1], strides = [1, 1]} : vector<8x8xi32> to vector<8x1xi32>
    %1061 = vector.broadcast %1060 : vector<8x1xi32> to vector<8x16xi32>
    %1062 = arith.cmpi eq, %625, %1061 : vector<8x16xi32>
    %1063 = arith.extui %1062 : vector<8x16xi1> to vector<8x16xi32>
    %1064 = arith.sitofp %1063 : vector<8x16xi32> to vector<8x16xf32>
    %1065 = vector.extract_strided_slice %683 {offsets = [0, 7], sizes = [8, 1], strides = [1, 1]} : vector<8x8xf32> to vector<8x1xf32>
    %1066 = vector.broadcast %1065 : vector<8x1xf32> to vector<8x16xf32>
    %1067 = arith.mulf %1064, %1066 : vector<8x16xf32>
    %1068 = arith.addf %1059, %1067 : vector<8x16xf32>
    %1069 = vector.extract_strided_slice %719 {offsets = [0, 7], sizes = [8, 1], strides = [1, 1]} : vector<8x8xi32> to vector<8x1xi32>
    %1070 = vector.broadcast %1069 : vector<8x1xi32> to vector<8x16xi32>
    %1071 = arith.cmpi eq, %625, %1070 : vector<8x16xi32>
    %1072 = arith.extui %1071 : vector<8x16xi1> to vector<8x16xi32>
    %1073 = arith.sitofp %1072 : vector<8x16xi32> to vector<8x16xf32>
    %1074 = vector.extract_strided_slice %722 {offsets = [0, 7], sizes = [8, 1], strides = [1, 1]} : vector<8x8xf32> to vector<8x1xf32>
    %1075 = vector.broadcast %1074 : vector<8x1xf32> to vector<8x16xf32>
    %1076 = arith.mulf %1073, %1075 : vector<8x16xf32>
    %1077 = arith.addf %1068, %1076 : vector<8x16xf32>
    %1078 = vector.extract_strided_slice %758 {offsets = [0, 7], sizes = [8, 1], strides = [1, 1]} : vector<8x8xi32> to vector<8x1xi32>
    %1079 = vector.broadcast %1078 : vector<8x1xi32> to vector<8x16xi32>
    %1080 = arith.cmpi eq, %625, %1079 : vector<8x16xi32>
    %1081 = arith.extui %1080 : vector<8x16xi1> to vector<8x16xi32>
    %1082 = arith.sitofp %1081 : vector<8x16xi32> to vector<8x16xf32>
    %1083 = vector.extract_strided_slice %761 {offsets = [0, 7], sizes = [8, 1], strides = [1, 1]} : vector<8x8xf32> to vector<8x1xf32>
    %1084 = vector.broadcast %1083 : vector<8x1xf32> to vector<8x16xf32>
    %1085 = arith.mulf %1082, %1084 : vector<8x16xf32>
    %1086 = arith.addf %1077, %1085 : vector<8x16xf32>
    %1087 = vector.extract_strided_slice %797 {offsets = [0, 7], sizes = [8, 1], strides = [1, 1]} : vector<8x8xi32> to vector<8x1xi32>
    %1088 = vector.broadcast %1087 : vector<8x1xi32> to vector<8x16xi32>
    %1089 = arith.cmpi eq, %625, %1088 : vector<8x16xi32>
    %1090 = arith.extui %1089 : vector<8x16xi1> to vector<8x16xi32>
    %1091 = arith.sitofp %1090 : vector<8x16xi32> to vector<8x16xf32>
    %1092 = vector.extract_strided_slice %800 {offsets = [0, 7], sizes = [8, 1], strides = [1, 1]} : vector<8x8xf32> to vector<8x1xf32>
    %1093 = vector.broadcast %1092 : vector<8x1xf32> to vector<8x16xf32>
    %1094 = arith.mulf %1091, %1093 : vector<8x16xf32>
    %1095 = arith.addf %1086, %1094 : vector<8x16xf32>
    %c0_221 = arith.constant 0 : index
    %c304 = arith.constant 304 : index
    %1096 = vector.load %arg31[%c0_221, %c304] : memref<8x320xf32, #tpu.memory_space<vmem>>, vector<8x16xf32>
    tpu.vector_store %arg31[%c0_221, %c304], %1095 {strides = array<i32>} : memref<8x320xf32, #tpu.memory_space<vmem>>, vector<8x16xf32>,
    %c0_222 = arith.constant 0 : index
    %c0_223 = arith.constant 0 : index
    %1097 = vector.load %arg31[%c0_222, %c0_223] : memref<8x320xf32, #tpu.memory_space<vmem>>, vector<8x320xf32>
    %c0_224 = arith.constant 0 : index
    %c0_225 = arith.constant 0 : index
    %1098 = vector.load %arg30[%c0_224, %c0_225] : memref<320x32xf32, #tpu.memory_space<vmem>>, vector<320x32xf32>
    %cst_226 = arith.constant dense<0.000000e+00> : vector<8x32xf32>
    %1099 = tpu.matmul %1097, %1098, %cst_226 {dimension_numbers = #tpu.dot_dimension_numbers<[1], [0], [0], [1], [0, 0, 1, 1], [], []>} : vector<8x320xf32>, vector<320x32xf32>, vector<8x32xf32> -> vector<8x32xf32>
    %c0_227 = arith.constant 0 : index
    %c0_228 = arith.constant 0 : index
    %1100 = vector.load %arg19[%c0_227, %c0_228] : memref<1x32xf32, #tpu.memory_space<vmem>>, vector<1x32xf32>
    %1101 = vector.broadcast %1100 : vector<1x32xf32> to vector<8x32xf32>
    %1102 = arith.addf %1099, %1101 : vector<8x32xf32>
    %1103 = arith.addf %113, %1102 : vector<8x32xf32>
    %c0_229 = arith.constant 0 : index
    %c0_230 = arith.constant 0 : index
    %1104 = vector.load %arg20[%c0_229, %c0_230] : memref<1x32xf32, #tpu.memory_space<vmem>>, vector<1x32xf32>
    %c0_231 = arith.constant 0 : index
    %c0_232 = arith.constant 0 : index
    %1105 = vector.load %arg21[%c0_231, %c0_232] : memref<1x32xf32, #tpu.memory_space<vmem>>, vector<1x32xf32>
    %cst_233 = arith.constant dense<0.000000e+00> : vector<8xf32>
    %1106 = vector.multi_reduction <add>, %1103, %cst_233 [1] : vector<8x32xf32> to vector<8xf32>
    %1107 = vector.shape_cast %1106 : vector<8xf32> to vector<8x1xf32>
    %cst_234 = arith.constant 3.200000e+01 : f32
    %1108 = vector.broadcast %cst_234 : f32 to vector<8x1xf32>
    %1109 = arith.divf %1107, %1108 : vector<8x1xf32>
    %1110 = vector.broadcast %1109 : vector<8x1xf32> to vector<8x32xf32>
    %1111 = arith.subf %1103, %1110 : vector<8x32xf32>
    %1112 = arith.mulf %1111, %1111 : vector<8x32xf32>
    %cst_235 = arith.constant dense<0.000000e+00> : vector<8xf32>
    %1113 = vector.multi_reduction <add>, %1112, %cst_235 [1] : vector<8x32xf32> to vector<8xf32>
    %1114 = vector.shape_cast %1113 : vector<8xf32> to vector<8x1xf32>
    %cst_236 = arith.constant 3.200000e+01 : f32
    %1115 = vector.broadcast %cst_236 : f32 to vector<8x1xf32>
    %1116 = arith.divf %1114, %1115 : vector<8x1xf32>
    %cst_237 = arith.constant 9.99999974E-6 : f32
    %1117 = vector.broadcast %cst_237 : f32 to vector<8x1xf32>
    %1118 = arith.addf %1116, %1117 : vector<8x1xf32>
    %1119 = math.rsqrt %1118 : vector<8x1xf32>
    %1120 = vector.broadcast %1119 : vector<8x1xf32> to vector<8x32xf32>
    %1121 = arith.mulf %1111, %1120 : vector<8x32xf32>
    %1122 = vector.broadcast %1104 : vector<1x32xf32> to vector<8x32xf32>
    %1123 = arith.mulf %1121, %1122 : vector<8x32xf32>
    %1124 = vector.broadcast %1105 : vector<1x32xf32> to vector<8x32xf32>
    %1125 = arith.addf %1123, %1124 : vector<8x32xf32>
    %c0_238 = arith.constant 0 : index
    %c0_239 = arith.constant 0 : index
    %1126 = vector.load %arg22[%c0_238, %c0_239] : memref<32x128xf32, #tpu.memory_space<vmem>>, vector<32x128xf32>
    %cst_240 = arith.constant dense<0.000000e+00> : vector<8x128xf32>
    %1127 = tpu.matmul %1125, %1126, %cst_240 {dimension_numbers = #tpu.dot_dimension_numbers<[1], [0], [0], [1], [0, 0, 1, 1], [], []>} : vector<8x32xf32>, vector<32x128xf32>, vector<8x128xf32> -> vector<8x128xf32>
    %c0_241 = arith.constant 0 : index
    %c0_242 = arith.constant 0 : index
    %1128 = vector.load %arg23[%c0_241, %c0_242] : memref<1x128xf32, #tpu.memory_space<vmem>>, vector<1x128xf32>
    %1129 = vector.broadcast %1128 : vector<1x128xf32> to vector<8x128xf32>
    %1130 = arith.addf %1127, %1129 : vector<8x128xf32>
    %cst_243 = arith.constant 0.000000e+00 : f32
    %1131 = vector.broadcast %cst_243 : f32 to vector<8x128xf32>
    %1132 = arith.maximumf %1130, %1131 : vector<8x128xf32>
    %c0_244 = arith.constant 0 : index
    %c0_245 = arith.constant 0 : index
    %1133 = vector.load %arg24[%c0_244, %c0_245] : memref<128x32xf32, #tpu.memory_space<vmem>>, vector<128x32xf32>
    %cst_246 = arith.constant dense<0.000000e+00> : vector<8x32xf32>
    %1134 = tpu.matmul %1132, %1133, %cst_246 {dimension_numbers = #tpu.dot_dimension_numbers<[1], [0], [0], [1], [0, 0, 1, 1], [], []>} : vector<8x128xf32>, vector<128x32xf32>, vector<8x32xf32> -> vector<8x32xf32>
    %c0_247 = arith.constant 0 : index
    %c0_248 = arith.constant 0 : index
    %1135 = vector.load %arg25[%c0_247, %c0_248] : memref<1x32xf32, #tpu.memory_space<vmem>>, vector<1x32xf32>
    %1136 = vector.broadcast %1135 : vector<1x32xf32> to vector<8x32xf32>
    %1137 = arith.addf %1134, %1136 : vector<8x32xf32>
    %1138 = arith.addf %1125, %1137 : vector<8x32xf32>
    %c0_249 = arith.constant 0 : index
    %c0_250 = arith.constant 0 : index
    %1139 = vector.load %arg26[%c0_249, %c0_250] : memref<1x32xf32, #tpu.memory_space<vmem>>, vector<1x32xf32>
    %c0_251 = arith.constant 0 : index
    %c0_252 = arith.constant 0 : index
    %1140 = vector.load %arg27[%c0_251, %c0_252] : memref<1x32xf32, #tpu.memory_space<vmem>>, vector<1x32xf32>
    %cst_253 = arith.constant dense<0.000000e+00> : vector<8xf32>
    %1141 = vector.multi_reduction <add>, %1138, %cst_253 [1] : vector<8x32xf32> to vector<8xf32>
    %1142 = vector.shape_cast %1141 : vector<8xf32> to vector<8x1xf32>
    %cst_254 = arith.constant 3.200000e+01 : f32
    %1143 = vector.broadcast %cst_254 : f32 to vector<8x1xf32>
    %1144 = arith.divf %1142, %1143 : vector<8x1xf32>
    %1145 = vector.broadcast %1144 : vector<8x1xf32> to vector<8x32xf32>
    %1146 = arith.subf %1138, %1145 : vector<8x32xf32>
    %1147 = arith.mulf %1146, %1146 : vector<8x32xf32>
    %cst_255 = arith.constant dense<0.000000e+00> : vector<8xf32>
    %1148 = vector.multi_reduction <add>, %1147, %cst_255 [1] : vector<8x32xf32> to vector<8xf32>
    %1149 = vector.shape_cast %1148 : vector<8xf32> to vector<8x1xf32>
    %cst_256 = arith.constant 3.200000e+01 : f32
    %1150 = vector.broadcast %cst_256 : f32 to vector<8x1xf32>
    %1151 = arith.divf %1149, %1150 : vector<8x1xf32>
    %cst_257 = arith.constant 9.99999974E-6 : f32
    %1152 = vector.broadcast %cst_257 : f32 to vector<8x1xf32>
    %1153 = arith.addf %1151, %1152 : vector<8x1xf32>
    %1154 = math.rsqrt %1153 : vector<8x1xf32>
    %1155 = vector.broadcast %1154 : vector<8x1xf32> to vector<8x32xf32>
    %1156 = arith.mulf %1146, %1155 : vector<8x32xf32>
    %1157 = vector.broadcast %1139 : vector<1x32xf32> to vector<8x32xf32>
    %1158 = arith.mulf %1156, %1157 : vector<8x32xf32>
    %1159 = vector.broadcast %1140 : vector<1x32xf32> to vector<8x32xf32>
    %1160 = arith.addf %1158, %1159 : vector<8x32xf32>
    %c0_258 = arith.constant 0 : index
    %c0_259 = arith.constant 0 : index
    %c0_260 = arith.constant 0 : index
    %1161 = vector.load %arg28[%c0_258, %c0_259, %c0_260] : memref<1x8x32xf32, #tpu.memory_space<vmem>>, vector<1x8x32xf32>
    %1162 = vector.shape_cast %1161 : vector<1x8x32xf32> to vector<8x32xf32>
    %1163 = vector.shape_cast %1160 : vector<8x32xf32> to vector<1x8x32xf32>
    tpu.vector_store %arg28[%c0_258, %c0_259, %c0_260], %1163 {strides = array<i32>} : memref<1x8x32xf32, #tpu.memory_space<vmem>>, vector<1x8x32xf32>,
    return
  }
  func.func @transform_0(%arg0: i32) -> (i32, i32, i32) {
    %c0_i32 = arith.constant 0 : i32
    %c0_i32_0 = arith.constant 0 : i32
    %c0_i32_1 = arith.constant 0 : i32
    return %arg0, %c0_i32, %c0_i32_0 : i32, i32, i32
  }
  func.func @transform_1(%arg0: i32) -> (i32, i32, i32) {
    %c0_i32 = arith.constant 0 : i32
    %c0_i32_0 = arith.constant 0 : i32
    %c0_i32_1 = arith.constant 0 : i32
    return %arg0, %c0_i32, %c0_i32_0 : i32, i32, i32
  }
  func.func @transform_2(%arg0: i32) -> (i32, i32, i32) {
    %c0_i32 = arith.constant 0 : i32
    %c0_i32_0 = arith.constant 0 : i32
    %c0_i32_1 = arith.constant 0 : i32
    return %arg0, %c0_i32, %c0_i32_0 : i32, i32, i32
  }
  func.func @transform_3(%arg0: i32) -> (i32, i32, i32) {
    %c0_i32 = arith.constant 0 : i32
    %c0_i32_0 = arith.constant 0 : i32
    %c0_i32_1 = arith.constant 0 : i32
    return %arg0, %c0_i32, %c0_i32_0 : i32, i32, i32
  }
  func.func @transform_4(%arg0: i32) -> (i32, i32) {
    %c0_i32 = arith.constant 0 : i32
    %c0_i32_0 = arith.constant 0 : i32
    %c0_i32_1 = arith.constant 0 : i32
    return %c0_i32, %c0_i32_0 : i32, i32
  }
  func.func @transform_5(%arg0: i32) -> (i32, i32) {
    %c0_i32 = arith.constant 0 : i32
    %c0_i32_0 = arith.constant 0 : i32
    %c0_i32_1 = arith.constant 0 : i32
    return %c0_i32, %c0_i32_0 : i32, i32
  }
  func.func @transform_6(%arg0: i32) -> (i32, i32) {
    %c0_i32 = arith.constant 0 : i32
    %c0_i32_0 = arith.constant 0 : i32
    %c0_i32_1 = arith.constant 0 : i32
    return %c0_i32, %c0_i32_0 : i32, i32
  }
  func.func @transform_7(%arg0: i32) -> (i32, i32) {
    %c0_i32 = arith.constant 0 : i32
    %c0_i32_0 = arith.constant 0 : i32
    %c0_i32_1 = arith.constant 0 : i32
    return %c0_i32, %c0_i32_0 : i32, i32
  }
  func.func @transform_8(%arg0: i32) -> (i32, i32) {
    %c0_i32 = arith.constant 0 : i32
    %c0_i32_0 = arith.constant 0 : i32
    %c0_i32_1 = arith.constant 0 : i32
    return %c0_i32, %c0_i32_0 : i32, i32
  }
  func.func @transform_9(%arg0: i32) -> (i32, i32) {
    %c0_i32 = arith.constant 0 : i32
    %c0_i32_0 = arith.constant 0 : i32
    %c0_i32_1 = arith.constant 0 : i32
    return %c0_i32, %c0_i32_0 : i32, i32
  }
  func.func @transform_10(%arg0: i32) -> (i32, i32) {
    %c0_i32 = arith.constant 0 : i32
    %c0_i32_0 = arith.constant 0 : i32
    %c0_i32_1 = arith.constant 0 : i32
    return %c0_i32, %c0_i32_0 : i32, i32
  }
  func.func @transform_11(%arg0: i32) -> (i32, i32) {
    %c0_i32 = arith.constant 0 : i32
    %c0_i32_0 = arith.constant 0 : i32
    %c0_i32_1 = arith.constant 0 : i32
    return %c0_i32, %c0_i32_0 : i32, i32
  }
  func.func @transform_12(%arg0: i32) -> (i32, i32) {
    %c0_i32 = arith.constant 0 : i32
    %c0_i32_0 = arith.constant 0 : i32
    %c0_i32_1 = arith.constant 0 : i32
    return %c0_i32, %c0_i32_0 : i32, i32
  }
  func.func @transform_13(%arg0: i32) -> (i32, i32) {
    %c0_i32 = arith.constant 0 : i32
    %c0_i32_0 = arith.constant 0 : i32
    %c0_i32_1 = arith.constant 0 : i32
    return %c0_i32, %c0_i32_0 : i32, i32
  }
  func.func @transform_14(%arg0: i32) -> (i32, i32) {
    %c0_i32 = arith.constant 0 : i32
    %c0_i32_0 = arith.constant 0 : i32
    %c0_i32_1 = arith.constant 0 : i32
    return %c0_i32, %c0_i32_0 : i32, i32
  }
  func.func @transform_15(%arg0: i32) -> (i32, i32) {
    %c0_i32 = arith.constant 0 : i32
    %c0_i32_0 = arith.constant 0 : i32
    %c0_i32_1 = arith.constant 0 : i32
    return %c0_i32, %c0_i32_0 : i32, i32
  }
  func.func @transform_16(%arg0: i32) -> (i32, i32) {
    %c0_i32 = arith.constant 0 : i32
    %c0_i32_0 = arith.constant 0 : i32
    %c0_i32_1 = arith.constant 0 : i32
    return %c0_i32, %c0_i32_0 : i32, i32
  }
  func.func @transform_17(%arg0: i32) -> (i32, i32) {
    %c0_i32 = arith.constant 0 : i32
    %c0_i32_0 = arith.constant 0 : i32
    %c0_i32_1 = arith.constant 0 : i32
    return %c0_i32, %c0_i32_0 : i32, i32
  }
  func.func @transform_18(%arg0: i32) -> (i32, i32) {
    %c0_i32 = arith.constant 0 : i32
    %c0_i32_0 = arith.constant 0 : i32
    %c0_i32_1 = arith.constant 0 : i32
    return %c0_i32, %c0_i32_0 : i32, i32
  }
  func.func @transform_19(%arg0: i32) -> (i32, i32) {
    %c0_i32 = arith.constant 0 : i32
    %c0_i32_0 = arith.constant 0 : i32
    %c0_i32_1 = arith.constant 0 : i32
    return %c0_i32, %c0_i32_0 : i32, i32
  }
  func.func @transform_20(%arg0: i32) -> (i32, i32) {
    %c0_i32 = arith.constant 0 : i32
    %c0_i32_0 = arith.constant 0 : i32
    %c0_i32_1 = arith.constant 0 : i32
    return %c0_i32, %c0_i32_0 : i32, i32
  }
  func.func @transform_21(%arg0: i32) -> (i32, i32) {
    %c0_i32 = arith.constant 0 : i32
    %c0_i32_0 = arith.constant 0 : i32
    %c0_i32_1 = arith.constant 0 : i32
    return %c0_i32, %c0_i32_0 : i32, i32
  }
  func.func @transform_22(%arg0: i32) -> (i32, i32) {
    %c0_i32 = arith.constant 0 : i32
    %c0_i32_0 = arith.constant 0 : i32
    %c0_i32_1 = arith.constant 0 : i32
    return %c0_i32, %c0_i32_0 : i32, i32
  }
  func.func @transform_23(%arg0: i32) -> (i32, i32) {
    %c0_i32 = arith.constant 0 : i32
    %c0_i32_0 = arith.constant 0 : i32
    %c0_i32_1 = arith.constant 0 : i32
    return %c0_i32, %c0_i32_0 : i32, i32
  }
  func.func @transform_24(%arg0: i32) -> (i32, i32) {
    %c0_i32 = arith.constant 0 : i32
    %c0_i32_0 = arith.constant 0 : i32
    %c0_i32_1 = arith.constant 0 : i32
    return %c0_i32, %c0_i32_0 : i32, i32
  }
  func.func @transform_25(%arg0: i32) -> (i32, i32) {
    %c0_i32 = arith.constant 0 : i32
    %c0_i32_0 = arith.constant 0 : i32
    %c0_i32_1 = arith.constant 0 : i32
    return %c0_i32, %c0_i32_0 : i32, i32
  }
  func.func @transform_26(%arg0: i32) -> (i32, i32) {
    %c0_i32 = arith.constant 0 : i32
    %c0_i32_0 = arith.constant 0 : i32
    %c0_i32_1 = arith.constant 0 : i32
    return %c0_i32, %c0_i32_0 : i32, i32
  }
  func.func @transform_27(%arg0: i32) -> (i32, i32, i32) {
    %c0_i32 = arith.constant 0 : i32
    %c0_i32_0 = arith.constant 0 : i32
    %c0_i32_1 = arith.constant 0 : i32
    return %arg0, %c0_i32, %c0_i32_0 : i32, i32, i32
  }
}

</mosaic_0001>

<bundles_post_ra>
// kernel: run.1
= control target key start
LH: loop header
LB: loop body
LE: loop exit
PB: predicated region body
PF: predicated region fallthrough
CT: control target
= control target key end

     0   :  { %s7060_s0 = inlined_call_operand.vmem [shape: f32[2,8,32], index: 0, kind: input, shape index: {}]   ;;  %s7061_s1 = inlined_call_operand.vmem [shape: f32[2,8,32], index: 1, kind: input, shape index: {}]   ;;  %s7062_s2 = inlined_call_operand.vmem [shape: f32[2,8,4], index: 2, kind: input, shape index: {}]   ;;  %s7063_s3 = inlined_call_operand.vmem [shape: f32[2,80,32], index: 3, kind: input, shape index: {}]   ;;  %s7064_s4 = inlined_call_operand.vmem [shape: f32[32,64], index: 4, kind: input, shape index: {}]   ;;  %s7065_s5 = inlined_call_operand.vmem [shape: f32[1,64], index: 5, kind: input, shape index: {}]   ;;  %s7066_s6 = inlined_call_operand.vmem [shape: f32[32,32], index: 6, kind: input, shape index: {}]   ;;  %s7067_s7 = inlined_call_operand.vmem [shape: f32[1,32], index: 7, kind: input, shape index: {}]   ;;  %s7068_s8 = inlined_call_operand.vmem [shape: f32[32,32], index: 8, kind: input, shape index: {}]   ;;  %s7069_s9 = inlined_call_operand.vmem [shape: f32[1,32], index: 9, kind: input, shape index: {}]   ;;  %s7070_s10 = inlined_call_operand.vmem [shape: f32[1,32], index: 10, kind: input, shape index: {}]   ;;  %s7071_s11 = inlined_call_operand.vmem [shape: f32[1,32], index: 11, kind: input, shape index: {}]   ;;  %s7072_s12 = inlined_call_operand.vmem [shape: f32[32,48], index: 12, kind: input, shape index: {}]   ;;  %s7073_s13 = inlined_call_operand.vmem [shape: f32[1,48], index: 13, kind: input, shape index: {}]   ;;  %s7074_s14 = inlined_call_operand.vmem [shape: f32[16,16], index: 14, kind: input, shape index: {}]   ;;  %s7075_s15 = inlined_call_operand.vmem [shape: f32[32,32], index: 15, kind: input, shape index: {}]   ;;  %s7076_s16 = inlined_call_operand.vmem [shape: f32[1,32], index: 16, kind: input, shape index: {}]   ;;  %s7077_s17 = inlined_call_operand.vmem [shape: f32[32,32], index: 17, kind: input, shape index: {}]   ;;  %s7078_s18 = inlined_call_operand.vmem [shape: f32[1,32], index: 18, kind: input, shape index: {}]   ;;  %s7079_s19 = inlined_call_operand.vmem [shape: f32[1,32], index: 19, kind: input, shape index: {}]   ;;  %s7080_s20 = inlined_call_operand.vmem [shape: f32[1,32], index: 20, kind: input, shape index: {}]   ;;  %s7081_s21 = inlined_call_operand.vmem [shape: f32[32,128], index: 21, kind: input, shape index: {}]   ;;  %s7082_s22 = inlined_call_operand.vmem [shape: f32[1,128], index: 22, kind: input, shape index: {}]   ;;  %s7083_s23 = inlined_call_operand.vmem [shape: f32[128,32], index: 23, kind: input, shape index: {}]   ;;  %s7084_s24 = inlined_call_operand.vmem [shape: f32[1,32], index: 24, kind: input, shape index: {}]   ;;  %s7085_s25 = inlined_call_operand.vmem [shape: f32[1,32], index: 25, kind: input, shape index: {}]   ;;  %s7086_s26 = inlined_call_operand.vmem [shape: f32[1,32], index: 26, kind: input, shape index: {}]   ;;  %s7087_s27 = inlined_call_operand.hbm [shape: f32[2,8,32], index: 27, kind: output, shape index: {}]  }
   0x1   :  { %7151 = sst [smem:[#allocation42_spill]] %s7060_s0 }
   0x2   :  { %7152 = sst [smem:[#allocation43_spill]] %s7061_s1 }
   0x3   :  { %7153 = sst [smem:[#allocation44_spill]] %s7062_s2 }
   0x4   :  { %7154 = sst [smem:[#allocation45_spill]] %s7063_s3 }
   0x5   :  { %7155 = sst [smem:[#allocation46_spill]] %s7064_s4 }
   0x6   :  { %7156 = sst [smem:[#allocation47_spill]] %s7065_s5 }
   0x7   :  { %7157 = sst [smem:[#allocation48_spill]] %s7066_s6 }
   0x8   :  { %7158 = sst [smem:[#allocation49_spill]] %s7067_s7 }
   0x9   :  { %7159 = sst [smem:[#allocation50_spill]] %s7068_s8 }
   0xa   :  { %7160 = sst [smem:[#allocation51_spill]] %s7069_s9 }
   0xb   :  { %7161 = sst [smem:[#allocation52_spill]] %s7070_s10 }
   0xc   :  { %7162 = sst [smem:[#allocation53_spill]] %s7071_s11 }
   0xd   :  { %7163 = sst [smem:[#allocation54_spill]] %s7072_s12 }
   0xe   :  { %7164 = sst [smem:[#allocation55_spill]] %s7085_s25 }
   0xf   :  { %7165 = sst [smem:[#allocation56_spill]] %s7086_s26 }
  0x10   :  { %7166 = sst [smem:[#allocation57_spill]] %s7087_s27 }
  0x11   :  { %32 = vsyncpa [#allocation6], 0 }
  0x12   :  { %34 = vsyncpa [#allocation6 + $0x1], 0  ;;  %s5600_s7 = smov 0   ;;  %s5602_s4 = smov 0  }
  0x13   :  { %s5604_s8 = smov 0   ;;  %s5606_s30 = smov 0  }
  0x14 LB: > { %7167 = sst [smem:[#allocation8_spill]] %s5397_s7  ;;  %s5621_s9 = sadd.s32 4294967295, %s5409_s30   ;;  %s5409_s30 = sphi %s5606_s30, %s7299_s30   ;;  %s5405_s8 = sphi %s5604_s8, %s7301_s8   ;;  %s5401_s4 = sphi %s5602_s4, %s7303_s4   ;;  %s5397_s7 = sphi %s5600_s7, %s7302_s7  }
  0x15   : > { %7168 = sst [smem:[#allocation9_spill]] %s5405_s8  ;;  %s4424_s5 = sadd.s32 4294967294, %s5409_s30  }
  0x16   : > { %7169 = sst [smem:[#allocation10_spill]] %s5409_s30  ;;  %s5625_s28 = sadd.s32 1, %s5409_s30  }
  0x17   : > { %7170 = sst [smem:[#allocation11_spill]] %s5625_s28  ;;  %s634_s0 = sadd.s32 1, %s5405_s8 }
  0x18   : > { %s631_s10 = ssub.s32 %s5409_s30, %s5625_s28  ;;  %p644_p0 = scmp.ne.s32.totalorder %s5405_s8, %s5401_s4 }
  0x19   : > { %p632_p1 = scmp.eq.s32.totalorder %s631_s10, 0  ;;  %p645_p2 = scmp.eq.s32.totalorder %s5621_s9, 1 }
  0x1a   : > { %p650_p3 = scmp.ne.s32.totalorder %s5401_s4, %s5397_s7  ;;  %p651_p4 = scmp.eq.s32.totalorder %s4424_s5, 1 }
  0x1b   : > { %s5636_s29 = scalar_select %p632_p1, %s5405_s8, %s634_s0  }
  0x1c   : > { %p5638_p5 = por %p645_p2, %p644_p0  ;;  %p5642_p6 = por %p651_p4, %p650_p3 }
  0x1d   : > { %7171 = sst [smem:[#allocation12_spill]] %s5636_s29  ;;  %p4427_p7 = scmp.ge.s32.totalorder %s5409_s30, 1 }
  0x1e   : > { %s7172_s1 = scalar_select %p5638_p5, 1, 0 }
  0x1f   : > { %s7174_s6 = scalar_select %p5642_p6, 1, 0 }
  0x20   : > { %7173 = sst [smem:[#allocation13_spill]] %s7172_s1  ;;  %p767_p8 = scmp.lt.s32.totalorder %s5409_s30, 3 }
  0x21   : > { %7175 = sst [smem:[#allocation14_spill]] %s7174_s6 }
  0x22   : > { %p768_p9 = pnand %p4427_p7, %p767_p8 }
  0x24   : > { %771 = sbr.rel (%p768_p9) target bundleno = 4581 (0x11e5), region = 128 }
  0x2b   : > { %s7176_s3 = sld [smem:[#allocation46_spill]]  ;;  %v7114_v3 = vmov 0.0|0.0   ;;  %vm7123_vm0 = vmmov 0   ;;  %v7116_v6 = vmov 0.0   ;;  %p851_p10 = scmp.lt.s32.totalorder %s5621_s9, 1  ;;  %vm7118_vm1 = vcmask 261120  }
  0x2c   : > { %4998 = vmatprep.subr.bf16.mxu0 %v7114_v3  ;;  %4759 = vmatprep.mubr.msk.f32.mxu0 %vm7123_vm0, %v7116_v6  ;;  %s7177_s2 = sld [smem:[#allocation42_spill]]  ;;  %s7180_s10 = sld [smem:[#allocation48_spill]]  ;;  %vm1054_vm2 = vcmask 64512   ;;  %vm1384_vm3 = vcmask 130112   ;;  %vm1555_vm4 = vcmask 195712   ;;  %vm1726_vm5 = vcmask 261312  }
  0x2d   : > { %5004 = vmatprep.subr.bf16.mxu1 %v7114_v3  ;;  %4770 = vmatprep.mubr.msk.f32.mxu1 %vm7123_vm0, %v7116_v6  ;;  %s5668_s29 = scalar_select %p851_p10, %s5621_s9, 1  ;;  %vm1929_vm6 = vcmask 392448   ;;  %vm7126_vm7 = vcmask 130048  }
  0x2e   : > { %s5418_s7 = smov 72   ;;  %s7106_s30 = smov 112  }
  0x2f   : > { %s5672_s8 = sshll.u32 %s5668_s29, 3  ;;  %s7104_s27 = smov 104  }
  0x30   : > { %s7181_s0 = sld [smem:[#allocation49_spill]]  ;;  %s7182_s28 = smov 120  }
  0x31   : > { %v882_v0 = vld [vmem:[%s7176_s3] sm:$0xff]  ;;  %v883_v1 = vld [vmem:[%s7176_s3 + $0x8] sm:$0xff]  ;;  %v884_v2 = vld [vmem:[%s7176_s3 + $0x10] sm:$0xff]  ;;  %s5421_s11 = smov 8   ;;  %s7185_s12 = sld [smem:[#allocation54_spill]] }
  0x32   : > { %v4999_v4 = vpack.c.bf16 %v883_v1, %v882_v0  ;;  %v885_v5 = vld [vmem:[%s7176_s3 + $0x18] sm:$0xff]  ;;  %s854_s5 = scalar_lea.vmem %s7177_s2, %s5672_s8  ;;  %s7178_s3 = sld [smem:[#allocation43_spill]]  ;;  %v967_v15 = vld [vmem:[%s7180_s10] sm:$0xff]  ;;  %v968_v16 = vld [vmem:[%s7180_s10 + $0x8] sm:$0xff] }
  0x33   : > { %v5002_v7 = vpack.c.bf16 %v885_v5, %v884_v2  ;;  %v5682_v8 = vld [vmem:[%s854_s5] sm:$0xff]  ;;  %s7179_s2 = sld [smem:[#allocation47_spill]]  ;;  %v969_v17 = vld [vmem:[%s7180_s10 + $0x10] sm:$0xff]  ;;  %v5005_v18 = vpack.c.bf16 %v968_v16, %v967_v15  ;;  %v970_v19 = vld [vmem:[%s7180_s10 + $0x18] sm:$0xff]  ;;  %s7183_s5 = sld [smem:[#allocation50_spill]] }
  0x34   : > { %5000 = vmatpush3.bf16.msra.mxu0 %v4999_v4  ;;  %v5008_v20 = vpack.c.bf16 %v970_v19, %v969_v17  ;;  %s7193_s25 = smov 96   ;;  %s5441_s10 = smov 32  }
  0x35   : > { %5001 = vmatprep.subr.bf16.mxu0 %v7114_v3  ;;  %5006 = vmatpush3.bf16.msra.mxu1 %v5005_v18 }
  0x36   : > { %5007 = vmatprep.subr.bf16.mxu1 %v7114_v3  ;;  %v4435_v40 = vld [vmem:[%s7181_s0] ss:$0 sm:$0xff] }
  0x38   : > { %s858_s6 = scalar_lea.vmem %s7178_s3, %s5672_s8  ;;  %5003 = vmatpush3.bf16.msra.mxu0 %v5002_v7  ;;  %s7101_s3 = smov 96  }
  0x39   : > { %v5684_v9 = vld [vmem:[%s858_s6] sm:$0xff]  ;;  %4773 = vmatprep.subr.mxu0 %v7116_v6  ;;  %s7099_s6 = smov 120   ;;  %5009 = vmatpush3.bf16.msra.mxu1 %v5008_v20 }
  0x3a   : > { %v881_v10 = vadd.f32 %v5684_v9, %v5682_v8  ;;  %v4433_v11 = vld [vmem:[%s7179_s2] ss:$0 sm:$0xff]  ;;  %4778 = vmatprep.subr.mxu1 %v7116_v6  ;;  %s7109_s2 = smov 16  }
  0x3c   : > { %4760 = vmatmul.mubr.msk.f32.vlgmr.msra.gmra.mrb[0].mxu0 %vm7118_vm1, %v881_v10  ;;  %4771 = vmatmul.mubr.msk.f32.vlgmr.msra.gmra.mrb[0].mxu1 %vm7118_vm1, %v5682_v8 }
  0x3d   : > { %4775 = vmatprep.mubr.msk.f32.mxu0 %vm7123_vm0, %v7116_v6  ;;  %4780 = vmatprep.mubr.msk.f32.mxu1 %vm7123_vm0, %v7116_v6 }
 0x10f   : > { %v963_v12 = vpop.f32.mrb[0].mxu0  ;;  %v1047_v41 = vpop.f32.mrb[0].mxu1 }
 0x110   : > { %v964_v13 = vadd.f32 %v4433_v11, %v963_v12  ;;  %v4761_v14 = vpop.f32.mrb[1].mxu0  ;;  %v1048_v42 = vadd.f32 %v4435_v40, %v1047_v41  ;;  %v4772_v43 = vpop.f32.mrb[1].mxu1 }
 0x112   : > { %1214 = vrot.lane.b32.xlu1 %v964_v13, %s7099_s6  ;;  %1052 = vrot.lane.b32.xlu0 %v964_v13, %s7101_s3  ;;  %s7103_s6 = smov 80   ;;  %s5417_s3 = smov 88  }
 0x113   : > { %4779 = vmatpush3.msra.mxu1 %v1048_v42 }
 0x114   : > { %4788 = vmatprep.subr.mxu1 %v7116_v6 }
 0x116   : > { %1388 = vrot.lane.b32.xlu1 %v964_v13, %s7103_s6  ;;  %1216 = vrot.lane.b32.xlu0 %v964_v13, %s5417_s3  ;;  %s7187_s3 = sld [smem:[#allocation53_spill]]  ;;  %s7191_s6 = smov 104  }
 0x11a   : > { %1559 = vrot.lane.b32.xlu1 %v964_v13, %s5418_s7  ;;  %1386 = vrot.lane.b32.xlu0 %v964_v13, %s7106_s30  ;;  %s5423_s7 = smov 24  }
 0x11e   : > { %1557 = vrot.lane.b32.xlu0 %v964_v13, %s7104_s27 }
 0x184   : > { %v1215_v21 = vpop.permute.xlu1 %1214  ;;  %v1053_v22 = vpop.permute.xlu0 %1052 }
 0x185   : > { %4774 = vmatpush3.xpose.msk.msra.mxu0 %vm1054_vm2, %v1053_v22 }
 0x186   : > { %4783 = vmatprep.subr.mxu0 %v7116_v6 }
 0x188   : > { %4776 = vmatmul.mubr.msk.f32.vlgmr.msra.gmra.mrb[2].mxu0 %vm1054_vm2, %v964_v13  ;;  %v1217_v23 = vpop.permute.xlu0 %1216  ;;  %v1389_v24 = vpop.permute.xlu1 %1388 }
 0x189   : > { %4784 = vmatpush3.xpose.msk.msra.mxu0 %vm1054_vm2, %v1217_v23  ;;  %4785 = vmatprep.mubr.msk.f32.mxu0 %vm7123_vm0, %v7116_v6 }
 0x18a   : > { %4793 = vmatprep.subr.mxu0 %v7116_v6 }
 0x18c   : > { %4786 = vmatmul.mubr.msk.f32.vlgmr.msra.gmra.mrb[4].mxu0 %vm1054_vm2, %v1215_v21  ;;  %v1387_v25 = vpop.permute.xlu0 %1386  ;;  %v1560_v26 = vpop.permute.xlu1 %1559 }
 0x18d   : > { %4794 = vmatpush3.xpose.msk.msra.mxu0 %vm1054_vm2, %v1389_v24  ;;  %4795 = vmatprep.mubr.msk.f32.mxu0 %vm7123_vm0, %v7116_v6 }
 0x18e   : > { %4803 = vmatprep.subr.mxu0 %v7116_v6 }
 0x190   : > { %4796 = vmatmul.mubr.msk.f32.vlgmr.msra.gmra.mrb[6].mxu0 %vm1054_vm2, %v1387_v25  ;;  %v1558_v27 = vpop.permute.xlu0 %1557  ;;  %v1729_v25 = vld [vmem:[%s7183_s5] sm:$0xff] }
 0x191   : > { %4804 = vmatpush3.xpose.msk.msra.mxu0 %vm1054_vm2, %v1560_v26  ;;  %4805 = vmatprep.mubr.msk.f32.mxu0 %vm7123_vm0, %v7116_v6  ;;  %v1730_v26 = vld [vmem:[%s7183_s5 + $0x8] sm:$0xff] }
 0x192   : > { %5010 = vmatprep.subr.bf16.mxu0 %v7114_v3 }
 0x194   : > { %4806 = vmatmul.mubr.msk.f32.vlgmr.msra.gmra.mrb[8].mxu0 %vm1054_vm2, %v1558_v27  ;;  %v5011_v27 = vpack.c.bf16 %v1730_v26, %v1729_v25 }
 0x195   : > { %4821 = vmatprep.mubr.msk.f32.mxu0 %vm7123_vm0, %v7116_v6 }
 0x196   : > { %5012 = vmatpush3.bf16.msra.mxu0 %v5011_v27  ;;  %v4456_v27 = vld [vmem:[%s7076_s16] ss:$0 sm:$0xff] }
 0x197   : > { %5013 = vmatprep.subr.bf16.mxu0 %v7114_v3 }
 0x25b   : > { %v1125_v28 = vpop.f32.mrb[2].mxu0 }
 0x25c   : > { %v4777_v29 = vpop.f32.mrb[3].mxu0  ;;  %v1129_v30 = vsel %vm1054_vm2, %v1125_v28, -inf }
 0x25d   : > { %1130 = vmax.xlane.f32.xlu1 %v1129_v30  ;;  %v1732_v29 = vld [vmem:[%s7183_s5 + $0x18] sm:$0xff] }
 0x25f   : > { %v1288_v31 = vpop.f32.mrb[4].mxu0 }
 0x260   : > { %v4787_v32 = vpop.f32.mrb[5].mxu0  ;;  %v1292_v33 = vsel %vm1054_vm2, %v1288_v31, -inf }
 0x261   : > { %1293 = vmax.xlane.f32.xlu0 %v1292_v33 }
 0x263   : > { %v1460_v34 = vpop.f32.mrb[6].mxu0 }
 0x264   : > { %v4797_v35 = vpop.f32.mrb[7].mxu0  ;;  %v1464_v36 = vsel %vm1054_vm2, %v1460_v34, -inf }
 0x265   : > { %1465 = vmax.xlane.f32.xlu0 %v1464_v36 }
 0x267   : > { %v1631_v37 = vpop.f32.mrb[8].mxu0 }
 0x268   : > { %v4807_v38 = vpop.f32.mrb[9].mxu0  ;;  %v1635_v39 = vsel %vm1054_vm2, %v1631_v37, -inf }
 0x269   : > { %1636 = vmax.xlane.f32.xlu1 %v1635_v39 }
 0x2ea   : > { %v1131_v44 = vpop.xlane.xlu1 %1130 }
 0x2eb   : > { %v1132_v45 = vsub.f32 %v1125_v28, %v1131_v44  ;;  %v1731_v28 = vld [vmem:[%s7183_s5 + $0x10] sm:$0xff]  ;;  %s7188_s5 = sld [smem:[#allocation45_spill]] }
 0x2ec   : > { %v5014_v30 = vpack.c.bf16 %v1732_v29, %v1731_v28 }
 0x2ed   : > { %v1133_v46 = vmul.f32 1.442695, %v1132_v45 }
 0x2ee   : > { %v1294_v47 = vpop.xlane.xlu0 %1293  ;;  %5015 = vmatpush3.bf16.msra.mxu0 %v5014_v30 }
 0x2ef   : > { %5321 = vpow2.f32 %v1133_v46  ;;  %v1295_v48 = vsub.f32 %v1288_v31, %v1294_v47  ;;  %5022 = vmatprep.subr.bf16.mxu0 %v7114_v3 }
 0x2f1   : > { %v1296_v49 = vmul.f32 1.442695, %v1295_v48  ;;  %v1845_v48 = vld [vmem:[%s7185_s12] sm:$0xff] }
 0x2f2   : > { %v1466_v50 = vpop.xlane.xlu0 %1465 }
 0x2f3   : > { %5323 = vpow2.f32 %v1296_v49  ;;  %v1467_v51 = vsub.f32 %v1460_v34, %v1466_v50  ;;  %v1846_v49 = vld [vmem:[%s7185_s12 + $0x8] sm:$0xff] }
 0x2f4   : > { %v5017_v50 = vpack.c.bf16 %v1846_v49, %v1845_v48  ;;  %v7121_v48 = vmov 0   ;;  %v1936_v49 = vld [vmem:[%s7074_s14] sm:$0xff] }
 0x2f5   : > { %v1468_v52 = vmul.f32 1.442695, %v1467_v51  ;;  %v1848_v51 = vld [vmem:[%s7185_s12 + $0x18] sm:$0xff]  ;;  %5213 = vset.pattern.permute.xlu1 %v7121_v48 }
 0x2f6   : > { %v1637_v59 = vpop.xlane.xlu1 %1636 }
 0x2f7   : > { %5325 = vpow2.f32 %v1468_v52  ;;  %v1638_v60 = vsub.f32 %v1631_v37, %v1637_v59 }
 0x2f9   : > { %v5322_v53 = vpop.eup %5321  ;;  %v1639_v61 = vmul.f32 1.442695, %v1638_v60 }
 0x2fa   : > { %v1135_v54 = vsel %vm1054_vm2, %v5322_v53, 0.0 }
 0x2fb   : > { %1136 = vadd.xlane.f32.xlu0 %v1135_v54  ;;  %5327 = vpow2.f32 %v1639_v61  ;;  %v2021_v54 = vld [vmem:[%s7075_s15 + $0x8] sm:$0xff] }
 0x2fd   : > { %v5324_v55 = vpop.eup %5323 }
 0x2fe   : > { %v1298_v56 = vsel %vm1054_vm2, %v5324_v55, 0.0 }
 0x2ff   : > { %1299 = vadd.xlane.f32.xlu1 %v1298_v56 }
 0x301   : > { %v5326_v57 = vpop.eup %5325 }
 0x302   : > { %v1470_v58 = vsel %vm1054_vm2, %v5326_v57, 0.0 }
 0x303   : > { %1471 = vadd.xlane.f32.xlu0 %v1470_v58 }
 0x305   : > { %v5328_v62 = vpop.eup %5327 }
 0x306   : > { %v1641_v63 = vsel %vm1054_vm2, %v5328_v62, 0.0 }
 0x310   : > { %1475 = vrot.lane.b32.xlu1 %v1048_v42, %s7106_s30  ;;  %s7184_s30 = sld [smem:[#allocation51_spill]] }
 0x316   : > { %v4449_v37 = vld [vmem:[%s7184_s30] ss:$0 sm:$0xff]  ;;  %s7186_s30 = sld [smem:[#allocation52_spill]] }
 0x319   : > { %1304 = vrot.lane.b32.xlu0 %v1048_v42, %s7182_s28 }
 0x31c   : > { %v4451_v60 = vld [vmem:[%s7186_s30] ss:$0 sm:$0xff]  ;;  %s7267_s30 = smov 80  }
 0x334   : > { %1642 = vadd.xlane.f32.xlu1 %v1641_v63 }
 0x345   : > { %1646 = vrot.lane.b32.xlu1 %v1048_v42, %s7104_s27  ;;  %s7192_s27 = sld [smem:[#allocation44_spill]] }
 0x388   : > { %v1137_v0 = vpop.xlane.xlu0 %1136 }
 0x389   : > { %5329 = vrcp.f32 %v1137_v0  ;;  %v2022_v0 = vld [vmem:[%s7075_s15 + $0x10] sm:$0xff] }
 0x38c   : > { %v1300_v1 = vpop.xlane.xlu1 %1299 }
 0x38d   : > { %5331 = vrcp.f32 %v1300_v1  ;;  %v2023_v1 = vld [vmem:[%s7075_s15 + $0x18] sm:$0xff] }
 0x390   : > { %v1472_v2 = vpop.xlane.xlu0 %1471  ;;  %v1476_v12 = vpop.permute.xlu1 %1475 }
 0x391   : > { %5333 = vrcp.f32 %v1472_v2 }
 0x393   : > { %v5330_v4 = vpop.eup %5329 }
 0x394   : > { %v1305_v5 = vpop.permute.xlu0 %1304  ;;  %v1139_v7 = vmul.f32 %v5330_v4, %v5322_v53  ;;  %v2020_v53 = vld [vmem:[%s7075_s15] sm:$0xff] }
 0x396   : > { %4781 = vmatmul.mubr.msk.f32.vlgmr.msra.gmra.mrb[2].mxu1 %vm1054_vm2, %v1139_v7 }
 0x397   : > { %v5332_v10 = vpop.eup %5331  ;;  %4789 = vmatpush3.msra.mxu1 %v1305_v5  ;;  %4790 = vmatprep.mubr.msk.f32.mxu1 %vm7123_vm0, %v7116_v6  ;;  %v5029_v5 = vpack.c.bf16 %v2023_v1, %v2022_v0 }
 0x398   : > { %4798 = vmatprep.subr.mxu1 %v7116_v6  ;;  %v1302_v11 = vmul.f32 %v5332_v10, %v5324_v55  ;;  %v5025_v55 = vpack.c.bf16 %v2021_v54, %v2020_v53 }
 0x39a   : > { %4791 = vmatmul.mubr.msk.f32.vlgmr.msra.gmra.mrb[4].mxu1 %vm1054_vm2, %v1302_v11 }
 0x39b   : > { %v5334_v13 = vpop.eup %5333  ;;  %4799 = vmatpush3.msra.mxu1 %v1476_v12  ;;  %4800 = vmatprep.mubr.msk.f32.mxu1 %vm7123_vm0, %v7116_v6 }
 0x39c   : > { %v1474_v14 = vmul.f32 %v5334_v13, %v5326_v57  ;;  %4808 = vmatprep.subr.mxu1 %v7116_v6 }
 0x39e   : > { %4801 = vmatmul.mubr.msk.f32.vlgmr.msra.gmra.mrb[6].mxu1 %vm1054_vm2, %v1474_v14 }
 0x39f   : > { %4810 = vmatprep.mubr.msk.f32.mxu1 %vm7123_vm0, %v7116_v6 }
 0x3c1   : > { %v1643_v15 = vpop.xlane.xlu1 %1642 }
 0x3c2   : > { %5335 = vrcp.f32 %v1643_v15 }
 0x3c5   : > { %v1647_v16 = vpop.permute.xlu1 %1646 }
 0x3c6   : > { %4809 = vmatpush3.msra.mxu1 %v1647_v16 }
 0x3c7   : > { %5016 = vmatprep.subr.bf16.mxu1 %v7114_v3 }
 0x3cc   : > { %v5336_v17 = vpop.eup %5335 }
 0x3cd   : > { %v1645_v18 = vmul.f32 %v5336_v17, %v5328_v62  ;;  %v4452_v62 = vld [vmem:[%s7187_s3] ss:$0 sm:$0xff]  ;;  %s862_s3 = scalar_lea.vmem %s7192_s27, %s5672_s8  ;;  %s5458_s27 = smov 48  }
 0x3cf   : > { %4811 = vmatmul.mubr.msk.f32.vlgmr.msra.gmra.mrb[8].mxu1 %vm1054_vm2, %v1645_v18  ;;  %v7129_v18 = vmov 2  }
 0x3d0   : > { %4832 = vmatprep.mubr.msk.f32.mxu1 %vm7123_vm0, %v7116_v6  ;;  %5018 = vmatpush3.bf16.msra.mxu1 %v5017_v50  ;;  %v1937_v50 = vld [vmem:[%s7074_s14 + $0x8] sm:$0xff] }
 0x3d1   : > { %5019 = vmatprep.subr.bf16.mxu1 %v7114_v3  ;;  %5215 = vset.pattern.permute.xlu0 %v7129_v18 }
 0x469   : > { %v1209_v19 = vpop.f32.mrb[2].mxu1 }
 0x46a   : > { %1213 = vst.msk [vmem:[#allocation2] sm:$0xff] %vm1054_vm2, %v1209_v19  ;;  %v4782_v20 = vpop.f32.mrb[3].mxu1  ;;  %v4453_v19 = vld [vmem:[%s7073_s13] ss:$0 sm:$0xff] }
 0x46d   : > { %v1376_v21 = vpop.f32.mrb[4].mxu1 }
 0x46e   : > { %1381 = vrot.lane.b32.xlu0 %v1376_v21, %s5421_s11  ;;  %v4792_v22 = vpop.f32.mrb[5].mxu1 }
 0x471   : > { %v1547_v23 = vpop.f32.mrb[6].mxu1 }
 0x472   : > { %1552 = vrot.lane.b32.xlu1 %v1547_v23, %s7109_s2  ;;  %v4802_v24 = vpop.f32.mrb[7].mxu1 }
 0x4a2   : > { %v1718_v31 = vpop.f32.mrb[8].mxu1 }
 0x4a3   : > { %1723 = vrot.lane.b32.xlu0 %v1718_v31, %s5423_s7  ;;  %v4812_v32 = vpop.f32.mrb[9].mxu1  ;;  %s5109_s7 = smul.u32 80, %s5668_s29  ;;  %s7292_s29 = sld [smem:[#allocation55_spill]] }
 0x4e0   : > { %v1382_v33 = vpop.permute.xlu0 %1381 }
 0x4e1   : > { %1385 = vst.msk [vmem:[#allocation2] sm:$0xff] %vm1384_vm3, %v1382_v33 }
 0x4e4   : > { %v1553_v34 = vpop.permute.xlu1 %1552 }
 0x4e5   : > { %1556 = vst.msk [vmem:[#allocation2] sm:$0xff] %vm1555_vm4, %v1553_v34 }
 0x515   : > { %v1724_v35 = vpop.permute.xlu0 %1723 }
 0x516   : > { %1727 = vst.msk [vmem:[#allocation2] sm:$0xff] %vm1726_vm5, %v1724_v35 }
 0x51d   : > { %v1728_v36 = vld [vmem:[#allocation2] sm:$0xff] }
 0x51e   : > { %4822 = vmatmul.mubr.msk.f32.vlgmr.msra.gmra.mrb[10].mxu0 %vm7118_vm1, %v1728_v36 }
 0x51f   : > { %4839 = vmatprep.mubr.msk.f32.mxu0 %vm7123_vm0, %v7116_v6 }
 0x5f1   : > { %v1809_v38 = vpop.f32.mrb[10].mxu0 }
 0x5f2   : > { %v1810_v39 = vadd.f32 %v4449_v37, %v1809_v38  ;;  %v4823_v40 = vpop.f32.mrb[11].mxu0 }
 0x5f3   : > { %v5876_v40 = vld [vmem:[%s7077_s17] sm:$0xff] }
 0x5f4   : > { %v1813_v41 = vadd.f32 %v1810_v39, %v5682_v8  ;;  %v1847_v8 = vld [vmem:[%s7185_s12 + $0x10] sm:$0xff]  ;;  %s867_s12 = scalar_lea.vmem %s7188_s5, %s5109_s7  ;;  %s7190_s7 = smov 112  }
 0x5f5   : > { %v5020_v52 = vpack.c.bf16 %v1848_v51, %v1847_v8  ;;  %v871_v7 = vld [vmem:[%s867_s12] sm:$0xff]  ;;  %v872_v10 = vld [vmem:[%s867_s12 + $0x8] sm:$0xff]  ;;  %v873_v11 = vld [vmem:[%s867_s12 + $0x10] sm:$0xff]  ;;  %v5023_v8 = vpack.c.bf16 %v1937_v50, %v1936_v49 }
 0x5f6   : > { %v1816_v42 = vsel %vm7118_vm1, %v1813_v41, 0.0  ;;  %v874_v12 = vld [vmem:[%s867_s12 + $0x18] sm:$0xff]  ;;  %v875_v13 = vld [vmem:[%s867_s12 + $0x20] sm:$0xff]  ;;  %v877_v14 = vld [vmem:[%s867_s12 + $0x30] sm:$0xff] }
 0x5f7   : > { %1817 = vadd.xlane.f32.xlu1 %v1816_v42  ;;  %5021 = vmatpush3.bf16.msra.mxu1 %v5020_v52  ;;  %v878_v15 = vld [vmem:[%s867_s12 + $0x38] sm:$0xff]  ;;  %v879_v16 = vld [vmem:[%s867_s12 + $0x40] sm:$0xff]  ;;  %v880_v17 = vld [vmem:[%s867_s12 + $0x48] sm:$0xff] }
 0x5f8   : > { %5026 = vmatprep.subr.bf16.mxu1 %v5025_v55  ;;  %5024 = vmatpush3.bf16.msra.mxu0 %v5023_v8 }
 0x5f9   : > { %4865 = vmatprep.subr.mxu0 %v5876_v40 }
 0x684   : > { %v1818_v43 = vpop.xlane.xlu1 %1817 }
 0x685   : > { %v1820_v44 = vmul.f32 0.03125, %v1818_v43 }
 0x687   : > { %v1821_v45 = vsub.f32 %v1813_v41, %v1820_v44 }
 0x689   : > { %v1822_v46 = vmul.f32 %v1821_v45, %v1821_v45 }
 0x68b   : > { %v1823_v47 = vsel %vm7118_vm1, %v1822_v46, 0.0  ;;  %v870_v46 = vld [vmem:[%s862_s3] sm:$0xff] }
 0x68c   : > { %1824 = vadd.xlane.f32.xlu0 %v1823_v47  ;;  %v3359_v47 = vmul.f32 4.0, %v870_v46 }
 0x719   : > { %v1825_v56 = vpop.xlane.xlu0 %1824 }
 0x71a   : > { %v1826_v57 = vmul.f32 0.03125, %v1825_v56 }
 0x71c   : > { %v1827_v58 = vadd.f32 1e-05, %v1826_v57 }
 0x71e   : > { %5337 = vrsqrt.f32 %v1827_v58 }
 0x728   : > { %v5338_v59 = vpop.eup %5337 }
 0x729   : > { %v1829_v61 = vmul.f32 %v5338_v59, %v1821_v45 }
 0x72b   : > { %v1836_v63 = vmul.f32 %v4451_v60, %v1829_v61  ;;  %v2178_v61 = vld [vmem:[%s7077_s17 + $0x10] sm:$0xff] }
 0x72d   : > { %v5828_v2 = vadd.f32 %v4452_v62, %v1836_v63 }
 0x72f   : > { %7189 = vst [vmem:[#allocation15_spill] sm:$0xff] %v5828_v2  ;;  %v1844_v4 = vadd.f32 %v5828_v2, %v5684_v9  ;;  %v876_v9 = vld [vmem:[%s867_s12 + $0x28] sm:$0xff]  ;;  %s7293_s12 = sld [smem:[#allocation56_spill]] }
 0x731   : > { %4833 = vmatmul.mubr.msk.f32.vlgmr.msra.gmra.mrb[10].mxu1 %vm7118_vm1, %v1844_v4 }
 0x732   : > { %5028 = vmatpush3.bf16.msra.mxu1 %v5025_v55  ;;  %4850 = vmatprep.mubr.msk.f32.mxu1 %vm7118_vm1, %v871_v7  ;;  %v2832_v7 = vmul.f32 8.0, %v870_v46 }
 0x733   : > { %5030 = vmatprep.subr.bf16.mxu1 %v5029_v5 }
 0x736   : > { %5032 = vmatpush3.bf16.msra.mxu1 %v5029_v5 }
 0x737   : > { %5107 = vmatprep.subr.mxu1 %v5876_v40 }
 0x739   : > { %4851 = vmatmul.mubr.msk.f32.vlgmr.msra.gmra.mrb[12].mxu1 %vm7118_vm1, %v872_v10 }
 0x73a   : > { %4853 = vmatprep.mubr.msk.f32.mxu1 %vm7118_vm1, %v873_v11  ;;  %5108 = vmatpush3.msra.mxu1 %v5876_v40 }
 0x73b   : > { %4899 = vmatprep.subr.mxu1 %v2178_v61 }
 0x73d   : > { %4854 = vmatmul.mubr.msk.f32.gmra.mrb[14].mxu1 %vm7118_vm1, %v874_v12 }
 0x73e   : > { %4856 = vmatprep.mubr.msk.f32.mxu1 %vm7118_vm1, %v875_v13 }
 0x741   : > { %4857 = vmatmul.mubr.msk.f32.gmra.mrb[16].mxu1 %vm7118_vm1, %v876_v9 }
 0x742   : > { %4859 = vmatprep.mubr.msk.f32.mxu1 %vm7118_vm1, %v877_v14  ;;  %v7119_v14 = vmov 1  }
 0x745   : > { %4860 = vmatmul.mubr.msk.f32.gmra.mrb[18].mxu1 %vm7118_vm1, %v878_v15 }
 0x746   : > { %4862 = vmatprep.mubr.msk.f32.mxu1 %vm7118_vm1, %v879_v16  ;;  %v7127_v16 = vmov 3  }
 0x749   : > { %4863 = vmatmul.mubr.msk.f32.gmra.mrb[20].mxu1 %vm7118_vm1, %v880_v17 }
 0x804   : > { %v1925_v20 = vpop.f32.mrb[10].mxu1 }
 0x805   : > { %v5847_v21 = vadd.f32 %v4453_v19, %v1925_v20  ;;  %v4834_v22 = vpop.f32.mrb[11].mxu1 }
 0x807   : > { %v1930_v23 = vsel %vm1929_vm6, %v5847_v21, -inf }
 0x808   : > { %1931 = vmax.xlane.f32.xlu0 %v1930_v23 }
 0x80c   : > { %v4852_v24 = vpop.f32.mrb[12].mxu1 }
 0x80d   : > { %v2127_v25 = vpop.f32.mrb[13].mxu1  ;;  %v5888_v42 = vadd.f32 %v4852_v24, %v4456_v27 }
 0x80e   : > { %v5857_v34 = vadd.f32 %v4456_v27, %v2127_v25 }
 0x810   : > { %v4855_v26 = vpop.f32.mrb[14].mxu1 }
 0x811   : > { %v2137_v28 = vpop.f32.mrb[15].mxu1  ;;  %v5861_v36 = vadd.f32 %v4855_v26, %v4456_v27 }
 0x812   : > { %v5853_v29 = vadd.f32 %v4456_v27, %v2137_v28  ;;  %v2177_v28 = vld [vmem:[%s7077_s17 + $0x8] sm:$0xff] }
 0x814   : > { %v4858_v30 = vpop.f32.mrb[16].mxu1  ;;  %4870 = vmatprep.mubr.msk.f32.mxu1 %vm1054_vm2, %v5853_v29 }
 0x815   : > { %v2147_v31 = vpop.f32.mrb[17].mxu1  ;;  %v5865_v37 = vadd.f32 %v4858_v30, %v4456_v27  ;;  %4871 = vmatmul.mubr.msk.f32.vlgmr.msra.gmra.mrb[22].mxu1 %vm1054_vm2, %v5861_v36  ;;  %v2179_v30 = vld [vmem:[%s7077_s17 + $0x18] sm:$0xff] }
 0x816   : > { %v5871_v39 = vadd.f32 %v4456_v27, %v2147_v31  ;;  %4900 = vmatpush3.msra.mxu1 %v2178_v61 }
 0x818   : > { %v4861_v32 = vpop.f32.mrb[18].mxu1  ;;  %4873 = vmatprep.mubr.msk.f32.mxu1 %vm1054_vm2, %v5871_v39 }
 0x819   : > { %v2157_v33 = vpop.f32.mrb[19].mxu1  ;;  %v5869_v38 = vadd.f32 %v4861_v32, %v4456_v27  ;;  %4874 = vmatmul.mubr.msk.f32.gmra.mrb[24].mxu1 %vm1054_vm2, %v5865_v37 }
 0x81a   : > { %v2158_v43 = vadd.f32 %v4456_v27, %v2157_v33 }
 0x81c   : > { %v4864_v35 = vpop.f32.mrb[20].mxu1  ;;  %4876 = vmatprep.mubr.msk.f32.mxu1 %vm1054_vm2, %v2158_v43 }
 0x81d   : > { %v5880_v41 = vadd.f32 %v4864_v35, %v4456_v27  ;;  %v2167_v44 = vpop.f32.mrb[21].mxu1  ;;  %4877 = vmatmul.mubr.msk.f32.gmra.mrb[26].mxu1 %vm1054_vm2, %v5869_v38 }
 0x81e   : > { %2335 = vrot.lane.b32.xlu0 %v5857_v34, %s7182_s28  ;;  %v5897_v45 = vadd.f32 %v4456_v27, %v2167_v44  ;;  %v5428_v44 = vmov 18  }
 0x820   : > { %4879 = vmatprep.mubr.msk.f32.mxu1 %vm1054_vm2, %v5897_v45 }
 0x821   : > { %4880 = vmatmul.mubr.msk.f32.gmra.mrb[28].mxu1 %vm1054_vm2, %v5880_v41 }
 0x822   : > { %2341 = vrot.lane.b32.xlu0 %v5861_v36, %s7182_s28 }
 0x826   : > { %2345 = vrot.lane.b32.xlu0 %v5865_v37, %s7182_s28 }
 0x82a   : > { %2349 = vrot.lane.b32.xlu0 %v5869_v38, %s7182_s28 }
 0x82e   : > { %2353 = vrot.lane.b32.xlu0 %v5880_v41, %s7182_s28 }
 0x832   : > { %2502 = vrot.lane.b32.xlu0 %v5888_v42, %s7190_s7 }
 0x836   : > { %2506 = vrot.lane.b32.xlu0 %v5861_v36, %s7190_s7 }
 0x83a   : > { %2510 = vrot.lane.b32.xlu0 %v5865_v37, %s7190_s7 }
 0x83e   : > { %2667 = vrot.lane.b32.xlu0 %v5888_v42, %s7191_s6 }
 0x842   : > { %2512 = vrot.lane.b32.xlu0 %v2158_v43, %s7190_s7 }
 0x846   : > { %2669 = vrot.lane.b32.xlu0 %v5853_v29, %s7191_s6 }
 0x84a   : > { %3362 = vperm.xlu0 %5215, %v3359_v47  }
 0x84e   : > { %2518 = vrot.lane.b32.xlu0 %v5880_v41, %s7190_s7 }
 0x852   : > { %2673 = vrot.lane.b32.xlu0 %v5871_v39, %s7191_s6 }
 0x856   : > { %2677 = vrot.lane.b32.xlu0 %v2158_v43, %s7191_s6 }
 0x85a   : > { %2681 = vrot.lane.b32.xlu0 %v5897_v45, %s7191_s6 }
 0x895   : > { %v1932_v51 = vpop.xlane.xlu0 %1931 }
 0x896   : > { %v1933_v52 = vsub.f32 %v5847_v21, %v1932_v51 }
 0x898   : > { %v1934_v53 = vmul.f32 1.442695, %v1933_v52 }
 0x899   : > { %v5934_v54 = vpop.permute.xlu0 %2335 }
 0x89a   : > { %5339 = vpow2.f32 %v1934_v53 }
 0x89d   : > { %v5936_v55 = vpop.permute.xlu0 %2341 }
 0x8a1   : > { %v5938_v56 = vpop.permute.xlu0 %2345 }
 0x8a4   : > { %v5940_v57 = vpop.eup %5339 }
 0x8a5   : > { %1939 = vrot.lane.b32.xlu1 %v5940_v57, %s7193_s25  ;;  %v5944_v58 = vpop.permute.xlu0 %2349 }
 0x8a9   : > { %2337 = vrot.lane.b32.xlu1 %v5888_v42, %s7182_s28  ;;  %v5948_v59 = vpop.permute.xlu0 %2353 }
 0x8ad   : > { %2339 = vrot.lane.b32.xlu1 %v5853_v29, %s7182_s28  ;;  %v5952_v60 = vpop.permute.xlu0 %2502 }
 0x8b1   : > { %2343 = vrot.lane.b32.xlu1 %v5871_v39, %s7182_s28  ;;  %v5959_v62 = vpop.permute.xlu0 %2506 }
 0x8b5   : > { %2347 = vrot.lane.b32.xlu1 %v2158_v43, %s7182_s28  ;;  %v5962_v63 = vpop.permute.xlu0 %2510 }
 0x8b9   : > { %2351 = vrot.lane.b32.xlu1 %v5897_v45, %s7182_s28  ;;  %v5966_v0 = vpop.permute.xlu0 %2667  ;;  %s4585_s28 = sshll.u32 %s5621_s9, 7  ;;  %s5459_s9 = smov [#allocation5]  }
 0x8bd   : > { %2500 = vrot.lane.b32.xlu1 %v5857_v34, %s7190_s7  ;;  %v5970_v1 = vpop.permute.xlu0 %2512 }
 0x8c1   : > { %2504 = vrot.lane.b32.xlu1 %v5853_v29, %s7190_s7  ;;  %v5974_v4 = vpop.permute.xlu0 %2669 }
 0x8c5   : > { %2508 = vrot.lane.b32.xlu1 %v5871_v39, %s7190_s7 }
 0x8c9   : > { %2665 = vrot.lane.b32.xlu1 %v5857_v34, %s7191_s6  ;;  %v3363_v5 = vpop.permute.xlu0 %3362 }
 0x8ca   : > { %v3365_v10 = vadd.f32 %v3363_v5, %v5847_v21 }
 0x8cc   : > { %v5981_v11 = vadd.f32 -0.5, %v3365_v10 }
 0x8cd   : > { %2835 = vperm.xlu1 %5213, %v2832_v7   ;;  %v2519_v46 = vpop.permute.xlu0 %2518 }
 0x8ce   : > { %v5984_v12 = vfloor.f32 %v5981_v11 }
 0x8d0   : > { %v5987_v13 = vadd.f32 1.0, %v5984_v12  ;;  %v3377_v9 = vsub.f32 %v5981_v11, %v5984_v12  ;;  %vm3389_vm3 = vcmp.le.f32.partialorder %v5984_v12, 3.0 }
 0x8d1   : > { %2514 = vrot.lane.b32.xlu1 %v5869_v38, %s7190_s7 }
 0x8d2   : > { %5214 = vset.pattern.permute.xlu1 %v7119_v14  ;;  %v3417_v15 = vsub.f32 %v5981_v11, %v5987_v13 }
 0x8d5   : > { %2841 = vperm.xlu1 %5214, %v2832_v7   ;;  %v3426_v7 = vmax.f32 %v5987_v13, 0.0 }
 0x8d9   : > { %2671 = vrot.lane.b32.xlu1 %v5861_v36, %s7191_s6 }
 0x8da   : > { %5216 = vset.pattern.permute.xlu1 %v7127_v16  ;;  %v3418_v16 = vand.u32 2147483647, %v3417_v15 }
 0x8dc   : > { %v3419_v11 = vsub.f32 1.0, %v3418_v16 }
 0x8dd   : > { %2516 = vrot.lane.b32.xlu1 %v5897_v45, %s7190_s7  ;;  %v5429_v45 = vmov 20  }
 0x8de   : > { %5219 = vset.pattern.permute.xlu0 %v5429_v45 }
 0x8e1   : > { %3368 = vperm.xlu1 %5216, %v3359_v47  }
 0x8e5   : > { %2675 = vrot.lane.b32.xlu1 %v5865_v37, %s7191_s6 }
 0x8e6   : > { %5217 = vset.pattern.permute.xlu1 %v5428_v44 }
 0x8e8   : > { %v4872_v17 = vpop.f32.mrb[22].mxu1 }
 0x8e9   : > { %2679 = vrot.lane.b32.xlu1 %v5869_v38, %s7191_s6  ;;  %2328 = vst.msk [vmem:[#allocation3 + $0x18] sm:$0xff] %vm7118_vm1, %v4872_v17  ;;  %v2286_v19 = vpop.f32.mrb[23].mxu1 }
 0x8ea   : > { %2327 = vst.msk [vmem:[#allocation3 + $0x10] sm:$0xff] %vm7118_vm1, %v2286_v19 }
 0x8ec   : > { %v4875_v20 = vpop.f32.mrb[24].mxu1 }
 0x8ed   : > { %2683 = vrot.lane.b32.xlu1 %v5880_v41, %s7191_s6  ;;  %2330 = vst.msk [vmem:[#allocation3 + $0x28] sm:$0xff] %vm7118_vm1, %v4875_v20  ;;  %v2296_v22 = vpop.f32.mrb[25].mxu1  ;;  %s7194_s6 = smov 16  }
 0x8ee   : > { %2329 = vst.msk [vmem:[#allocation3 + $0x20] sm:$0xff] %vm7118_vm1, %v2296_v22  ;;  %v3427_v22 = vmin.f32 %v3426_v7, 3.0 }
 0x8f0   : > { %v4878_v23 = vpop.f32.mrb[26].mxu1 }
 0x8f1   : > { %2332 = vst.msk [vmem:[#allocation3 + $0x38] sm:$0xff] %vm7118_vm1, %v4878_v23  ;;  %v2306_v24 = vpop.f32.mrb[27].mxu1 }
 0x8f2   : > { %2331 = vst.msk [vmem:[#allocation3 + $0x30] sm:$0xff] %vm7118_vm1, %v2306_v24 }
 0x8f4   : > { %v4881_v25 = vpop.f32.mrb[28].mxu1 }
 0x8f5   : > { %2334 = vst.msk [vmem:[#allocation3 + $0x48] sm:$0xff] %vm7118_vm1, %v4881_v25  ;;  %v2316_v26 = vpop.f32.mrb[29].mxu1 }
 0x8f6   : > { %2333 = vst.msk [vmem:[#allocation3 + $0x40] sm:$0xff] %vm7118_vm1, %v2316_v26 }
 0x917   : > { %v1940_v27 = vpop.permute.xlu1 %1939 }
 0x918   : > { %4840 = vmatmul.mubr.msk.f32.vlgmr.msra.gmra.mrb[12].mxu0 %vm7126_vm7, %v1940_v27 }
 0x919   : > { %4867 = vmatprep.mubr.msk.f32.mxu0 %vm1054_vm2, %v5857_v34  ;;  %4866 = vmatpush3.msra.mxu0 %v5876_v40 }
 0x91a   : > { %4882 = vmatprep.subr.mxu0 %v2177_v28 }
 0x91b   : > { %v2338_v29 = vpop.permute.xlu1 %2337 }
 0x91c   : > { %4868 = vmatmul.mubr.msk.f32.vlgmr.msra.gmra.mrb[14].mxu0 %vm1054_vm2, %v5888_v42 }
 0x91d   : > { %4884 = vmatprep.mubr.msk.f32.mxu0 %vm1054_vm2, %v5934_v54  ;;  %4883 = vmatpush3.msra.mxu0 %v2177_v28 }
 0x91e   : > { %4916 = vmatprep.subr.mxu0 %v2179_v30 }
 0x91f   : > { %v2340_v31 = vpop.permute.xlu1 %2339 }
 0x920   : > { %4885 = vmatmul.mubr.msk.f32.vlgmr.msra.gmra.mrb[16].mxu0 %vm1054_vm2, %v2338_v29 }
 0x921   : > { %4887 = vmatprep.mubr.msk.f32.mxu0 %vm1054_vm2, %v2340_v31  ;;  %4917 = vmatpush3.msra.mxu0 %v2179_v30 }
 0x922   : > { %5065 = vmatprep.subr.bf16.mxu0 %v7114_v3 }
 0x923   : > { %v2344_v32 = vpop.permute.xlu1 %2343 }
 0x924   : > { %4888 = vmatmul.mubr.msk.f32.gmra.mrb[18].mxu0 %vm1054_vm2, %v5936_v55 }
 0x925   : > { %4890 = vmatprep.mubr.msk.f32.mxu0 %vm1054_vm2, %v2344_v32 }
 0x927   : > { %v2348_v33 = vpop.permute.xlu1 %2347 }
 0x928   : > { %4891 = vmatmul.mubr.msk.f32.gmra.mrb[20].mxu0 %vm1054_vm2, %v5938_v56 }
 0x929   : > { %4893 = vmatprep.mubr.msk.f32.mxu0 %vm1054_vm2, %v2348_v33 }
 0x92b   : > { %v2352_v34 = vpop.permute.xlu1 %2351 }
 0x92c   : > { %4894 = vmatmul.mubr.msk.f32.gmra.mrb[22].mxu0 %vm1054_vm2, %v5944_v58  ;;  %v3406_v58 = vmax.f32 %v5984_v12, 0.0 }
 0x92d   : > { %4896 = vmatprep.mubr.msk.f32.mxu0 %vm1054_vm2, %v2352_v34 }
 0x92f   : > { %v2501_v35 = vpop.permute.xlu1 %2500 }
 0x930   : > { %4897 = vmatmul.mubr.msk.f32.gmra.mrb[24].mxu0 %vm1054_vm2, %v5948_v59  ;;  %4901 = vmatprep.mubr.msk.f32.mxu1 %vm1054_vm2, %v2501_v35 }
 0x931   : > { %4902 = vmatmul.mubr.msk.f32.vlgmr.msra.gmra.mrb[30].mxu1 %vm1054_vm2, %v5952_v60  ;;  %v2674_v60 = vpop.permute.xlu0 %2673 }
 0x933   : > { %v2505_v36 = vpop.permute.xlu1 %2504 }
 0x934   : > { %4904 = vmatprep.mubr.msk.f32.mxu1 %vm1054_vm2, %v2505_v36 }
 0x935   : > { %4905 = vmatmul.mubr.msk.f32.gmra.mrb[32].mxu1 %vm1054_vm2, %v5959_v62  ;;  %v3407_v62 = vmin.f32 %v3406_v58, 3.0  ;;  %v2678_v24 = vpop.permute.xlu0 %2677 }
 0x937   : > { %v2509_v37 = vpop.permute.xlu1 %2508 }
 0x938   : > { %4907 = vmatprep.mubr.msk.f32.mxu1 %vm1054_vm2, %v2509_v37 }
 0x939   : > { %4908 = vmatmul.mubr.msk.f32.gmra.mrb[34].mxu1 %vm1054_vm2, %v5962_v63  ;;  %v2682_v33 = vpop.permute.xlu0 %2681 }
 0x93a   : > { %4910 = vmatprep.mubr.msk.f32.mxu1 %vm1054_vm2, %v5970_v1 }
 0x93b   : > { %v2666_v38 = vpop.permute.xlu1 %2665 }
 0x93c   : > { %4918 = vmatprep.mubr.msk.f32.mxu0 %vm1054_vm2, %v2666_v38 }
 0x93d   : > { %4919 = vmatmul.mubr.msk.f32.vlgmr.msra.gmra.mrb[26].mxu0 %vm1054_vm2, %v5966_v0 }
 0x93e   : > { %4921 = vmatprep.mubr.msk.f32.mxu0 %vm1054_vm2, %v5974_v4 }
 0x94c   : > { %v2836_v39 = vpop.permute.xlu1 %2835 }
 0x94d   : > { %v2838_v40 = vadd.f32 %v2836_v39, %v5847_v21 }
 0x94f   : > { %v6060_v41 = vadd.f32 -0.5, %v2838_v40 }
 0x950   : > { %v2515_v42 = vpop.permute.xlu1 %2514 }
 0x951   : > { %v6063_v43 = vfloor.f32 %v6060_v41  ;;  %4911 = vmatmul.mubr.msk.f32.gmra.mrb[36].mxu1 %vm1054_vm2, %v2515_v42 }
 0x953   : > { %v2879_v47 = vmax.f32 %v6063_v43, 0.0  ;;  %v6070_v49 = vadd.f32 1.0, %v6063_v43  ;;  %v2850_v50 = vsub.f32 %v6060_v41, %v6063_v43  ;;  %vm2861_vm4 = vcmp.ge.f32.partialorder %v6063_v43, 0.0 }
 0x954   : > { %v2842_v8 = vpop.permute.xlu1 %2841  ;;  %vm2862_vm5 = vcmp.le.f32.partialorder %v6063_v43, 7.0 }
 0x955   : > { %v2844_v51 = vadd.f32 %v2842_v8, %v5847_v21  ;;  %v2880_v52 = vmin.f32 %v2879_v47, 7.0  ;;  %v2903_v53 = vmax.f32 %v6070_v49, 0.0  ;;  %v2894_v54 = vsub.f32 %v6060_v41, %v6070_v49 }
 0x956   : > { %vm2898_vm6 = vcmp.ge.f32.partialorder %v6070_v49, 0.0  ;;  %v3378_v41 = vand.u32 2147483647, %v3377_v9 }
 0x957   : > { %v4508_v55 = vadd.f32 -0.5, %v2844_v51  ;;  %2882 = vrot.lane.b32.xlu1 %v2880_v52, %s7194_s6  ;;  %v2904_v56 = vmin.f32 %v2903_v53, 7.0 }
 0x958   : > { %v2672_v59 = vpop.permute.xlu1 %2671 }
 0x959   : > { %v6080_v61 = vfloor.f32 %v4508_v55  ;;  %2906 = vrot.lane.b32.xlu0 %v2904_v56, %s7194_s6  ;;  %4922 = vmatmul.mubr.msk.f32.gmra.mrb[28].mxu0 %vm1054_vm2, %v2672_v59 }
 0x95a   : > { %4924 = vmatprep.mubr.msk.f32.mxu0 %vm1054_vm2, %v2674_v60 }
 0x95b   : > { %v2853_v63 = vsub.f32 %v4508_v55, %v6080_v61  ;;  %vm2864_vm8 = vcmp.ge.f32.partialorder %v6080_v61, 0.0  ;;  %v6090_v4 = vadd.f32 1.0, %v6080_v61  ;;  %vm2870_vm10 = vcmp.le.f32.partialorder %v6080_v61, 7.0 }
 0x95c   : > { %v2517_v0 = vpop.permute.xlu1 %2516  ;;  %v2865_v17 = vsel %vm2864_vm8, 1, %v7121_v48  ;;  %v2871_v30 = vsel %vm2870_vm10, 1, %v7121_v48  ;;  %v2876_v51 = vmax.f32 %v6080_v61, 0.0  ;;  %vm2899_vm8 = vcmp.le.f32.partialorder %v6070_v49, 7.0 }
 0x95d   : > { %4913 = vmatprep.mubr.msk.f32.mxu1 %vm1054_vm2, %v2517_v0  ;;  %3409 = vrot.lane.b32.xlu0 %v3407_v62, %s7194_s6  ;;  %v2854_v1 = vand.u32 2147483647, %v2853_v63  ;;  %vm2922_vm9 = vcmp.ge.f32.partialorder %v6090_v4, 0.0  ;;  %v2914_v23 = vsub.f32 %v4508_v55, %v6090_v4  ;;  %vm2928_vm11 = vcmp.le.f32.partialorder %v6090_v4, 7.0 }
 0x95e   : > { %4914 = vmatmul.mubr.msk.f32.gmra.mrb[38].mxu1 %vm1054_vm2, %v2519_v46  ;;  %v2923_v26 = vsel %vm2922_vm9, 1, %v7121_v48  ;;  %v2929_v31 = vsel %vm2928_vm11, 1, %v7121_v48  ;;  %v2877_v52 = vmin.f32 %v2876_v51, 7.0  ;;  %v2934_v53 = vmax.f32 %v6090_v4, 0.0 }
 0x95f   : > { %v2855_v5 = vsub.f32 1.0, %v2854_v1  ;;  %vm3421_vm9 = vcmp.ge.f32.partialorder %v5987_v13, 0.0  ;;  %vm3422_vm10 = vcmp.le.f32.partialorder %v5987_v13, 3.0  ;;  %v7142_v13 = vmov 12  }
 0x960   : > { %v3369_v10 = vpop.permute.xlu1 %3368  ;;  %v2878_v55 = vmul.f32 8.0, %v2877_v52  ;;  %v2935_v58 = vmin.f32 %v2934_v53, 7.0  ;;  %v5433_v52 = vmov 24  }
 0x961   : > { %v3371_v19 = vadd.f32 %v3369_v10, %v5847_v21  ;;  %2857 = vrot.lane.b32.xlu1 %v2855_v5, %s7190_s7  ;;  %2866 = vrot.lane.b32.xlu0 %v2865_v17, %s7190_s7  ;;  %v2915_v21 = vand.u32 2147483647, %v2914_v23 }
 0x962   : > { %v2936_v0 = vmul.f32 8.0, %v2935_v58 }
 0x963   : > { %v4542_v20 = vadd.f32 -0.5, %v3371_v19  ;;  %v2916_v34 = vsub.f32 1.0, %v2915_v21 }
 0x964   : > { %v2676_v25 = vpop.permute.xlu1 %2675 }
 0x965   : > { %v6101_v27 = vfloor.f32 %v4542_v20  ;;  %3429 = vrot.lane.b32.xlu1 %v3427_v22, %s7194_s6  ;;  %2924 = vrot.lane.b32.xlu0 %v2923_v26, %s7190_s7 }
 0x966   : > { %4925 = vmatmul.mubr.msk.f32.gmra.mrb[30].mxu0 %vm1054_vm2, %v2676_v25  ;;  %v5430_v25 = vmov 22  }
 0x967   : > { %4927 = vmatprep.mubr.msk.f32.mxu0 %vm1054_vm2, %v2678_v24  ;;  %v3380_v28 = vsub.f32 %v4542_v20, %v6101_v27  ;;  %vm3397_vm12 = vcmp.le.f32.partialorder %v6101_v27, 3.0  ;;  %v6116_v32 = vadd.f32 1.0, %v6101_v27  ;;  %vm3391_vm14 = vcmp.ge.f32.partialorder %v6101_v27, 0.0 }
 0x968   : > { %v2680_v29 = vpop.permute.xlu1 %2679  ;;  %v3398_v37 = vsel %vm3397_vm12, 1, %v7121_v48  ;;  %v3392_v46 = vsel %vm3391_vm14, 1, %v7121_v48  ;;  %v3403_v17 = vmax.f32 %v6101_v27, 0.0  ;;  %vm2900_vm14 = vmand %vm2898_vm6, %vm2899_vm8 }
 0x969   : > { %2872 = vrot.lane.b32.xlu1 %v2871_v30, %s7190_s7  ;;  %2930 = vrot.lane.b32.xlu0 %v2929_v31, %s7190_s7  ;;  %v3381_v35 = vand.u32 2147483647, %v3380_v28  ;;  %vm3445_vm13 = vcmp.ge.f32.partialorder %v6116_v32, 0.0  ;;  %v3437_v39 = vsub.f32 %v4542_v20, %v6116_v32  ;;  %vm3451_vm15 = vcmp.le.f32.partialorder %v6116_v32, 3.0 }
 0x96a   : > { %4928 = vmatmul.mubr.msk.f32.gmra.mrb[32].mxu0 %vm1054_vm2, %v2680_v29  ;;  %v3446_v40 = vsel %vm3445_vm13, 1, %v7121_v48  ;;  %v3452_v8 = vsel %vm3451_vm15, 1, %v7121_v48  ;;  %v3404_v23 = vmin.f32 %v3403_v17, 3.0  ;;  %v3457_v24 = vmax.f32 %v6116_v32, 0.0  ;;  %vm2863_vm13 = vmand %vm2861_vm4, %vm2862_vm5 }
 0x96b   : > { %4930 = vmatprep.mubr.msk.f32.mxu0 %vm1054_vm2, %v2682_v33  ;;  %v3382_v38 = vsub.f32 1.0, %v3381_v35  ;;  %v3438_v42 = vand.u32 2147483647, %v3437_v39 }
 0x96c   : > { %v2684_v36 = vpop.permute.xlu1 %2683  ;;  %v3405_v27 = vmul.f32 4.0, %v3404_v23  ;;  %v3458_v21 = vmin.f32 %v3457_v24, 3.0  ;;  %v5436_v23 = vmov 30  }
 0x96d   : > { %2918 = vrot.lane.b32.xlu1 %v2916_v34, %s7190_s7  ;;  %3399 = vrot.lane.b32.xlu0 %v3398_v37, %s7190_s7  ;;  %v3439_v47 = vsub.f32 1.0, %v3438_v42 }
 0x96e   : > { %4931 = vmatmul.mubr.msk.f32.gmra.mrb[34].mxu0 %vm1054_vm2, %v2684_v36  ;;  %v3459_v31 = vmul.f32 4.0, %v3458_v21  ;;  %vm3388_vm2 = vcmp.ge.f32.partialorder %v5984_v12, 0.0 }
 0x96f   : > { %4949 = vmatprep.mubr.msk.f32.mxu0 %vm7123_vm0, %v7116_v6  ;;  %vm6382_vm12 = vmand %vm3388_vm2, %vm3389_vm3 }
 0x971   : > { %3384 = vrot.lane.b32.xlu1 %v3382_v38, %s7190_s7  ;;  %3447 = vrot.lane.b32.xlu0 %v3446_v40, %s7190_s7  ;;  %v5431_v38 = vmov 26  }
 0x975   : > { %3393 = vrot.lane.b32.xlu1 %v3392_v46, %s7190_s7  ;;  %v5432_v46 = vmov 28  }
 0x979   : > { %3441 = vrot.lane.b32.xlu1 %v3439_v47, %s7190_s7 }
 0x97d   : > { %3453 = vrot.lane.b32.xlu1 %v3452_v8, %s7190_s7 }
 0x9c9   : > { %v2883_v56 = vpop.permute.xlu1 %2882 }
 0x9ca   : > { %v2885_v62 = vadd.f32 %v2883_v56, %v2878_v55  ;;  %v2937_v7 = vadd.f32 %v2936_v0, %v2883_v56 }
 0x9cb   : > { %v2907_v59 = vpop.permute.xlu0 %2906 }
 0x9cc   : > { %v2909_v60 = vadd.f32 %v2907_v59, %v2878_v55  ;;  %v5110_v5 = vtrunc.f32 %v2885_v62  ;;  %v5114_v10 = vtrunc.f32 %v2937_v7  ;;  %v2944_v4 = vadd.f32 %v2936_v0, %v2907_v59 }
 0x9cd   : > { %v5435_v7 = vmov 19  }
 0x9ce   : > { %v5112_v63 = vtrunc.f32 %v2909_v60  ;;  %v6144_v61 = vcvt.f32.s32 %v5110_v5  ;;  %v6153_v20 = vcvt.f32.s32 %v5114_v10  ;;  %v5116_v22 = vtrunc.f32 %v2944_v4 }
 0x9d0   : > { %v6140_v1 = vcvt.f32.s32 %v5112_v63  ;;  %v6159_v26 = vcvt.f32.s32 %v5116_v22 }
 0x9d2   : > { %3166 = vperm.xlu0 %5219, %v6140_v1   ;;  %3063 = vperm.xlu1 %5217, %v6140_v1  }
 0x9d3   : > { %v6149_v19 = vpop.permute.xlu1 %2857 }
 0x9d6   : > { %5220 = vset.pattern.permute.xlu0 %v5428_v44  ;;  %5218 = vset.pattern.permute.xlu1 %v5429_v45  ;;  %v3410_v44 = vpop.permute.xlu0 %3409 }
 0x9d7   : > { %3051 = vperm.xlu0 %5220, %v6144_v61   ;;  %3154 = vperm.xlu1 %5218, %v6144_v61   ;;  %v3430_v28 = vpop.permute.xlu1 %3429  ;;  %v3412_v29 = vadd.f32 %v3410_v44, %v3405_v27  ;;  %v3460_v33 = vadd.f32 %v3459_v31, %v3410_v44 }
 0x9d8   : > { %v3432_v30 = vadd.f32 %v3430_v28, %v3405_v27  ;;  %v3467_v8 = vadd.f32 %v3459_v31, %v3430_v28 }
 0x9d9   : > { %v5118_v32 = vtrunc.f32 %v3412_v29  ;;  %v5122_v36 = vtrunc.f32 %v3460_v33 }
 0x9da   : > { %v5120_v34 = vtrunc.f32 %v3432_v30  ;;  %v5124_v55 = vtrunc.f32 %v3467_v8 }
 0x9db   : > { %3075 = vperm.xlu0 %5220, %v6153_v20   ;;  %5221 = vset.pattern.permute.xlu1 %v5430_v25  ;;  %v6167_v35 = vcvt.f32.s32 %v5118_v32  ;;  %v6175_v39 = vcvt.f32.s32 %v5122_v36  ;;  %v3888_v32 = vld [vmem:[#allocation3 + $0x10] sm:$0xff]  ;;  %v3889_v36 = vld [vmem:[#allocation3 + $0x18] sm:$0xff] }
 0x9dc   : > { %3256 = vperm.xlu1 %5221, %v6144_v61   ;;  %v6169_v37 = vcvt.f32.s32 %v5120_v34  ;;  %v6190_v59 = vcvt.f32.s32 %v5124_v55 }
 0x9df   : > { %3087 = vperm.xlu0 %5220, %v6159_v26  }
 0x9e0   : > { %3268 = vperm.xlu1 %5221, %v6140_v1  }
 0x9e3   : > { %5224 = vset.pattern.permute.xlu0 %v5430_v25 }
 0x9e4   : > { %5222 = vset.pattern.permute.xlu1 %v5429_v45  ;;  %3280 = vperm.xlu0 %5224, %v6153_v20  }
 0x9e5   : > { %3178 = vperm.xlu1 %5222, %v6153_v20  }
 0x9e8   : > { %5225 = vset.pattern.permute.xlu0 %v5431_v38 }
 0x9e9   : > { %5223 = vset.pattern.permute.xlu1 %v5431_v38  ;;  %3578 = vperm.xlu0 %5225, %v6167_v35  }
 0x9ea   : > { %3590 = vperm.xlu1 %5223, %v6169_v37  }
 0x9eb   : > { %v6177_v40 = vpop.f32.mrb[12].mxu0 }
 0x9ec   : > { %v4841_v42 = vpop.f32.mrb[13].mxu0  ;;  %5341 = vrcp.f32 %v6177_v40 }
 0x9ed   : > { %3602 = vperm.xlu0 %5225, %v6175_v39  }
 0x9ee   : > { %5226 = vset.pattern.permute.xlu1 %v5432_v46 }
 0x9ef   : > { %3680 = vperm.xlu1 %5226, %v6167_v35   ;;  %v4869_v47 = vpop.f32.mrb[14].mxu0 }
 0x9f0   : > { %2326 = vst.msk [vmem:[#allocation3 + $0x8] sm:$0xff] %vm7118_vm1, %v4869_v47  ;;  %v2276_v51 = vpop.f32.mrb[15].mxu0 }
 0x9f1   : > { %2325 = vst.msk [vmem:[#allocation3] sm:$0xff] %vm7118_vm1, %v2276_v51  ;;  %5229 = vset.pattern.permute.xlu0 %v5433_v52 }
 0x9f2   : > { %3485 = vperm.xlu0 %5229, %v6169_v37  }
 0x9f3   : > { %3692 = vperm.xlu1 %5226, %v6169_v37   ;;  %v4886_v53 = vpop.f32.mrb[16].mxu0 }
 0x9f4   : > { %2491 = vst.msk [vmem:[#allocation3 + $0x58] sm:$0xff] %vm7118_vm1, %v4886_v53  ;;  %v2441_v56 = vpop.f32.mrb[17].mxu0  ;;  %v5039_v53 = vpack.c.bf16 %v3889_v36, %v3888_v32 }
 0x9f5   : > { %2490 = vst.msk [vmem:[#allocation3 + $0x50] sm:$0xff] %vm7118_vm1, %v2441_v56  ;;  %v3890_v56 = vld [vmem:[#allocation3 + $0x20] sm:$0xff] }
 0x9f6   : > { %3498 = vperm.xlu0 %5229, %v6175_v39  }
 0x9f7   : > { %5227 = vset.pattern.permute.xlu1 %v5429_v45  ;;  %v4889_v58 = vpop.f32.mrb[18].mxu0  ;;  %v5434_v45 = vmov 23   ;;  %v3887_v28 = vld [vmem:[#allocation3 + $0x8] sm:$0xff] }
 0x9f8   : > { %2493 = vst.msk [vmem:[#allocation3 + $0x68] sm:$0xff] %vm7118_vm1, %v4889_v58  ;;  %3190 = vperm.xlu1 %5227, %v6159_v26   ;;  %v2451_v60 = vpop.f32.mrb[19].mxu0  ;;  %v3886_v21 = vld [vmem:[#allocation3] sm:$0xff]  ;;  %v3891_v58 = vld [vmem:[#allocation3 + $0x28] sm:$0xff] }
 0x9f9   : > { %2492 = vst.msk [vmem:[#allocation3 + $0x60] sm:$0xff] %vm7118_vm1, %v2451_v60 }
 0x9fa   : > { %3511 = vperm.xlu0 %5229, %v6190_v59  }
 0x9fb   : > { %v4892_v62 = vpop.f32.mrb[20].mxu0  ;;  %v3897_v36 = vld [vmem:[#allocation3 + $0x58] sm:$0xff] }
 0x9fc   : > { %2495 = vst.msk [vmem:[#allocation3 + $0x78] sm:$0xff] %vm7118_vm1, %v4892_v62  ;;  %5228 = vset.pattern.permute.xlu1 %v5433_v52  ;;  %v2461_v63 = vpop.f32.mrb[21].mxu0 }
 0x9fd   : > { %2494 = vst.msk [vmem:[#allocation3 + $0x70] sm:$0xff] %vm7118_vm1, %v2461_v63  ;;  %3472 = vperm.xlu1 %5228, %v6167_v35  }
 0x9fe   : > { %5237 = vset.pattern.permute.xlu0 %v5434_v45 }
 0x9ff   : > { %3304 = vperm.xlu0 %5237, %v6144_v61   ;;  %v4895_v0 = vpop.f32.mrb[22].mxu0 }
 0xa00   : > { %2497 = vst.msk [vmem:[#allocation3 + $0x88] sm:$0xff] %vm7118_vm1, %v4895_v0  ;;  %v2471_v5 = vpop.f32.mrb[23].mxu0  ;;  %v5437_v0 = vmov 21  }
 0xa01   : > { %2496 = vst.msk [vmem:[#allocation3 + $0x80] sm:$0xff] %vm7118_vm1, %v2471_v5  ;;  %5230 = vset.pattern.permute.xlu1 %v5435_v7 }
 0xa02   : > { %3099 = vperm.xlu1 %5230, %v6144_v61  }
 0xa03   : > { %3316 = vperm.xlu0 %5237, %v6140_v1   ;;  %v4898_v10 = vpop.f32.mrb[24].mxu0 }
 0xa04   : > { %2499 = vst.msk [vmem:[#allocation3 + $0x98] sm:$0xff] %vm7118_vm1, %v4898_v10  ;;  %v2481_v4 = vpop.f32.mrb[25].mxu0  ;;  %v4903_v17 = vpop.f32.mrb[30].mxu1  ;;  %v3892_v10 = vld [vmem:[#allocation3 + $0x30] sm:$0xff] }
 0xa05   : > { %2498 = vst.msk [vmem:[#allocation3 + $0x90] sm:$0xff] %vm7118_vm1, %v2481_v4  ;;  %2656 = vst.msk [vmem:[#allocation3 + $0xa8] sm:$0xff] %vm7118_vm1, %v4903_v17  ;;  %v2606_v22 = vpop.f32.mrb[31].mxu1  ;;  %v3893_v4 = vld [vmem:[#allocation3 + $0x38] sm:$0xff] }
 0xa06   : > { %2655 = vst.msk [vmem:[#allocation3 + $0xa0] sm:$0xff] %vm7118_vm1, %v2606_v22  ;;  %5231 = vset.pattern.permute.xlu1 %v5430_v25  ;;  %v5035_v25 = vpack.c.bf16 %v3887_v28, %v3886_v21  ;;  %v3895_v21 = vld [vmem:[#allocation3 + $0x48] sm:$0xff] }
 0xa07   : > { %3292 = vperm.xlu1 %5231, %v6159_v26   ;;  %5241 = vset.pattern.permute.xlu0 %v5436_v23  ;;  %v3903_v24 = vld [vmem:[#allocation3 + $0x88] sm:$0xff] }
 0xa08   : > { %v4906_v44 = vpop.f32.mrb[32].mxu1  ;;  %3782 = vperm.xlu0 %5241, %v6167_v35   ;;  %v3902_v27 = vld [vmem:[#allocation3 + $0x80] sm:$0xff] }
 0xa09   : > { %2658 = vst.msk [vmem:[#allocation3 + $0xb8] sm:$0xff] %vm7118_vm1, %v4906_v44  ;;  %v2616_v29 = vpop.f32.mrb[33].mxu1  ;;  %v5033_v30 = vpack.c.bf16 %v3903_v24, %v3902_v27  ;;  %v5047_v44 = vpack.c.bf16 %v3893_v4, %v3892_v10  ;;  %v3894_v27 = vld [vmem:[#allocation3 + $0x40] sm:$0xff] }
 0xa0a   : > { %2657 = vst.msk [vmem:[#allocation3 + $0xb0] sm:$0xff] %vm7118_vm1, %v2616_v29  ;;  %v5051_v28 = vpack.c.bf16 %v3895_v21, %v3894_v27  ;;  %v5438_v29 = vmov 29   ;;  %v3900_v21 = vld [vmem:[#allocation3 + $0x70] sm:$0xff] }
 0xa0b   : > { %5232 = vset.pattern.permute.xlu1 %v5432_v46  ;;  %5034 = vmatprep.subr.bf16.mxu1 %v5033_v30  ;;  %v3905_v31 = vld [vmem:[#allocation3 + $0x98] sm:$0xff]  ;;  %v7125_v30 = vmov 31  }
 0xa0c   : > { %v4909_v33 = vpop.f32.mrb[34].mxu1  ;;  %3704 = vperm.xlu1 %5232, %v6175_v39   ;;  %5245 = vset.pattern.permute.xlu0 %v5435_v7  ;;  %v3904_v34 = vld [vmem:[#allocation3 + $0x90] sm:$0xff]  ;;  %v3907_v42 = vld [vmem:[#allocation3 + $0xa8] sm:$0xff] }
 0xa0d   : > { %2660 = vst.msk [vmem:[#allocation3 + $0xc8] sm:$0xff] %vm7118_vm1, %v4909_v33  ;;  %5036 = vmatpush3.bf16.msra.mxu1 %v5035_v25  ;;  %v2626_v47 = vpop.f32.mrb[35].mxu1  ;;  %3135 = vperm.xlu0 %5245, %v6159_v26   ;;  %v5037_v8 = vpack.c.bf16 %v3905_v31, %v3904_v34  ;;  %v3906_v51 = vld [vmem:[#allocation3 + $0xa0] sm:$0xff]  ;;  %v5440_v25 = vmov 27   ;;  %v5342_v31 = vpop.eup %5341  ;;  %v3896_v34 = vld [vmem:[#allocation3 + $0x50] sm:$0xff] }
 0xa0e   : > { %2659 = vst.msk [vmem:[#allocation3 + $0xc0] sm:$0xff] %vm7118_vm1, %v2626_v47  ;;  %v5041_v52 = vpack.c.bf16 %v3907_v42, %v3906_v51 }
 0xa0f   : > { %5038 = vmatprep.subr.bf16.mxu1 %v5037_v8 }
 0xa10   : > { %5233 = vset.pattern.permute.xlu1 %v5431_v38  ;;  %v4920_v55 = vpop.f32.mrb[26].mxu0  ;;  %v3909_v60 = vld [vmem:[#allocation3 + $0xb8] sm:$0xff]  ;;  %v5043_v38 = vpack.c.bf16 %v3891_v58, %v3890_v56 }
 0xa11   : > { %2821 = vst.msk [vmem:[#allocation3 + $0xf8] sm:$0xff] %vm7118_vm1, %v4920_v55  ;;  %5040 = vmatpush3.bf16.msra.mxu1 %v5039_v53  ;;  %3614 = vperm.xlu1 %5233, %v6190_v59   ;;  %v2771_v62 = vpop.f32.mrb[27].mxu0  ;;  %v3908_v63 = vld [vmem:[#allocation3 + $0xb0] sm:$0xff]  ;;  %v6256_v55 = vpop.permute.xlu0 %2866 }
 0xa12   : > { %5246 = vset.pattern.permute.xlu0 %v5437_v0  ;;  %2820 = vst.msk [vmem:[#allocation3 + $0xf0] sm:$0xff] %vm7118_vm1, %v2771_v62  ;;  %5042 = vmatprep.subr.bf16.mxu1 %v5041_v52  ;;  %v5045_v5 = vpack.c.bf16 %v3909_v60, %v3908_v63  ;;  %v5442_v60 = vmov 25   ;;  %vm2868_vm11 = vcmp.ne.s32.totalorder %v6256_v55, 0  ;;  %v2851_v55 = vand.u32 2147483647, %v2850_v50 }
 0xa13   : > { %3202 = vperm.xlu0 %5246, %v6144_v61   ;;  %vm2869_vm0 = vmand %vm2863_vm13, %vm2868_vm11 }
 0xa14   : > { %v3911_v17 = vld [vmem:[#allocation3 + $0xc8] sm:$0xff]  ;;  %vm2901_vm7 = vmand %vm2900_vm14, %vm2868_vm11  ;;  %v2852_v49 = vsub.f32 1.0, %v2851_v55 }
 0xa15   : > { %5044 = vmatpush3.bf16.msra.mxu1 %v5043_v38  ;;  %5234 = vset.pattern.permute.xlu1 %v5435_v7  ;;  %v3910_v22 = vld [vmem:[#allocation3 + $0xc0] sm:$0xff] }
 0xa16   : > { %5046 = vmatprep.subr.bf16.mxu1 %v5045_v5  ;;  %3111 = vperm.xlu1 %5234, %v6140_v1   ;;  %v5049_v24 = vpack.c.bf16 %v3911_v17, %v3910_v22  ;;  %v3899_v5 = vld [vmem:[#allocation3 + $0x68] sm:$0xff]  ;;  %v6262_v22 = vpop.permute.xlu0 %2924  ;;  %v2860_v12 = vmul.f32 %v6149_v19, %v2852_v49 }
 0xa17   : > { %3226 = vperm.xlu0 %5246, %v6153_v20   ;;  %vm2926_vm15 = vcmp.ne.s32.totalorder %v6262_v22, 0  ;;  %v2895_v22 = vand.u32 2147483647, %v2894_v54 }
 0xa18   : > { %v3917_v17 = vld [vmem:[#allocation3 + $0xf8] sm:$0xff]  ;;  %vm2927_vm4 = vmand %vm2863_vm13, %vm2926_vm15 }
 0xa19   : > { %5048 = vmatpush3.bf16.msra.mxu1 %v5047_v44  ;;  %v3916_v4 = vld [vmem:[#allocation3 + $0xf0] sm:$0xff]  ;;  %vm2942_vm5 = vmand %vm2900_vm14, %vm2926_vm15  ;;  %v2896_v50 = vsub.f32 1.0, %v2895_v22 }
 0xa1a   : > { %5050 = vmatprep.subr.bf16.mxu1 %v5049_v24  ;;  %5235 = vset.pattern.permute.xlu1 %v5432_v46 }
 0xa1b   : > { %3238 = vperm.xlu0 %5246, %v6159_v26   ;;  %3716 = vperm.xlu1 %5235, %v6190_v59   ;;  %v2897_v9 = vmul.f32 %v2896_v50, %v6149_v19 }
 0xa1d   : > { %5052 = vmatpush3.bf16.msra.mxu1 %v5051_v28  ;;  %v3901_v28 = vld [vmem:[#allocation3 + $0x78] sm:$0xff] }
 0xa1f   : > { %5253 = vset.pattern.permute.xlu0 %v5438_v29  ;;  %5236 = vset.pattern.permute.xlu1 %v5437_v0  ;;  %v3898_v0 = vld [vmem:[#allocation3 + $0x60] sm:$0xff] }
 0xa20   : > { %3752 = vperm.xlu0 %5253, %v6175_v39   ;;  %3214 = vperm.xlu1 %5236, %v6140_v1   ;;  %v5059_v44 = vpack.c.bf16 %v3899_v5, %v3898_v0 }
 0xa24   : > { %5258 = vset.pattern.permute.xlu0 %v7125_v30  ;;  %v4912_v46 = vpop.f32.mrb[36].mxu1  ;;  %5238 = vset.pattern.permute.xlu1 %v5440_v25 }
 0xa25   : > { %2662 = vst.msk [vmem:[#allocation3 + $0xd8] sm:$0xff] %vm7118_vm1, %v4912_v46  ;;  %3830 = vperm.xlu0 %5258, %v6167_v35   ;;  %v2636_v40 = vpop.f32.mrb[37].mxu1  ;;  %3626 = vperm.xlu1 %5238, %v6167_v35  }
 0xa26   : > { %2661 = vst.msk [vmem:[#allocation3 + $0xd0] sm:$0xff] %vm7118_vm1, %v2636_v40  ;;  %v5063_v40 = vpack.c.bf16 %v3901_v28, %v3900_v21 }
 0xa29   : > { %2016 = vrot.lane.b32.xlu0 %v5342_v31, %s5441_s10  ;;  %5239 = vset.pattern.permute.xlu1 %v5435_v7  ;;  %v5055_v7 = vpack.c.bf16 %v3897_v36, %v3896_v34  ;;  %v6269_v31 = vpop.permute.xlu0 %2930 }
 0xa2a   : > { %3123 = vperm.xlu1 %5239, %v6153_v20   ;;  %vm2932_vm3 = vcmp.ne.s32.totalorder %v6269_v31, 0  ;;  %v7220_v31 = vmov 4  }
 0xa2b   : > { %vm6421_vm13 = vmand %vm2942_vm5, %vm2932_vm3 }
 0xa2c   : > { %v4923_v32 = vpop.f32.mrb[28].mxu0  ;;  %v3913_v33 = vld [vmem:[#allocation3 + $0xd8] sm:$0xff] }
 0xa2d   : > { %3842 = vperm.xlu0 %5258, %v6169_v37   ;;  %2823 = vst.msk [vmem:[#allocation3 + $0x108] sm:$0xff] %vm7118_vm1, %v4923_v32  ;;  %v2781_v42 = vpop.f32.mrb[29].mxu0  ;;  %v3912_v47 = vld [vmem:[#allocation3 + $0xd0] sm:$0xff] }
 0xa2e   : > { %2822 = vst.msk [vmem:[#allocation3 + $0x100] sm:$0xff] %vm7118_vm1, %v2781_v42  ;;  %5240 = vset.pattern.permute.xlu1 %v5438_v29  ;;  %v5053_v8 = vpack.c.bf16 %v3913_v33, %v3912_v47 }
 0xa2f   : > { %3728 = vperm.xlu1 %5240, %v6167_v35  }
 0xa30   : > { %5054 = vmatprep.subr.bf16.mxu1 %v5053_v8 }
 0xa31   : > { %3854 = vperm.xlu0 %5258, %v6175_v39   ;;  %v4915_v51 = vpop.f32.mrb[38].mxu1  ;;  %5056 = vmatpush3.bf16.msra.mxu1 %v5055_v7  ;;  %v6277_v7 = vpop.permute.xlu0 %3399 }
 0xa32   : > { %2664 = vst.msk [vmem:[#allocation3 + $0xe8] sm:$0xff] %vm7118_vm1, %v4915_v51  ;;  %v2646_v52 = vpop.f32.mrb[39].mxu1  ;;  %vm3401_vm15 = vcmp.ne.s32.totalorder %v6277_v7, 0 }
 0xa33   : > { %2663 = vst.msk [vmem:[#allocation3 + $0xe0] sm:$0xff] %vm7118_vm1, %v2646_v52  ;;  %5242 = vset.pattern.permute.xlu1 %v5436_v23 }
 0xa34   : > { %3794 = vperm.xlu1 %5242, %v6169_v37   ;;  %v3919_v53 = vld [vmem:[#allocation3 + $0x108] sm:$0xff] }
 0xa35   : > { %v3918_v56 = vld [vmem:[#allocation3 + $0x100] sm:$0xff] }
 0xa36   : > { %v5066_v58 = vpack.c.bf16 %v3919_v53, %v3918_v56 }
 0xa38   : > { %5243 = vset.pattern.permute.xlu1 %v5442_v60  ;;  %5067 = vmatpush3.bf16.msra.mxu0 %v5066_v58  ;;  %v6283_v58 = vpop.permute.xlu0 %3447 }
 0xa39   : > { %v4926_v62 = vpop.f32.mrb[30].mxu0  ;;  %3524 = vperm.xlu1 %5243, %v6167_v35   ;;  %v3915_v63 = vld [vmem:[#allocation3 + $0xe8] sm:$0xff]  ;;  %5068 = vmatprep.subr.bf16.mxu0 %v7114_v3  ;;  %v5061_v35 = vpack.c.bf16 %v3917_v17, %v3916_v4  ;;  %vm3449_vm6 = vcmp.ne.s32.totalorder %v6283_v58, 0 }
 0xa3a   : > { %2825 = vst.msk [vmem:[#allocation3 + $0x118] sm:$0xff] %vm7118_vm1, %v4926_v62  ;;  %v2791_v38 = vpop.f32.mrb[31].mxu0  ;;  %v3914_v10 = vld [vmem:[#allocation3 + $0xe0] sm:$0xff] }
 0xa3b   : > { %2824 = vst.msk [vmem:[#allocation3 + $0x110] sm:$0xff] %vm7118_vm1, %v2791_v38  ;;  %v5057_v24 = vpack.c.bf16 %v3915_v63, %v3914_v10 }
 0xa3d   : > { %v4929_v27 = vpop.f32.mrb[32].mxu0  ;;  %5244 = vset.pattern.permute.xlu1 %v5440_v25  ;;  %5058 = vmatprep.subr.bf16.mxu1 %v5057_v24 }
 0xa3e   : > { %2827 = vst.msk [vmem:[#allocation3 + $0x128] sm:$0xff] %vm7118_vm1, %v4929_v27  ;;  %v2801_v46 = vpop.f32.mrb[33].mxu0  ;;  %3638 = vperm.xlu1 %5244, %v6169_v37   ;;  %5060 = vmatpush3.bf16.msra.mxu1 %v5059_v44  ;;  %v7131_v27 = vmov 4  }
 0xa3f   : > { %2826 = vst.msk [vmem:[#allocation3 + $0x120] sm:$0xff] %vm7118_vm1, %v2801_v46  ;;  %5062 = vmatprep.subr.bf16.mxu1 %v5061_v35  ;;  %5261 = vset.pattern.permute.xlu0 %v7131_v27 }
 0xa41   : > { %v4932_v32 = vpop.f32.mrb[34].mxu0  ;;  %v3921_v33 = vld [vmem:[#allocation3 + $0x118] sm:$0xff] }
 0xa42   : > { %2829 = vst.msk [vmem:[#allocation3 + $0x138] sm:$0xff] %vm7118_vm1, %v4932_v32  ;;  %v2811_v34 = vpop.f32.mrb[35].mxu0  ;;  %5247 = vset.pattern.permute.xlu1 %v5434_v45  ;;  %5064 = vmatpush3.bf16.msra.mxu1 %v5063_v40  ;;  %v3920_v36 = vld [vmem:[#allocation3 + $0x110] sm:$0xff]  ;;  %v2873_v40 = vpop.permute.xlu1 %2872 }
 0xa43   : > { %2828 = vst.msk [vmem:[#allocation3 + $0x130] sm:$0xff] %vm7118_vm1, %v2811_v34  ;;  %3328 = vperm.xlu1 %5247, %v6153_v20   ;;  %v5069_v42 = vpack.c.bf16 %v3921_v33, %v3920_v36  ;;  %5077 = vmatprep.subr.bf16.mxu1 %v7114_v3  ;;  %vm6387_vm1 = vmand %vm3421_vm9, %vm3422_vm10  ;;  %vm2874_vm2 = vcmp.ne.s32.totalorder %v2873_v40, 0 }
 0xa44   : > { %vm6406_vm8 = vmand %vm2869_vm0, %vm2874_vm2 }
 0xa45   : > { %5070 = vmatpush3.bf16.msra.mxu0 %v5069_v42  ;;  %v3923_v47 = vld [vmem:[#allocation3 + $0x128] sm:$0xff]  ;;  %vm6410_vm9 = vmand %vm2901_vm7, %vm2874_vm2 }
 0xa46   : > { %5071 = vmatprep.subr.bf16.mxu0 %v7114_v3  ;;  %v3922_v8 = vld [vmem:[#allocation3 + $0x120] sm:$0xff]  ;;  %v6345_v32 = vpop.permute.xlu1 %2918  ;;  %vm6414_vm10 = vmand %vm2927_vm4, %vm2932_vm3 }
 0xa47   : > { %5248 = vset.pattern.permute.xlu1 %v5438_v29  ;;  %v5072_v51 = vpack.c.bf16 %v3923_v47, %v3922_v8  ;;  %vm6431_vm0 = vmand %vm6382_vm12, %vm3449_vm6  ;;  %v2921_v55 = vmul.f32 %v6345_v32, %v2852_v49  ;;  %v2941_v16 = vmul.f32 %v6345_v32, %v2896_v50 }
 0xa48   : > { %3740 = vperm.xlu1 %5248, %v6169_v37   ;;  %vm6450_vm2 = vmand %vm6387_vm1, %vm3449_vm6 }
 0xa49   : > { %5073 = vmatpush3.bf16.msra.mxu0 %v5072_v51  ;;  %v3925_v52 = vld [vmem:[#allocation3 + $0x138] sm:$0xff] }
 0xa4a   : > { %5074 = vmatprep.subr.bf16.mxu0 %v7114_v3  ;;  %v3924_v53 = vld [vmem:[#allocation3 + $0x130] sm:$0xff]  ;;  %v6347_v33 = vpop.permute.xlu1 %3384 }
 0xa4b   : > { %v5075_v56 = vpack.c.bf16 %v3925_v52, %v3924_v53  ;;  %v3420_v22 = vmul.f32 %v3419_v11, %v6347_v33 }
 0xa4c   : > { %5249 = vset.pattern.permute.xlu1 %v5436_v23 }
 0xa4d   : > { %5076 = vmatpush3.bf16.msra.mxu0 %v5075_v56  ;;  %3806 = vperm.xlu1 %5249, %v6175_v39  }
 0xa4e   : > { %5083 = vmatprep.subr.bf16.mxu0 %v7114_v3  ;;  %v3394_v34 = vpop.permute.xlu1 %3393 }
 0xa4f   : > { %vm3395_vm11 = vcmp.ne.s32.totalorder %v3394_v34, 0  ;;  %v3379_v34 = vsub.f32 1.0, %v3378_v41  ;;  %v5448_v41 = vmov 11  }
 0xa50   : > { %vm3396_vm7 = vmand %vm6382_vm12, %vm3395_vm11 }
 0xa51   : > { %5250 = vset.pattern.permute.xlu1 %v5442_v60  ;;  %v6288_v62 = vpop.permute.xlu0 %3166  ;;  %vm3424_vm14 = vmand %vm6387_vm1, %vm3395_vm11  ;;  %v3387_v19 = vmul.f32 %v6347_v33, %v3379_v34 }
 0xa52   : > { %3536 = vperm.xlu1 %5250, %v6169_v37   ;;  %v6349_v36 = vpop.permute.xlu1 %3441  ;;  %vm6457_vm3 = vmand %vm3396_vm7, %vm3401_vm15 }
 0xa53   : > { %v3444_v7 = vmul.f32 %v6349_v36, %v3379_v34  ;;  %v3464_v58 = vmul.f32 %v6349_v36, %v3419_v11  ;;  %vm3425_vm4 = vmand %vm3424_vm14, %vm3401_vm15  ;;  %v7224_v34 = vmov 3  }
 0xa56   : > { %5251 = vset.pattern.permute.xlu1 %v5440_v25  ;;  %v6292_v63 = vpop.permute.xlu0 %3051  ;;  %v6351_v42 = vpop.permute.xlu1 %3453 }
 0xa57   : > { %3650 = vperm.xlu1 %5251, %v6175_v39   ;;  %vm3455_vm12 = vcmp.ne.s32.totalorder %v6351_v42, 0 }
 0xa58   : > { %vm3456_vm1 = vmand %vm6431_vm0, %vm3455_vm12 }
 0xa59   : > { %vm3466_vm5 = vmand %vm6450_vm2, %vm3455_vm12 }
 0xa5a   : > { %v6295_v0 = vpop.permute.xlu0 %3075  ;;  %v6353_v47 = vpop.permute.xlu1 %3063 }
 0xa5b   : > { %5252 = vset.pattern.permute.xlu1 %v5434_v45 }
 0xa5c   : > { %3340 = vperm.xlu1 %5252, %v6159_v26  }
 0xa5e   : > { %v6299_v5 = vpop.permute.xlu0 %3087  ;;  %v6355_v8 = vpop.permute.xlu1 %3154 }
 0xa60   : > { %5254 = vset.pattern.permute.xlu1 %v5436_v23 }
 0xa61   : > { %3818 = vperm.xlu1 %5254, %v6190_v59  }
 0xa62   : > { %v6357_v51 = vpop.permute.xlu1 %3256 }
 0xa63   : > { %v6303_v38 = vpop.permute.xlu0 %3280 }
 0xa65   : > { %5255 = vset.pattern.permute.xlu1 %v5442_v60 }
 0xa66   : > { %3548 = vperm.xlu1 %5255, %v6175_v39   ;;  %v6359_v52 = vpop.permute.xlu1 %3268 }
 0xa68   : > { %v6307_v37 = vpop.permute.xlu0 %3578 }
 0xa6a   : > { %5256 = vset.pattern.permute.xlu1 %v5440_v25 }
 0xa6b   : > { %3662 = vperm.xlu1 %5256, %v6190_v59  }
 0xa6c   : > { %v6311_v45 = vpop.permute.xlu0 %3602 }
 0xa6f   : > { %5257 = vset.pattern.permute.xlu1 %v5438_v29 }
 0xa70   : > { %3764 = vperm.xlu1 %5257, %v6190_v59  }
 0xa71   : > { %v6315_v23 = vpop.permute.xlu0 %3485 }
 0xa74   : > { %5259 = vset.pattern.permute.xlu1 %v5442_v60 }
 0xa75   : > { %3560 = vperm.xlu1 %5259, %v6190_v59   ;;  %v6319_v10 = vpop.permute.xlu0 %3498 }
 0xa79   : > { %v6321_v39 = vpop.permute.xlu0 %3511  ;;  %5260 = vset.pattern.permute.xlu1 %v7129_v18 }
 0xa7e   : > { %v6324_v25 = vpop.permute.xlu0 %3304 }
 0xa82   : > { %v6326_v4 = vpop.permute.xlu0 %3316 }
 0xa87   : > { %v6328_v17 = vpop.permute.xlu0 %3782 }
 0xa88   : > { %7195 = vst [vmem:[#allocation16_spill] sm:$0xff] %v6328_v17 }
 0xa8c   : > { %v6330_v29 = vpop.permute.xlu0 %3135 }
 0xa8d   : > { %7196 = vst [vmem:[#allocation17_spill] sm:$0xff] %v6330_v29 }
 0xa92   : > { %v6332_v24 = vpop.permute.xlu0 %3202 }
 0xa96   : > { %v6334_v44 = vpop.permute.xlu0 %3226 }
 0xa9a   : > { %v6336_v60 = vpop.permute.xlu0 %3238 }
 0xa9b   : > { %7197 = vst [vmem:[#allocation18_spill] sm:$0xff] %v6336_v60 }
 0xa9f   : > { %v6339_v35 = vpop.permute.xlu0 %3752 }
 0xaa0   : > { %7198 = vst [vmem:[#allocation19_spill] sm:$0xff] %v6339_v35 }
 0xaa4   : > { %v6341_v21 = vpop.permute.xlu0 %3830 }
 0xaa5   : > { %7199 = vst [vmem:[#allocation20_spill] sm:$0xff] %v6341_v21 }
 0xaa8   : > { %v2017_v28 = vpop.permute.xlu0 %2016 }
 0xaa9   : > { %v2019_v46 = vmul.f32 %v5940_v57, %v2017_v28  ;;  %v6361_v57 = vpop.permute.xlu1 %3178 }
 0xaab   : > { %2888 = vrot.lane.b32.xlu0 %v2019_v46, %s7193_s25 }
 0xaac   : > { %v6393_v30 = vpop.permute.xlu0 %3842 }
 0xaad   : > { %v6363_v53 = vpop.permute.xlu1 %3590  ;;  %7204 = vst [vmem:[#allocation21_spill] sm:$0xff] %v6393_v30 }
 0xab0   : > { %v6435_v18 = vpop.permute.xlu0 %3854 }
 0xab1   : > { %v6365_v56 = vpop.permute.xlu1 %3680  ;;  %7215 = vst [vmem:[#allocation22_spill] sm:$0xff] %v6435_v18 }
 0xab5   : > { %v6367_v28 = vpop.permute.xlu1 %3692 }
 0xab9   : > { %v6369_v46 = vpop.permute.xlu1 %3190 }
 0xabd   : > { %v6371_v3 = vpop.permute.xlu1 %3472 }
 0xac1   : > { %v6391_v48 = vpop.permute.xlu1 %3099 }
 0xac5   : > { %v6425_v15 = vpop.permute.xlu1 %3292 }
 0xac9   : > { %v6463_v14 = vpop.permute.xlu1 %3704 }
 0xb1d   : > { %v2889_v49 = vpop.permute.xlu0 %2888 }
 0xb1e   : > { %v2891_v27 = vmul.f32 %v2889_v49, %v2860_v12  ;;  %v2939_v2 = vmul.f32 %v2921_v55, %v2889_v49  ;;  %v2911_v18 = vmul.f32 %v2897_v9, %v2889_v49  ;;  %v3434_v30 = vmul.f32 %v3420_v22, %v2889_v49 }
 0xb1f   : > { %v3414_v32 = vmul.f32 %v3387_v19, %v2889_v49  ;;  %v2946_v33 = vmul.f32 %v2941_v16, %v2889_v49  ;;  %v3462_v50 = vmul.f32 %v3444_v7, %v2889_v49  ;;  %v3469_v21 = vmul.f32 %v3464_v58, %v2889_v49 }
 0xb20   : > { %v6475_v36 = vsel %vm6406_vm8, %v2891_v27, 0.0  ;;  %v6479_v11 = vsel %vm6414_vm10, %v2939_v2, 0.0  ;;  %v6483_v54 = vsel %vm6410_vm9, %v2911_v18, 0.0  ;;  %v6485_v12 = vsel %vm3425_vm4, %v3434_v30, 0.0  ;;  %v6501_v18 = vpop.permute.xlu1 %3614 }
 0xb21   : > { %3160 = vperm.xlu0 %5261, %v6475_v36   ;;  %3057 = vperm.xlu1 %5260, %v6475_v36   ;;  %v6491_v42 = vsel %vm6457_vm3, %v3414_v32, 0.0  ;;  %v6495_v27 = vsel %vm6421_vm13, %v2946_v33, 0.0  ;;  %v6497_v2 = vsel %vm3456_vm1, %v3462_v50, 0.0  ;;  %v6499_v40 = vsel %vm3466_vm5, %v3469_v21, 0.0 }
 0xb22   : > { %v5444_v30 = vmov 6   ;;  %v7222_v21 = vmov 2   ;;  %v7138_v22 = vmov 5   ;;  %v5447_v16 = vmov 10  }
 0xb23   : > { %v7140_v7 = vmov 13   ;;  %v7134_v49 = vmov 14   ;;  %v5451_v50 = vmov 8  }
 0xb24   : > { %v6507_v43 = vpop.permute.xlu1 %3111 }
 0xb25   : > { %3184 = vperm.xlu0 %5261, %v6479_v11   ;;  %3069 = vperm.xlu1 %5260, %v6483_v54   ;;  %7221 = vst [vmem:[#allocation23_spill] sm:$0xff] %v6507_v43  ;;  %v7251_v43 = vmov 9  }
 0xb28   : > { %v6515_v9 = vpop.permute.xlu1 %3716 }
 0xb29   : > { %5267 = vset.pattern.permute.xlu0 %v5444_v30  ;;  %5262 = vset.pattern.permute.xlu1 %v7220_v31  ;;  %7223 = vst [vmem:[#allocation24_spill] sm:$0xff] %v6515_v9 }
 0xb2a   : > { %3286 = vperm.xlu0 %5267, %v6479_v11   ;;  %3172 = vperm.xlu1 %5262, %v6483_v54  }
 0xb2c   : > { %v6521_v55 = vpop.permute.xlu1 %3214 }
 0xb2e   : > { %5269 = vset.pattern.permute.xlu0 %v7142_v13  ;;  %5263 = vset.pattern.permute.xlu1 %v7222_v21 }
 0xb2f   : > { %3698 = vperm.xlu0 %5269, %v6485_v12   ;;  %3081 = vperm.xlu1 %5263, %v6479_v11  }
 0xb30   : > { %v6526_v6 = vpop.permute.xlu1 %3626 }
 0xb31   : > { %7225 = vst [vmem:[#allocation25_spill] sm:$0xff] %v6526_v6 }
 0xb33   : > { %5273 = vset.pattern.permute.xlu0 %v7224_v34  ;;  %5264 = vset.pattern.permute.xlu1 %v5444_v30 }
 0xb34   : > { %3105 = vperm.xlu0 %5273, %v6475_v36   ;;  %3262 = vperm.xlu1 %5264, %v6475_v36   ;;  %v6532_v19 = vpop.permute.xlu1 %3123 }
 0xb35   : > { %7226 = vst [vmem:[#allocation26_spill] sm:$0xff] %v6532_v19 }
 0xb38   : > { %5276 = vset.pattern.permute.xlu0 %v7138_v22  ;;  %3274 = vperm.xlu1 %5264, %v6483_v54   ;;  %v6538_v58 = vpop.permute.xlu1 %3728 }
 0xb39   : > { %3208 = vperm.xlu0 %5276, %v6475_v36   ;;  %7227 = vst [vmem:[#allocation27_spill] sm:$0xff] %v6538_v58 }
 0xb3c   : > { %5265 = vset.pattern.permute.xlu1 %v5447_v16  ;;  %v6545_v32 = vpop.permute.xlu1 %3794 }
 0xb3d   : > { %5279 = vset.pattern.permute.xlu0 %v7224_v34  ;;  %3584 = vperm.xlu1 %5265, %v6491_v42   ;;  %7228 = vst [vmem:[#allocation28_spill] sm:$0xff] %v6545_v32 }
 0xb3e   : > { %3117 = vperm.xlu0 %5279, %v6483_v54  }
 0xb40   : > { %v6550_v33 = vpop.permute.xlu1 %3524 }
 0xb41   : > { %3596 = vperm.xlu1 %5265, %v6485_v12   ;;  %7229 = vst [vmem:[#allocation29_spill] sm:$0xff] %v6550_v33 }
 0xb42   : > { %5284 = vset.pattern.permute.xlu0 %v5448_v41 }
 0xb43   : > { %3632 = vperm.xlu0 %5284, %v6491_v42  }
 0xb45   : > { %5266 = vset.pattern.permute.xlu1 %v7222_v21  ;;  %v7136_v21 = vmov 7  }
 0xb46   : > { %3093 = vperm.xlu1 %5266, %v6495_v27  }
 0xb47   : > { %5287 = vset.pattern.permute.xlu0 %v7140_v7 }
 0xb48   : > { %3734 = vperm.xlu0 %5287, %v6491_v42  }
 0xb4a   : > { %5268 = vset.pattern.permute.xlu1 %v7142_v13 }
 0xb4b   : > { %3686 = vperm.xlu1 %5268, %v6491_v42  }
 0xb4c   : > { %5289 = vset.pattern.permute.xlu0 %v7134_v49  ;;  %v6556_v49 = vpop.permute.xlu1 %3638 }
 0xb4d   : > { %3800 = vperm.xlu0 %5289, %v6485_v12   ;;  %7230 = vst [vmem:[#allocation30_spill] sm:$0xff] %v6556_v49 }
 0xb4f   : > { %5270 = vset.pattern.permute.xlu1 %v7220_v31 }
 0xb50   : > { %3196 = vperm.xlu1 %5270, %v6495_v27   ;;  %v6561_v31 = vpop.permute.xlu1 %3328 }
 0xb51   : > { %5292 = vset.pattern.permute.xlu0 %v5448_v41  ;;  %7231 = vst [vmem:[#allocation31_spill] sm:$0xff] %v6561_v31 }
 0xb52   : > { %3644 = vperm.xlu0 %5292, %v6485_v12  }
 0xb54   : > { %5271 = vset.pattern.permute.xlu1 %v5451_v50 }
 0xb55   : > { %3479 = vperm.xlu1 %5271, %v6491_v42  }
 0xb56   : > { %5294 = vset.pattern.permute.xlu0 %v7136_v21  ;;  %v6567_v21 = vpop.permute.xlu1 %3740 }
 0xb57   : > { %3334 = vperm.xlu0 %5294, %v6479_v11   ;;  %7232 = vst [vmem:[#allocation32_spill] sm:$0xff] %v6567_v21 }
 0xb59   : > { %3492 = vperm.xlu1 %5271, %v6485_v12  }
 0xb5b   : > { %5297 = vset.pattern.permute.xlu0 %v7138_v22  ;;  %v6573_v22 = vpop.permute.xlu1 %3806 }
 0xb5c   : > { %3244 = vperm.xlu0 %5297, %v6495_v27   ;;  %7233 = vst [vmem:[#allocation33_spill] sm:$0xff] %v6573_v22 }
 0xb5d   : > { %5272 = vset.pattern.permute.xlu1 %v5447_v16 }
 0xb5e   : > { %3608 = vperm.xlu1 %5272, %v6497_v2  }
 0xb60   : > { %5299 = vset.pattern.permute.xlu0 %v5448_v41 }
 0xb61   : > { %3656 = vperm.xlu0 %5299, %v6497_v2  }
 0xb62   : > { %5274 = vset.pattern.permute.xlu1 %v5444_v30  ;;  %v7234_v30 = vmov 31  }
 0xb63   : > { %3298 = vperm.xlu1 %5274, %v6495_v27  }
 0xb65   : > { %5301 = vset.pattern.permute.xlu0 %v7140_v7  ;;  %v6578_v7 = vpop.permute.xlu1 %3536 }
 0xb66   : > { %3758 = vperm.xlu0 %5301, %v6497_v2   ;;  %7235 = vst [vmem:[#allocation34_spill] sm:$0xff] %v6578_v7  ;;  %v7242_v7 = vmov 1  }
 0xb67   : > { %5275 = vset.pattern.permute.xlu1 %v7142_v13  ;;  %v7143_v13 = vmov 16  }
 0xb68   : > { %3710 = vperm.xlu1 %5275, %v6497_v2  }
 0xb69   : > { %v6585_v33 = vpop.permute.xlu1 %3650 }
 0xb6a   : > { %5304 = vset.pattern.permute.xlu0 %v5448_v41  ;;  %v7236_v41 = vmov 7   ;;  %7237 = vst [vmem:[#allocation35_spill] sm:$0xff] %v6585_v33 }
 0xb6b   : > { %3668 = vperm.xlu0 %5304, %v6499_v40  }
 0xb6c   : > { %5277 = vset.pattern.permute.xlu1 %v5451_v50 }
 0xb6d   : > { %3505 = vperm.xlu1 %5277, %v6497_v2  }
 0xb6f   : > { %5305 = vset.pattern.permute.xlu0 %v7234_v30  ;;  %v7238_v30 = vmov 12  }
 0xb70   : > { %3866 = vperm.xlu0 %5305, %v6190_v59   ;;  %v7239_v59 = vmov 0  }
 0xb71   : > { %5278 = vset.pattern.permute.xlu1 %v5447_v16  ;;  %v6591_v16 = vpop.permute.xlu1 %3340 }
 0xb72   : > { %3620 = vperm.xlu1 %5278, %v6499_v40   ;;  %7240 = vst [vmem:[#allocation36_spill] sm:$0xff] %v6591_v16  ;;  %v7148_v16 = vmov 9  }
 0xb74   : > { %5310 = vset.pattern.permute.xlu0 %v7143_v13  ;;  %v7241_v13 = vmov 5  }
 0xb75   : > { %2949 = vperm.xlu0 %5310, %v6144_v61   ;;  %v6598_v22 = vpop.permute.xlu1 %3818 }
 0xb76   : > { %5280 = vset.pattern.permute.xlu1 %v7236_v41  ;;  %7243 = vst [vmem:[#allocation37_spill] sm:$0xff] %v6598_v22  ;;  %v7146_v22 = vmov 15  }
 0xb77   : > { %3310 = vperm.xlu1 %5280, %v6475_v36  }
 0xb79   : > { %2988 = vperm.xlu0 %5310, %v6159_v26   ;;  %v6603_v32 = vpop.permute.xlu1 %3548 }
 0xb7a   : > { %7244 = vst [vmem:[#allocation38_spill] sm:$0xff] %v6603_v32 }
 0xb7b   : > { %5281 = vset.pattern.permute.xlu1 %v7238_v30  ;;  %v7144_v30 = vmov 17  }
 0xb7c   : > { %3722 = vperm.xlu1 %5281, %v6499_v40  }
 0xb7d   : > { %5314 = vset.pattern.permute.xlu0 %v7239_v59 }
 0xb7e   : > { %2969 = vperm.xlu0 %5314, %v6483_v54  }
 0xb80   : > { %5282 = vset.pattern.permute.xlu1 %v7241_v13 }
 0xb81   : > { %3220 = vperm.xlu1 %5282, %v6483_v54  }
 0xb82   : > { %5315 = vset.pattern.permute.xlu0 %v7242_v7 }
 0xb83   : > { %3007 = vperm.xlu0 %5315, %v6475_v36  }
 0xb85   : > { %5283 = vset.pattern.permute.xlu1 %v5451_v50  ;;  %v6610_v50 = vpop.permute.xlu1 %3662 }
 0xb86   : > { %3518 = vperm.xlu1 %5283, %v6499_v40   ;;  %7245 = vst [vmem:[#allocation39_spill] sm:$0xff] %v6610_v50  ;;  %v7249_v50 = vmov 13  }
 0xb87   : > { %5316 = vset.pattern.permute.xlu0 %v7144_v30  ;;  %v7246_v30 = vmov 14  }
 0xb88   : > { %3025 = vperm.xlu0 %5316, %v6153_v20  }
 0xb89   : > { %v6616_v32 = vpop.permute.xlu1 %3764 }
 0xb8a   : > { %5285 = vset.pattern.permute.xlu1 %v7224_v34  ;;  %7247 = vst [vmem:[#allocation40_spill] sm:$0xff] %v6616_v32 }
 0xb8b   : > { %3129 = vperm.xlu1 %5285, %v6479_v11  }
 0xb8c   : > { %5319 = vset.pattern.permute.xlu0 %v7242_v7 }
 0xb8d   : > { %3043 = vperm.xlu0 %5319, %v6495_v27   ;;  %v6620_v17 = vpop.permute.xlu1 %3560 }
 0xb8e   : > { %7248 = vst [vmem:[#allocation41_spill] sm:$0xff] %v6620_v17 }
 0xb8f   : > { %5286 = vset.pattern.permute.xlu1 %v7236_v41 }
 0xb90   : > { %3322 = vperm.xlu1 %5286, %v6483_v54  }
 0xb91   : > { %5320 = vset.pattern.permute.xlu0 %v7146_v22 }
 0xb94   : > { %5288 = vset.pattern.permute.xlu1 %v7246_v30 }
 0xb95   : > { %3788 = vperm.xlu1 %5288, %v6491_v42  }
 0xb99   : > { %5290 = vset.pattern.permute.xlu1 %v7241_v13 }
 0xb9a   : > { %3232 = vperm.xlu1 %5290, %v6479_v11  }
 0xb9e   : > { %5291 = vset.pattern.permute.xlu1 %v7148_v16 }
 0xb9f   : > { %3530 = vperm.xlu1 %5291, %v6491_v42  }
 0xba0   : > { %v3058_v31 = vpop.permute.xlu1 %3057  ;;  %v3161_v32 = vpop.permute.xlu0 %3160 }
 0xba3   : > { %5293 = vset.pattern.permute.xlu1 %v7224_v34  ;;  %v2830_v34 = vlaneseq }
 0xba4   : > { %3141 = vperm.xlu1 %5293, %v6495_v27   ;;  %v3070_v22 = vpop.permute.xlu1 %3069  ;;  %v3185_v21 = vpop.permute.xlu0 %3184 }
 0xba5   : > { %v6637_v58 = vand.u32 127, %v2830_v34 }
 0xba7   : > { %vm3065_vm6 = vcmp.eq.s32.totalorder %v6637_v58, %v6353_v47  ;;  %vm3580_vm8 = vcmp.eq.s32.totalorder %v6637_v58, %v6307_v37  ;;  %vm3592_vm9 = vcmp.eq.s32.totalorder %v6637_v58, %v6363_v53  ;;  %vm3053_vm10 = vcmp.eq.s32.totalorder %v6637_v58, %v6292_v63 }
 0xba8   : > { %5295 = vset.pattern.permute.xlu1 %v7249_v50  ;;  %vm3077_vm11 = vcmp.eq.s32.totalorder %v6637_v58, %v6295_v0  ;;  %v7250_v47 = vmov 0.0   ;;  %vm3089_vm13 = vcmp.eq.s32.totalorder %v6637_v58, %v6299_v5  ;;  %vm3168_vm0 = vcmp.eq.s32.totalorder %v6637_v58, %v6288_v62 }
 0xba9   : > { %3746 = vperm.xlu1 %5295, %v6485_v12   ;;  %v3173_v13 = vpop.permute.xlu1 %3172  ;;  %v6647_v49 = vpop.permute.xlu0 %3286  ;;  %v4552_v37 = vsel %vm3592_vm9, 1.0, %v7250_v47  ;;  %v4519_v53 = vsel %vm3077_vm11, 1.0, %v7250_v47  ;;  %v4517_v19 = vsel %vm3053_vm10, 1.0, %v7250_v47  ;;  %vm3156_vm7 = vcmp.eq.s32.totalorder %v6637_v58, %v6355_v8 }
 0xbaa   : > { %v3060_v63 = vmul.f32 %v4517_v19, %v3058_v31  ;;  %v4525_v62 = vsel %vm3156_vm7, 1.0, %v7250_v47  ;;  %vm3180_vm14 = vcmp.eq.s32.totalorder %v6637_v58, %v6361_v57  ;;  %vm3192_vm15 = vcmp.eq.s32.totalorder %v6637_v58, %v6369_v46 }
 0xbab   : > { %v3163_v31 = vmul.f32 %v4525_v62, %v3161_v32  ;;  %vm3204_vm2 = vcmp.eq.s32.totalorder %v6637_v58, %v6332_v24  ;;  %vm3487_vm12 = vcmp.eq.s32.totalorder %v6637_v58, %v6315_v23  ;;  %vm3474_vm3 = vcmp.eq.s32.totalorder %v6637_v58, %v6371_v3 }
 0xbac   : > { %vm3270_vm4 = vcmp.eq.s32.totalorder %v6637_v58, %v6359_v52  ;;  %v4543_v24 = vsel %vm3474_vm3, 1.0, %v7250_v47  ;;  %vm3258_vm1 = vcmp.eq.s32.totalorder %v6637_v58, %v6357_v51  ;;  %vm3604_vm5 = vcmp.eq.s32.totalorder %v6637_v58, %v6311_v45 }
 0xbad   : > { %5296 = vset.pattern.permute.xlu1 %v7246_v30  ;;  %v4534_v3 = vsel %vm3270_vm4, 1.0, %v7250_v47  ;;  %v4553_v51 = vsel %vm3604_vm5, 1.0, %v7250_v47  ;;  %vm3682_vm9 = vcmp.eq.s32.totalorder %v6637_v58, %v6365_v56  ;;  %vm3694_vm10 = vcmp.eq.s32.totalorder %v6637_v58, %v6367_v28 }
 0xbae   : > { %3812 = vperm.xlu1 %5296, %v6497_v2   ;;  %v3082_v17 = vpop.permute.xlu1 %3081  ;;  %v6663_v60 = vpop.permute.xlu0 %3698  ;;  %vm3706_vm11 = vcmp.eq.s32.totalorder %v6637_v58, %v6463_v14  ;;  %vm3513_vm7 = vcmp.eq.s32.totalorder %v6637_v58, %v6321_v39  ;;  %vm3101_vm3 = vcmp.eq.s32.totalorder %v6637_v58, %v6391_v48  ;;  %v7258_v48 = vld [vmem:[#allocation25_spill] sm:$0xff] }
 0xbaf   : > { %v3084_v0 = vmul.f32 %v4519_v53, %v3082_v17  ;;  %v4526_v17 = vsel %vm3168_vm0, 1.0, %v7250_v47  ;;  %vm3306_vm0 = vcmp.eq.s32.totalorder %v6637_v58, %v6324_v25 }
 0xbb2   : > { %5298 = vset.pattern.permute.xlu1 %v7148_v16 }
 0xbb3   : > { %3542 = vperm.xlu1 %5298, %v6485_v12   ;;  %v6632_v35 = vpop.permute.xlu1 %3262  ;;  %v6678_v19 = vpop.permute.xlu0 %3105 }
 0xbb7   : > { %5300 = vset.pattern.permute.xlu1 %v7236_v41  ;;  %v6635_v33 = vpop.permute.xlu1 %3274  ;;  %v4518_v41 = vsel %vm3065_vm6, 1.0, %v7250_v47  ;;  %vm3282_vm6 = vcmp.eq.s32.totalorder %v6637_v58, %v6303_v38 }
 0xbb8   : > { %3346 = vperm.xlu1 %5300, %v6495_v27   ;;  %v3072_v34 = vmul.f32 %v4518_v41, %v3070_v22  ;;  %v3209_v53 = vpop.permute.xlu0 %3208 }
 0xbba   : > { %v3073_v41 = vadd.f32 %v3072_v34, %v3060_v63  ;;  %v7252_v34 = vmov 15   ;;  %v4528_v63 = vsel %vm3192_vm15, 1.0, %v7250_v47  ;;  %vm3216_vm15 = vcmp.eq.s32.totalorder %v6637_v58, %v6521_v55 }
 0xbbc   : > { %5302 = vset.pattern.permute.xlu1 %v7246_v30  ;;  %v3585_v16 = vpop.permute.xlu1 %3584  ;;  %v4551_v30 = vsel %vm3580_vm8, 1.0, %v7250_v47  ;;  %vm3294_vm8 = vcmp.eq.s32.totalorder %v6637_v58, %v6425_v15  ;;  %v4559_v15 = vsel %vm3682_vm9, 1.0, %v7250_v47 }
 0xbbd   : > { %3824 = vperm.xlu1 %5302, %v6499_v40   ;;  %v3587_v6 = vmul.f32 %v4551_v30, %v3585_v16  ;;  %v4520_v16 = vsel %vm3089_vm13, 1.0, %v7250_v47  ;;  %v3085_v30 = vadd.f32 %v3084_v0, %v3073_v41  ;;  %v4529_v41 = vsel %vm3204_vm2, 1.0, %v7250_v47 }
 0xbbe   : > { %v3211_v46 = vmul.f32 %v4529_v41, %v3209_v53  ;;  %vm3500_vm13 = vcmp.eq.s32.totalorder %v6637_v58, %v6319_v10  ;;  %v6749_v41 = vpop.permute.xlu0 %3117  ;;  %v4537_v10 = vsel %vm3306_vm0, 1.0, %v7250_v47  ;;  %vm3616_vm2 = vcmp.eq.s32.totalorder %v6637_v58, %v6501_v18 }
 0xbbf   : > { %v4545_v14 = vsel %vm3500_vm13, 1.0, %v7250_v47  ;;  %v4554_v55 = vsel %vm3616_vm2, 1.0, %v7250_v47 }
 0xbc0   : > { %v3597_v29 = vpop.permute.xlu1 %3596 }
 0xbc1   : > { %v3599_v9 = vmul.f32 %v4552_v37, %v3597_v29  ;;  %5303 = vset.pattern.permute.xlu1 %v7251_v43 }
 0xbc2   : > { %3554 = vperm.xlu1 %5303, %v6497_v2  }
 0xbc3   : > { %v6665_v22 = vadd.f32 %v3599_v9, %v3587_v6  ;;  %v3175_v9 = vmul.f32 %v4526_v17, %v3173_v13  ;;  %v4527_v13 = vsel %vm3180_vm14, 1.0, %v7250_v47  ;;  %vm3318_vm14 = vcmp.eq.s32.totalorder %v6637_v58, %v6326_v4 }
 0xbc4   : > { %v3187_v37 = vmul.f32 %v4527_v13, %v3185_v21  ;;  %v4561_v13 = vsel %vm3706_vm11, 1.0, %v7250_v47 }
 0xbc5   : > { %v3094_v29 = vpop.permute.xlu1 %3093 }
 0xbc6   : > { %v3096_v5 = vmul.f32 %v4520_v16, %v3094_v29  ;;  %5306 = vset.pattern.permute.xlu1 %v7249_v50  ;;  %v3176_v50 = vadd.f32 %v3175_v9, %v3163_v31 }
 0xbc7   : > { %3770 = vperm.xlu1 %5306, %v6499_v40  }
 0xbc8   : > { %v6675_v6 = vadd.f32 %v3096_v5, %v3085_v30  ;;  %v3188_v32 = vadd.f32 %v3187_v37, %v3176_v50  ;;  %v4533_v5 = vsel %vm3258_vm1, 1.0, %v7250_v47 }
 0xbc9   : > { %v3265_v17 = vmul.f32 %v4533_v5, %v6632_v35  ;;  %v7253_v35 = vmov 16   ;;  %v7255_v5 = vld [vmem:[#allocation18_spill] sm:$0xff] }
 0xbca   : > { %v3687_v8 = vpop.permute.xlu1 %3686  ;;  %vm3240_vm4 = vcmp.eq.s32.totalorder %v6637_v58, %v7255_v5 }
 0xbcb   : > { %5307 = vset.pattern.permute.xlu1 %v7252_v34  ;;  %v3689_v56 = vmul.f32 %v4559_v15, %v3687_v8 }
 0xbcc   : > { %3836 = vperm.xlu1 %5307, %v6491_v42  }
 0xbcf   : > { %v3197_v57 = vpop.permute.xlu1 %3196 }
 0xbd0   : > { %v3199_v0 = vmul.f32 %v4528_v63, %v3197_v57  ;;  %5308 = vset.pattern.permute.xlu1 %v7251_v43  ;;  %v4544_v43 = vsel %vm3487_vm12, 1.0, %v7250_v47  ;;  %vm3228_vm12 = vcmp.eq.s32.totalorder %v6637_v58, %v6334_v44  ;;  %v7256_v44 = vld [vmem:[#allocation23_spill] sm:$0xff] }
 0xbd1   : > { %3566 = vperm.xlu1 %5308, %v6499_v40   ;;  %vm3113_vm1 = vcmp.eq.s32.totalorder %v6637_v58, %v7256_v44 }
 0xbd2   : > { %v3200_v42 = vadd.f32 %v3199_v0, %v3188_v32  ;;  %v7254_v32 = vmov 17  }
 0xbd4   : > { %v3480_v16 = vpop.permute.xlu1 %3479  ;;  %v6693_v29 = vadd.f32 %v3211_v46, %v3200_v42  ;;  %v3633_v42 = vpop.permute.xlu0 %3632 }
 0xbd5   : > { %5309 = vset.pattern.permute.xlu1 %v7252_v34  ;;  %v3482_v30 = vmul.f32 %v4543_v24, %v3480_v16 }
 0xbd6   : > { %3848 = vperm.xlu1 %5309, %v6485_v12   ;;  %v3277_v12 = vmul.f32 %v4534_v3, %v6635_v33 }
 0xbd8   : > { %v3493_v21 = vpop.permute.xlu1 %3492  ;;  %v3278_v45 = vadd.f32 %v3277_v12, %v3265_v17  ;;  %v4531_v17 = vsel %vm3228_vm12, 1.0, %v7250_v47 }
 0xbd9   : > { %v3495_v23 = vmul.f32 %v4544_v43, %v3493_v21 }
 0xbda   : > { %3860 = vperm.xlu1 %5309, %v6497_v2   ;;  %v4535_v2 = vsel %vm3282_vm6, 1.0, %v7250_v47  ;;  %vm3628_vm6 = vcmp.eq.s32.totalorder %v6637_v58, %v7258_v48 }
 0xbdb   : > { %v3496_v52 = vadd.f32 %v3495_v23, %v3482_v30  ;;  %v3289_v38 = vmul.f32 %v4535_v2, %v6647_v49  ;;  %v4560_v49 = vsel %vm3694_vm10, 1.0, %v7250_v47  ;;  %v7257_v2 = vld [vmem:[#allocation24_spill] sm:$0xff] }
 0xbdc   : > { %v3701_v28 = vmul.f32 %v4560_v49, %v6663_v60  ;;  %vm3718_vm5 = vcmp.eq.s32.totalorder %v6637_v58, %v7257_v2  ;;  %v7268_v2 = vld [vmem:[#allocation31_spill] sm:$0xff] }
 0xbdd   : > { %v3609_v9 = vpop.permute.xlu1 %3608  ;;  %v3290_v34 = vadd.f32 %v3289_v38, %v3278_v45  ;;  %v4532_v38 = vsel %vm3240_vm4, 1.0, %v7250_v47 }
 0xbde   : > { %v3611_v62 = vmul.f32 %v4553_v51, %v3609_v9  ;;  %3872 = vperm.xlu1 %5309, %v6499_v40   ;;  %v4536_v40 = vsel %vm3294_vm8, 1.0, %v7250_v47  ;;  %v3702_v53 = vadd.f32 %v3701_v28, %v3689_v56  ;;  %v4521_v9 = vsel %vm3101_vm3, 1.0, %v7250_v47 }
 0xbdf   : > { %v4522_v28 = vsel %vm3113_vm1, 1.0, %v7250_v47 }
 0xbe0   : > { %v6724_v33 = vadd.f32 %v3611_v62, %v6665_v22 }
 0xbe2   : > { %5311 = vset.pattern.permute.xlu1 %v7253_v35  ;;  %v3299_v31 = vpop.permute.xlu1 %3298  ;;  %v7259_v35 = vld [vmem:[#allocation26_spill] sm:$0xff] }
 0xbe3   : > { %v3301_v50 = vmul.f32 %v4536_v40, %v3299_v31  ;;  %2962 = vperm.xlu1 %5311, %v6140_v1   ;;  %vm3125_vm8 = vcmp.eq.s32.totalorder %v6637_v58, %v7259_v35  ;;  %v3108_v40 = vmul.f32 %v4521_v9, %v6678_v19 }
 0xbe4   : > { %v4523_v19 = vsel %vm3125_vm8, 1.0, %v7250_v47 }
 0xbe5   : > { %v3302_v22 = vadd.f32 %v3301_v50, %v3290_v34  ;;  %v7260_v34 = vld [vmem:[#allocation17_spill] sm:$0xff]  ;;  %v3109_v50 = vadd.f32 %v3108_v40, %v6675_v6 }
 0xbe6   : > { %vm3137_vm9 = vcmp.eq.s32.totalorder %v6637_v58, %v7260_v34 }
 0xbe7   : > { %2975 = vperm.xlu1 %5311, %v6153_v20   ;;  %v3711_v37 = vpop.permute.xlu1 %3710 }
 0xbe8   : > { %v3713_v63 = vmul.f32 %v4561_v13, %v3711_v37  ;;  %v4555_v13 = vsel %vm3628_vm6, 1.0, %v7250_v47  ;;  %v4562_v37 = vsel %vm3718_vm5, 1.0, %v7250_v47 }
 0xbea   : > { %v6741_v57 = vadd.f32 %v3713_v63, %v3702_v53  ;;  %v7261_v53 = vld [vmem:[#allocation30_spill] sm:$0xff]  ;;  %v3120_v63 = vmul.f32 %v4522_v28, %v6749_v41 }
 0xbeb   : > { %5312 = vset.pattern.permute.xlu1 %v7254_v32  ;;  %vm3640_vm10 = vcmp.eq.s32.totalorder %v6637_v58, %v7261_v53 }
 0xbec   : > { %3001 = vperm.xlu1 %5312, %v6144_v61   ;;  %v3506_v8 = vpop.permute.xlu1 %3505 }
 0xbed   : > { %v3508_v60 = vmul.f32 %v4545_v14, %v3506_v8  ;;  %v3121_v8 = vadd.f32 %v3120_v63, %v3109_v50  ;;  %v7275_v63 = vld [vmem:[#allocation29_spill] sm:$0xff] }
 0xbee   : > { %vm3526_vm6 = vcmp.eq.s32.totalorder %v6637_v58, %v7275_v63 }
 0xbef   : > { %v3509_v0 = vadd.f32 %v3508_v60, %v3496_v52  ;;  %v4530_v52 = vsel %vm3216_vm15, 1.0, %v7250_v47  ;;  %v7262_v60 = vld [vmem:[#allocation27_spill] sm:$0xff]  ;;  %vm3330_vm15 = vcmp.eq.s32.totalorder %v6637_v58, %v7268_v2 }
 0xbf0   : > { %3013 = vperm.xlu1 %5312, %v6140_v1   ;;  %v6756_v1 = vpop.permute.xlu0 %3734  ;;  %vm3730_vm11 = vcmp.eq.s32.totalorder %v6637_v58, %v7262_v60  ;;  %v4539_v35 = vsel %vm3330_vm15, 1.0, %v7250_v47 }
 0xbf1   : > { %v3621_v20 = vpop.permute.xlu1 %3620 }
 0xbf2   : > { %v3623_v62 = vmul.f32 %v4554_v55, %v3621_v20 }
 0xbf4   : > { %5313 = vset.pattern.permute.xlu1 %v7239_v59  ;;  %v4546_v59 = vsel %vm3513_vm7, 1.0, %v7250_v47  ;;  %v3624_v56 = vadd.f32 %v3623_v62, %v6724_v33 }
 0xbf5   : > { %2956 = vperm.xlu1 %5313, %v6475_v36   ;;  %v6762_v36 = vpop.permute.xlu0 %3800 }
 0xbf6   : > { %v3311_v61 = vpop.permute.xlu1 %3310 }
 0xbf7   : > { %v3313_v46 = vmul.f32 %v4537_v10, %v3311_v61  ;;  %v4524_v10 = vsel %vm3137_vm9, 1.0, %v7250_v47 }
 0xbf9   : > { %v3314_v16 = vadd.f32 %v3313_v46, %v3302_v22  ;;  %2982 = vperm.xlu1 %5313, %v6479_v11   ;;  %v3645_v23 = vpop.permute.xlu0 %3644  ;;  %v7263_v46 = vld [vmem:[#allocation35_spill] sm:$0xff] }
 0xbfa   : > { %vm3652_vm13 = vcmp.eq.s32.totalorder %v6637_v58, %v7263_v46  ;;  %v4547_v46 = vsel %vm3526_vm6, 1.0, %v7250_v47  ;;  %vm3048_vm6 = vcmask 523264  }
 0xbfb   : > { %v3723_v24 = vpop.permute.xlu1 %3722 }
 0xbfc   : > { %v3725_v14 = vmul.f32 %v4562_v37, %v3723_v24  ;;  %v7264_v24 = vld [vmem:[#allocation32_spill] sm:$0xff]  ;;  %v7272_v37 = vld [vmem:[#allocation33_spill] sm:$0xff] }
 0xbfd   : > { %2995 = vperm.xlu1 %5313, %v6495_v27   ;;  %v6773_v12 = vpop.permute.xlu0 %3334  ;;  %vm3742_vm0 = vcmp.eq.s32.totalorder %v6637_v58, %v7264_v24  ;;  %vm3808_vm4 = vcmp.eq.s32.totalorder %v6637_v58, %v7272_v37 }
 0xbfe   : > { %v3337_v40 = vmul.f32 %v4539_v35, %v6773_v12  ;;  %v7273_v12 = vld [vmem:[#allocation40_spill] sm:$0xff] }
 0xbff   : > { %vm3766_vm1 = vcmp.eq.s32.totalorder %v6637_v58, %v7273_v12 }
 0xc00   : > { %v3221_v25 = vpop.permute.xlu1 %3220 }
 0xc01   : > { %5317 = vset.pattern.permute.xlu1 %v7254_v32  ;;  %v3223_v4 = vmul.f32 %v4530_v52, %v3221_v25  ;;  %v3635_v32 = vmul.f32 %v4555_v13, %v3633_v42  ;;  %v3726_v25 = vadd.f32 %v3725_v14, %v6741_v57  ;;  %v4564_v52 = vsel %vm3742_vm0, 1.0, %v7250_v47  ;;  %v7271_v13 = vld [vmem:[#allocation28_spill] sm:$0xff] }
 0xc02   : > { %3037 = vperm.xlu1 %5317, %v6159_v26   ;;  %v4538_v26 = vsel %vm3318_vm14, 1.0, %v7250_v47  ;;  %vm3796_vm3 = vcmp.eq.s32.totalorder %v6637_v58, %v7271_v13 }
 0xc03   : > { %v3224_v18 = vadd.f32 %v3223_v4, %v6693_v29  ;;  %v3636_v33 = vadd.f32 %v3635_v32, %v3624_v56  ;;  %v4568_v32 = vsel %vm3796_vm3, 1.0, %v7250_v47 }
 0xc04   : > { %v3803_v14 = vmul.f32 %v4568_v32, %v6762_v36 }
 0xc05   : > { %v3519_v43 = vpop.permute.xlu1 %3518 }
 0xc06   : > { %v3521_v21 = vmul.f32 %v4546_v59, %v3519_v43  ;;  %5318 = vset.pattern.permute.xlu1 %v7242_v7  ;;  %v4563_v59 = vsel %vm3730_vm11, 1.0, %v7250_v47 }
 0xc07   : > { %3019 = vperm.xlu1 %5318, %v6483_v54  }
 0xc08   : > { %v6767_v27 = vadd.f32 %v3521_v21, %v3509_v0  ;;  %v4556_v0 = vsel %vm3640_vm10, 1.0, %v7250_v47 }
 0xc09   : > { %v3647_v41 = vmul.f32 %v4556_v0, %v3645_v23  ;;  %v7276_v0 = vld [vmem:[#allocation34_spill] sm:$0xff] }
 0xc0a   : > { %v3130_v30 = vpop.permute.xlu1 %3129  ;;  %vm3538_vm8 = vcmp.eq.s32.totalorder %v6637_v58, %v7276_v0 }
 0xc0b   : > { %3031 = vperm.xlu1 %5318, %v6479_v11   ;;  %v3245_v11 = vpop.permute.xlu0 %3244  ;;  %v3132_v6 = vmul.f32 %v4523_v19, %v3130_v30  ;;  %v3648_v43 = vadd.f32 %v3647_v41, %v3636_v33  ;;  %v7265_v30 = vld [vmem:[#allocation19_spill] sm:$0xff]  ;;  %v7274_v19 = vld [vmem:[#allocation37_spill] sm:$0xff] }
 0xc0c   : > { %v3247_v31 = vmul.f32 %v4532_v38, %v3245_v11  ;;  %vm3754_vm7 = vcmp.eq.s32.totalorder %v6637_v58, %v7265_v30  ;;  %v7269_v38 = vld [vmem:[#allocation36_spill] sm:$0xff]  ;;  %vm3820_vm5 = vcmp.eq.s32.totalorder %v6637_v58, %v7274_v19 }
 0xc0d   : > { %v3133_v42 = vadd.f32 %v3132_v6, %v3121_v8  ;;  %v4565_v55 = vsel %vm3754_vm7, 1.0, %v7250_v47  ;;  %vm3342_vm2 = vcmp.eq.s32.totalorder %v6637_v58, %v7269_v38  ;;  %v4569_v6 = vsel %vm3808_vm4, 1.0, %v7250_v47 }
 0xc0e   : > { %v4566_v8 = vsel %vm3766_vm1, 1.0, %v7250_v47 }
 0xc0f   : > { %v3323_v39 = vpop.permute.xlu1 %3322  ;;  %v3657_v29 = vpop.permute.xlu0 %3656 }
 0xc10   : > { %v3325_v3 = vmul.f32 %v4538_v26, %v3323_v39  ;;  %v3737_v26 = vmul.f32 %v4563_v59, %v6756_v1  ;;  %v4557_v39 = vsel %vm3652_vm13, 1.0, %v7250_v47 }
 0xc11   : > { %v3659_v23 = vmul.f32 %v4557_v39, %v3657_v29 }
 0xc12   : > { %v6777_v7 = vadd.f32 %v3325_v3, %v3314_v16  ;;  %v7266_v3 = vld [vmem:[#allocation39_spill] sm:$0xff]  ;;  %v3738_v11 = vadd.f32 %v3737_v26, %v3726_v25  ;;  %v4548_v25 = vsel %vm3538_vm8, 1.0, %v7250_v47  ;;  %vm3150_vm8 = vcmask 1048192  }
 0xc13   : > { %v3759_v20 = vpop.permute.xlu0 %3758  ;;  %vm3664_vm14 = vcmp.eq.s32.totalorder %v6637_v58, %v7266_v3  ;;  %v7279_v3 = vld [vmem:[#allocation41_spill] sm:$0xff] }
 0xc14   : > { %v6779_v54 = vpop.permute.xlu1 %3788  ;;  %v4558_v1 = vsel %vm3664_vm14, 1.0, %v7250_v47  ;;  %v3338_v29 = vadd.f32 %v3337_v40, %v6777_v7  ;;  %vm3562_vm11 = vcmp.eq.s32.totalorder %v6637_v58, %v7279_v3 }
 0xc17   : > { %v3669_v4 = vpop.permute.xlu0 %3668 }
 0xc18   : > { %v3671_v62 = vmul.f32 %v4558_v1, %v3669_v4  ;;  %v4550_v4 = vsel %vm3562_vm11, 1.0, %v7250_v47  ;;  %vm3355_vm11 = vcmask 1048448  }
 0xc19   : > { %v3233_v51 = vpop.permute.xlu1 %3232 }
 0xc1a   : > { %v3235_v45 = vmul.f32 %v4531_v17, %v3233_v51  ;;  %v3660_v17 = vadd.f32 %v3659_v23, %v3648_v43  ;;  %v3761_v51 = vmul.f32 %v4565_v55, %v3759_v20  ;;  %v4570_v20 = vsel %vm3820_vm5, 1.0, %v7250_v47 }
 0xc1c   : > { %v3236_v15 = vadd.f32 %v3235_v45, %v3224_v18  ;;  %v3672_v44 = vadd.f32 %v3671_v62, %v3660_v17  ;;  %v7280_v17 = vld [vmem:[#allocation21_spill] sm:$0xff]  ;;  %v7281_v62 = vld [vmem:[#allocation22_spill] sm:$0xff] }
 0xc1d   : > { %vm3844_vm13 = vcmp.eq.s32.totalorder %v6637_v58, %v7280_v17  ;;  %vm3856_vm0 = vcmp.eq.s32.totalorder %v6637_v58, %v7281_v62 }
 0xc1e   : > { %v3248_v49 = vadd.f32 %v3247_v31, %v3236_v15  ;;  %v6808_v22 = vpop.permute.xlu1 %3530  ;;  %v4540_v31 = vsel %vm3342_vm2, 1.0, %v7250_v47  ;;  %v4572_v1 = vsel %vm3844_vm13, 1.0, %v7250_v47  ;;  %vm3357_vm13 = vcmask 392192  }
 0xc1f   : > { %v3533_v36 = vmul.f32 %v4547_v46, %v6808_v22 }
 0xc21   : > { %v3534_v23 = vadd.f32 %v3533_v36, %v6767_v27 }
 0xc23   : > { %v3142_v61 = vpop.permute.xlu1 %3141 }
 0xc24   : > { %v3144_v16 = vmul.f32 %v4524_v10, %v3142_v61 }
 0xc26   : > { %v3145_v21 = vadd.f32 %v3144_v16, %v3133_v42  ;;  %v7278_v42 = vld [vmem:[#allocation38_spill] sm:$0xff] }
 0xc27   : > { %vm3550_vm10 = vcmp.eq.s32.totalorder %v6637_v58, %v7278_v42 }
 0xc28   : > { %3147 = vrot.lane.b32.xlu1 %v3145_v21, %s7267_s30  ;;  %v3747_v57 = vpop.permute.xlu1 %3746  ;;  %v4549_v26 = vsel %vm3550_vm10, 1.0, %v7250_v47  ;;  %vm3253_vm10 = vcmask 785664  }
 0xc29   : > { %v3749_v5 = vmul.f32 %v4564_v52, %v3747_v57 }
 0xc2b   : > { %v3750_v9 = vadd.f32 %v3749_v5, %v3738_v11 }
 0xc2c   : > { %3250 = vrot.lane.b32.xlu1 %v3248_v49, %s5441_s10  ;;  %v7270_v49 = vld [vmem:[#allocation16_spill] sm:$0xff]  ;;  %s7294_s10 = sld [smem:[#allocation57_spill]] }
 0xc2d   : > { %v3813_v18 = vpop.permute.xlu1 %3812  ;;  %v3762_v45 = vadd.f32 %v3761_v51, %v3750_v9  ;;  %vm3784_vm12 = vcmp.eq.s32.totalorder %v6637_v58, %v7270_v49 }
 0xc2e   : > { %v4567_v7 = vsel %vm3784_vm12, 1.0, %v7250_v47  ;;  %v3815_v33 = vmul.f32 %v4569_v6, %v3813_v18  ;;  %v3867_v18 = vpop.permute.xlu0 %3866 }
 0xc2f   : > { %v3791_v53 = vmul.f32 %v4567_v7, %v6779_v54  ;;  %v7277_v54 = vld [vmem:[#allocation20_spill] sm:$0xff]  ;;  %vm3868_vm7 = vcmp.eq.s32.totalorder %v6637_v58, %v3867_v18 }
 0xc30   : > { %3674 = vrot.lane.b32.xlu1 %v3672_v44, %s7194_s6  ;;  %vm3832_vm9 = vcmp.eq.s32.totalorder %v6637_v58, %v7277_v54  ;;  %v4573_v44 = vsel %vm3856_vm0, 1.0, %v7250_v47  ;;  %v4574_v38 = vsel %vm3868_vm7, 1.0, %v7250_v47  ;;  %vm3677_vm0 = vcmask 261248  }
 0xc31   : > { %v3804_v61 = vadd.f32 %v3803_v14, %v3791_v53  ;;  %v4571_v43 = vsel %vm3832_vm9, 1.0, %v7250_v47  ;;  %vm7282_vm9 = vcmask 130048   ;;  %vm3779_vm7 = vcmask 917248  }
 0xc32   : > { %v3543_v48 = vpop.permute.xlu1 %3542  ;;  %s7017_s30 = scalar_lea.hbm %s7294_s10, %s4585_s28 }
 0xc33   : > { %v3816_v24 = vadd.f32 %v3815_v33, %v3804_v61  ;;  %v3545_v59 = vmul.f32 %v4548_v25, %v3543_v48 }
 0xc35   : > { %v3546_v57 = vadd.f32 %v3545_v59, %v3534_v23 }
 0xc37   : > { %v3347_v15 = vpop.permute.xlu1 %3346 }
 0xc38   : > { %v3349_v34 = vmul.f32 %v4540_v31, %v3347_v15 }
 0xc3a   : > { %v3350_v50 = vadd.f32 %v3349_v34, %v3338_v29 }
 0xc3c   : > { %3352 = vrot.lane.b32.xlu0 %v3350_v50, %s7190_s7  ;;  %v3825_v56 = vpop.permute.xlu1 %3824  ;;  %s5457_s7 = smov 64  }
 0xc3d   : > { %v3827_v41 = vmul.f32 %v4570_v20, %v3825_v56  ;;  %v2950_v56 = vpop.permute.xlu0 %2949 }
 0xc3e   : > { %vm2951_vm14 = vcmp.eq.s32.totalorder %v6637_v58, %v2950_v56 }
 0xc3f   : > { %v3828_v30 = vadd.f32 %v3827_v41, %v3816_v24  ;;  %v4509_v19 = vsel %vm2951_vm14, 1.0, %v7250_v47  ;;  %vm3575_vm14 = vcmask 654848  }
 0xc41   : > { %v3555_v28 = vpop.permute.xlu1 %3554 }
 0xc42   : > { %v3557_v22 = vmul.f32 %v4549_v26, %v3555_v28  ;;  %v2989_v28 = vpop.permute.xlu0 %2988 }
 0xc43   : > { %vm2990_vm12 = vcmp.eq.s32.totalorder %v6637_v58, %v2989_v28  ;;  %v4109_v28 = vld [vmem:[%s7081_s21 + $0x18] sm:$0xff] }
 0xc44   : > { %v3558_v5 = vadd.f32 %v3557_v22, %v3546_v57 }
 0xc46   : > { %v3771_v60 = vpop.permute.xlu1 %3770  ;;  %v2970_v37 = vpop.permute.xlu0 %2969 }
 0xc47   : > { %v3773_v10 = vmul.f32 %v4566_v8, %v3771_v60  ;;  %v4512_v8 = vsel %vm2990_vm12, 1.0, %v7250_v47  ;;  %vm7285_vm12 = vcmask 261120  }
 0xc49   : > { %v3774_v16 = vadd.f32 %v3773_v10, %v3762_v45 }
 0xc4a   : > { %v3008_v32 = vpop.permute.xlu0 %3007 }
 0xc4b   : > { %3776 = vrot.lane.b32.xlu0 %v3774_v16, %s7193_s25  ;;  %v3837_v21 = vpop.permute.xlu1 %3836 }
 0xc4c   : > { %v3839_v39 = vmul.f32 %v4571_v43, %v3837_v21 }
 0xc4e   : > { %v3840_v52 = vadd.f32 %v3839_v39, %v3828_v30  ;;  %v3026_v54 = vpop.permute.xlu0 %3025 }
 0xc4f   : > { %vm3027_vm1 = vcmp.eq.s32.totalorder %v6637_v58, %v3026_v54 }
 0xc50   : > { %v3567_v11 = vpop.permute.xlu1 %3566  ;;  %v4515_v59 = vsel %vm3027_vm1, 1.0, %v7250_v47 }
 0xc51   : > { %v3569_v55 = vmul.f32 %v4550_v4, %v3567_v11 }
 0xc52   : > { %v3044_v26 = vpop.permute.xlu0 %3043 }
 0xc53   : > { %v3570_v51 = vadd.f32 %v3569_v55, %v3558_v5 }
 0xc55   : > { %3572 = vrot.lane.b32.xlu1 %v3570_v51, %s5457_s7  ;;  %v3849_v9 = vpop.permute.xlu1 %3848 }
 0xc56   : > { %v3851_v27 = vmul.f32 %v4572_v1, %v3849_v9 }
 0xc58   : > { %v3852_v45 = vadd.f32 %v3851_v27, %v3840_v52  ;;  %v4575_v27 = vld [vmem:[%s7078_s18] ss:$0 sm:$0xff] }
 0xc59   : > { %v3861_v2 = vpop.permute.xlu1 %3860 }
 0xc5a   : > { %v3863_v48 = vmul.f32 %v4573_v44, %v3861_v2 }
 0xc5c   : > { %v3864_v40 = vadd.f32 %v3863_v48, %v3852_v45  ;;  %v7284_v48 = vld [vmem:[#allocation15_spill] sm:$0xff] }
 0xc5d   : > { %v3873_v35 = vpop.permute.xlu1 %3872 }
 0xc5e   : > { %v3875_v31 = vmul.f32 %v4574_v38, %v3873_v35 }
 0xc60   : > { %v3876_v15 = vadd.f32 %v3875_v31, %v3864_v40 }
 0xc62   : > { %3878 = vrot.lane.b32.xlu0 %v3876_v15, %s5458_s27  ;;  %v2963_v29 = vpop.permute.xlu1 %2962  ;;  %s848_s27 = sand.u32 1, %s5401_s4  }
 0xc63   : > { %vm2964_vm15 = vcmp.eq.s32.totalorder %v6637_v58, %v2963_v29  ;;  %s4428_s3 = sshll.u32 %s848_s27, 3  ;;  %s4316_s7 = scalar_lea.sflag [#allocation6], %s848_s27 }
 0xc64   : > { %v4510_v7 = vsel %vm2964_vm15, 1.0, %v7250_v47  ;;  %vm7283_vm15 = vmmov 0   ;;  %s850_s1 = scalar_lea.vmem [#allocation5], %s4428_s3  ;;  %s5351_s3 = sshll.u32 %s5459_s9, 4  ;;  %s5352_s3 = int_to_ptr.vmem [resolvable:$false] %s5351_s3 }
 0xc65   : > { %v2972_v14 = vmul.f32 %v4510_v7, %v2970_v37  ;;  %v7287_v37 = vmov 0.0|0.0   ;;  %v4192_v7 = vld [vmem:[%s7083_s23 + $0x8] sm:$0xff]  ;;  %s4329_s2 = sshll.u32 %s850_s1, 4  ;;  %s5353_s11 = scalar_lea.vmem %s5352_s3, 256  ;;  %s7019_s2 = int_to_ptr.vmem [resolvable:$true] %s4329_s2 }
 0xc66   : > { %v2976_v34 = vpop.permute.xlu1 %2975  ;;  %s5347_s0 = scalar_lea.vmem %s7019_s2, 128  ;;  %p5354_p0 = scmp.lt.s32.totalorder %s7019_s2, %s5352_s3 }
 0xc67   : > { %vm2977_vm2 = vcmp.eq.s32.totalorder %v6637_v58, %v2976_v34  ;;  %v4106_v34 = vld [vmem:[%s7081_s21] sm:$0xff]  ;;  %p5348_p11 = scmp.ne.s32.totalorder %s7019_s2, %s5347_s0  ;;  %p5355_p1 = scmp.lt.s32.totalorder %s5353_s11, %s5347_s0 }
 0xc68   : > { %v4511_v6 = vsel %vm2977_vm2, 1.0, %v7250_v47  ;;  %vm3881_vm2 = vcmask 523648  }
 0xc69   : > { %p5349_p12 = pnand %p5348_p11, %p5638_p5  ;;  %p5356_p2 = por %p5355_p1, %p5354_p0 }
 0xc6b   : > { %v3002_v50 = vpop.permute.xlu1 %3001  ;;  %p5350_p13 = pneg %p5349_p12 }
 0xc6c   : > { %vm3003_vm3 = vcmp.eq.s32.totalorder %v6637_v58, %v3002_v50  ;;  %v4107_v50 = vld [vmem:[%s7081_s21 + $0x8] sm:$0xff] }
 0xc6d   : > { %v4513_v61 = vsel %vm3003_vm3, 1.0, %v7250_v47  ;;  %vm7286_vm3 = vmmov %vm7285_vm12  ;;  %v5078_v56 = vpack.c.bf16 %v4107_v50, %v4106_v34  ;;  %p5357_p3 = pnand %p5356_p2, %p5350_p13 }
 0xc6e   : > { %v3010_v36 = vmul.f32 %v4513_v61, %v3008_v32  ;;  %v4201_v61 = vld [vmem:[%s7083_s23 + $0x50] sm:$0xff]  ;;  %vm7289_vm1 = vmmov %vm7286_vm3 }
 0xc6f   : > { %v3014_v49 = vpop.permute.xlu1 %3013 }
 0xc70   : > { %vm3015_vm4 = vcmp.eq.s32.totalorder %v6637_v58, %v3014_v49  ;;  %v4108_v49 = vld [vmem:[%s7081_s21 + $0x10] sm:$0xff] }
 0xc71   : > { %v4514_v41 = vsel %vm3015_vm4, 1.0, %v7250_v47  ;;  %vm7288_vm4 = vmmov %vm7286_vm3 }
 0xc74   : > { %v2957_v13 = vpop.permute.xlu1 %2956 }
 0xc75   : > { %v2959_v63 = vmul.f32 %v4509_v19, %v2957_v13  ;;  %v5081_v13 = vpack.c.bf16 %v4109_v28, %v4108_v49  ;;  %v4193_v19 = vld [vmem:[%s7083_s23 + $0x10] sm:$0xff] }
 0xc77   : > { %v2973_v60 = vadd.f32 %v2972_v14, %v2959_v63  ;;  %v4194_v63 = vld [vmem:[%s7083_s23 + $0x18] sm:$0xff]  ;;  %v4196_v14 = vld [vmem:[%s7083_s23 + $0x28] sm:$0xff] }
 0xc78   : > { %v2983_v12 = vpop.permute.xlu1 %2982  ;;  %v5087_v32 = vpack.c.bf16 %v4194_v63, %v4193_v19 }
 0xc79   : > { %v2985_v33 = vmul.f32 %v4511_v6, %v2983_v12  ;;  %v4191_v12 = vld [vmem:[%s7083_s23] sm:$0xff] }
 0xc7a   : > { %v4195_v6 = vld [vmem:[%s7083_s23 + $0x20] sm:$0xff] }
 0xc7b   : > { %v2986_v10 = vadd.f32 %v2985_v33, %v2973_v60  ;;  %v5090_v33 = vpack.c.bf16 %v4196_v14, %v4195_v6  ;;  %v4198_v60 = vld [vmem:[%s7083_s23 + $0x38] sm:$0xff] }
 0xc7c   : > { %v2996_v53 = vpop.permute.xlu1 %2995 }
 0xc7d   : > { %v2998_v0 = vmul.f32 %v4512_v8, %v2996_v53  ;;  %v5084_v53 = vpack.c.bf16 %v4192_v7, %v4191_v12  ;;  %v4197_v8 = vld [vmem:[%s7083_s23 + $0x30] sm:$0xff] }
 0xc7f   : > { %v2999_v46 = vadd.f32 %v2998_v0, %v2986_v10  ;;  %v5093_v0 = vpack.c.bf16 %v4198_v60, %v4197_v8  ;;  %v4200_v10 = vld [vmem:[%s7083_s23 + $0x48] sm:$0xff] }
 0xc81   : > { %v3038_v20 = vpop.permute.xlu1 %3037  ;;  %v3011_v24 = vadd.f32 %v3010_v36, %v2999_v46  ;;  %v4202_v46 = vld [vmem:[%s7083_s23 + $0x58] sm:$0xff]  ;;  %v4204_v36 = vld [vmem:[%s7083_s23 + $0x68] sm:$0xff] }
 0xc82   : > { %vm3039_vm5 = vcmp.eq.s32.totalorder %v6637_v58, %v3038_v20  ;;  %v4199_v20 = vld [vmem:[%s7083_s23 + $0x40] sm:$0xff] }
 0xc83   : > { %v4516_v25 = vsel %vm3039_vm5, 1.0, %v7250_v47  ;;  %v5096_v54 = vpack.c.bf16 %v4200_v10, %v4199_v20  ;;  %vm7290_vm5 = vmmov %vm7289_vm1 }
 0xc84   : > { %v3046_v39 = vmul.f32 %v4516_v25, %v3044_v26  ;;  %v4578_v26 = vld [vmem:[%s7080_s20] ss:$0 sm:$0xff] }
 0xc86   : > { %v3020_v42 = vpop.permute.xlu1 %3019 }
 0xc87   : > { %v3022_v16 = vmul.f32 %v4514_v41, %v3020_v42  ;;  %v5099_v41 = vpack.c.bf16 %v4202_v46, %v4201_v61  ;;  %v4203_v42 = vld [vmem:[%s7083_s23 + $0x60] sm:$0xff] }
 0xc89   : > { %v3023_v21 = vadd.f32 %v3022_v16, %v3011_v24  ;;  %v5102_v16 = vpack.c.bf16 %v4204_v36, %v4203_v42 }
 0xc8a   : > { %v3032_v43 = vpop.permute.xlu1 %3031 }
 0xc8b   : > { %v3034_v30 = vmul.f32 %v4515_v59, %v3032_v43 }
 0xc8d   : > { %v3035_v3 = vadd.f32 %v3034_v30, %v3023_v21  ;;  %v4577_v21 = vld [vmem:[%s7079_s19] ss:$0 sm:$0xff] }
 0xc8f   : > { %v3047_v23 = vadd.f32 %v3046_v39, %v3035_v3 }
 0xc91   : > { %3049 = vst.msk [vmem:[#allocation4] sm:$0xff] %vm3048_vm6, %v3047_v23  ;;  %v4205_v23 = vld [vmem:[%s7083_s23 + $0x70] sm:$0xff] }
 0xc9a   : > { %v3148_v22 = vpop.permute.xlu1 %3147 }
 0xc9b   : > { %3151 = vst.msk [vmem:[#allocation4] sm:$0xff] %vm3150_vm8, %v3148_v22 }
 0xc9c   : > { %3152 = vst.msk [vmem:[#allocation4 + $0x8] sm:$0xff] %vm7282_vm9, %v3148_v22  ;;  %v4206_v22 = vld [vmem:[%s7083_s23 + $0x78] sm:$0xff] }
 0xc9e   : > { %v3251_v58 = vpop.permute.xlu1 %3250 }
 0xc9f   : > { %3254 = vst.msk [vmem:[#allocation4 + $0x8] sm:$0xff] %vm3253_vm10, %v3251_v58  ;;  %v5105_v58 = vpack.c.bf16 %v4206_v22, %v4205_v23 }
 0xca2   : > { %v3675_v57 = vpop.permute.xlu1 %3674 }
 0xcae   : > { %v3353_v52 = vpop.permute.xlu0 %3352 }
 0xcaf   : > { %3356 = vst.msk [vmem:[#allocation4 + $0x8] sm:$0xff] %vm3355_vm11, %v3353_v52 }
 0xcb0   : > { %3358 = vst.msk [vmem:[#allocation4 + $0x10] sm:$0xff] %vm3357_vm13, %v3353_v52  ;;  %v4579_v52 = vld [vmem:[%s7082_s22] ss:$0 sm:$0xff] }
 0xcb1   : > { %3678 = vst.msk [vmem:[#allocation4 + $0x8] sm:$0xff] %vm3677_vm0, %v3675_v57 }
 0xcbd   : > { %v3777_v4 = vpop.permute.xlu0 %3776 }
 0xcbe   : > { %3780 = vst.msk [vmem:[#allocation4 + $0x8] sm:$0xff] %vm3779_vm7, %v3777_v4 }
 0xcc5   : > { %v3884_v11 = vld [vmem:[#allocation4 + $0x8] sm:$0xff] }
 0xcc6   : > { %4000 = vmatprep.mubr.f32.mxu1 %v3884_v11 }
 0xcc7   : > { %v3573_v5 = vpop.permute.xlu1 %3572 }
 0xcc8   : > { %3576 = vst.msk [vmem:[#allocation4] sm:$0xff] %vm3575_vm14, %v3573_v5 }
 0xccf   : > { %v3883_v55 = vld [vmem:[#allocation4] sm:$0xff] }
 0xcd0   : > { %4001 = vmatmul.mubr.f32.vlgmr.msra.gmra.mrb[40].mxu1 %v3883_v55  ;;  %v4581_v55 = vld [vmem:[%s7084_s24] ss:$0 sm:$0xff] }
 0xcd1   : > { %4960 = vmatprep.mubr.msk.f32.mxu1 %vm7283_vm15, %v7250_v47  ;;  %5079 = vmatpush3.bf16.msra.mxu1 %v5078_v56 }
 0xcd2   : > { %5080 = vmatprep.subr.bf16.mxu1 %v7287_v37 }
 0xcd4   : > { %v3879_v17 = vpop.permute.xlu0 %3878 }
 0xcd5   : > { %3882 = vst.msk [vmem:[#allocation4 + $0x10] sm:$0xff] %vm3881_vm2, %v3879_v17  ;;  %5082 = vmatpush3.bf16.msra.mxu1 %v5081_v13 }
 0xcdc   : > { %v3885_v51 = vld [vmem:[#allocation4 + $0x10] sm:$0xff] }
 0xcdd   : > { %4950 = vmatmul.mubr.msk.f32.vlgmr.msra.gmra.mrb[36].mxu0 %vm3048_vm6, %v3885_v51  ;;  %vm7295_vm6 = vmmov %vm7289_vm1 }
 0xcde   : > { %4995 = vmatprep.mubr.msk.f32.mxu0 %vm7283_vm15, %v7250_v47  ;;  %5085 = vmatpush3.bf16.msra.mxu0 %v5084_v53 }
 0xcdf   : > { %5086 = vmatprep.subr.bf16.mxu0 %v7287_v37 }
 0xce2   : > { %5088 = vmatpush3.bf16.msra.mxu0 %v5087_v32 }
 0xce3   : > { %5089 = vmatprep.subr.bf16.mxu0 %v7287_v37 }
 0xce6   : > { %5091 = vmatpush3.bf16.msra.mxu0 %v5090_v33 }
 0xce7   : > { %5092 = vmatprep.subr.bf16.mxu0 %v7287_v37 }
 0xcea   : > { %5094 = vmatpush3.bf16.msra.mxu0 %v5093_v0 }
 0xceb   : > { %5095 = vmatprep.subr.bf16.mxu0 %v7287_v37 }
 0xcee   : > { %5097 = vmatpush3.bf16.msra.mxu0 %v5096_v54 }
 0xcef   : > { %5098 = vmatprep.subr.bf16.mxu0 %v7287_v37 }
 0xcf2   : > { %5100 = vmatpush3.bf16.msra.mxu0 %v5099_v41 }
 0xcf3   : > { %5101 = vmatprep.subr.bf16.mxu0 %v7287_v37 }
 0xcf6   : > { %5103 = vmatpush3.bf16.msra.mxu0 %v5102_v16 }
 0xcf7   : > { %5104 = vmatprep.subr.bf16.mxu0 %v7287_v37 }
 0xcfa   : > { %5106 = vmatpush3.bf16.msra.mxu0 %v5105_v58 }
 0xda3   : > { %v4717_v1 = vpop.f32.mrb[40].mxu1 }
 0xda4   : > { %v4718_v9 = vpop.f32.mrb[41].mxu1 }
 0xda5   : > { %v4719_v62 = vadd.f32 %v4718_v9, %v4717_v1 }
 0xda7   : > { %v4003_v18 = vadd.f32 %v4719_v62, %v4575_v27 }
 0xdb0   : > { %v4072_v45 = vpop.f32.mrb[36].mxu0 }
 0xdb1   : > { %v4073_v44 = vadd.f32 %v4072_v45, %v4003_v18  ;;  %v4951_v2 = vpop.f32.mrb[37].mxu0 }
 0xdb3   : > { %v4076_v38 = vadd.f32 %v4073_v44, %v7284_v48 }
 0xdb5   : > { %v4079_v35 = vsel %vm7285_vm12, %v4076_v38, 0.0 }
 0xdb6   : > { %4080 = vadd.xlane.f32.xlu1 %v4079_v35 }
 0xe43   : > { %v4081_v40 = vpop.xlane.xlu1 %4080 }
 0xe44   : > { %v4082_v31 = vmul.f32 0.03125, %v4081_v40 }
 0xe46   : > { %v4083_v15 = vsub.f32 %v4076_v38, %v4082_v31  ;;  %v4582_v31 = vld [vmem:[%s7292_s29] ss:$0 sm:$0xff] }
 0xe48   : > { %v4084_v47 = vmul.f32 %v4083_v15, %v4083_v15 }
 0xe4a   : > { %v4085_v29 = vsel %vm7286_vm3, %v4084_v47, 0.0  ;;  %v4583_v47 = vld [vmem:[%s7293_s12] ss:$0 sm:$0xff] }
 0xe4b   : > { %4086 = vadd.xlane.f32.xlu0 %v4085_v29 }
 0xed8   : > { %v4087_v24 = vpop.xlane.xlu0 %4086 }
 0xed9   : > { %v4088_v25 = vmul.f32 0.03125, %v4087_v24 }
 0xedb   : > { %v4089_v59 = vadd.f32 1e-05, %v4088_v25 }
 0xedd   : > { %5343 = vrsqrt.f32 %v4089_v59 }
 0xee7   : > { %v5344_v43 = vpop.eup %5343 }
 0xee8   : > { %v4091_v30 = vmul.f32 %v5344_v43, %v4083_v15 }
 0xeea   : > { %v4098_v39 = vmul.f32 %v4577_v21, %v4091_v30 }
 0xeec   : > { %v4105_v3 = vadd.f32 %v4578_v26, %v4098_v39 }
 0xeee   : > { %4961 = vmatmul.mubr.msk.f32.vlgmr.msra.gmra.mrb[42].mxu1 %vm7288_vm4, %v4105_v3 }
 0xfc1   : > { %v4186_v57 = vpop.f32.mrb[42].mxu1 }
 0xfc2   : > { %v4187_v4 = vadd.f32 %v4579_v52, %v4186_v57  ;;  %v4962_v11 = vpop.f32.mrb[43].mxu1 }
 0xfc4   : > { %v4190_v5 = vmax.f32 %v4187_v4, 0.0 }
 0xfc6   : > { %4996 = vmatmul.mubr.f32.vlgmr.msra.gmra.mrb[38].mxu0 %v4190_v5 }
0x1099   : > { %v4280_v17 = vpop.f32.mrb[38].mxu0 }
0x109a   : > { %v4281_v51 = vadd.f32 %v4581_v55, %v4280_v17  ;;  %v4997_v1 = vpop.f32.mrb[39].mxu0 }
0x109c   : > { %v4284_v9 = vadd.f32 %v4281_v51, %v4105_v3 }
0x109e   : > { %v4287_v62 = vsel %vm7289_vm1, %v4284_v9, 0.0 }
0x109f   : > { %4288 = vadd.xlane.f32.xlu0 %v4287_v62 }
0x112c   : > { %v4289_v27 = vpop.xlane.xlu0 %4288 }
0x112d   : > { %v4290_v18 = vmul.f32 0.03125, %v4289_v27 }
0x112f   : > { %v4291_v45 = vsub.f32 %v4284_v9, %v4290_v18 }
0x1131   : > { %v4292_v44 = vmul.f32 %v4291_v45, %v4291_v45 }
0x1133   : > { %v4293_v2 = vsel %vm7290_vm5, %v4292_v44, 0.0 }
0x1134   : > { %4294 = vadd.xlane.f32.xlu1 %v4293_v2 }
0x11c1   : > { %v4295_v48 = vpop.xlane.xlu1 %4294 }
0x11c2   : > { %v4296_v38 = vmul.f32 0.03125, %v4295_v48 }
0x11c4   : > { %v4297_v35 = vadd.f32 1e-05, %v4296_v38 }
0x11c6   : > { %5345 = vrsqrt.f32 %v4297_v35 }
0x11d0   : > { %v5346_v40 = vpop.eup %5345 }
0x11d1   : > { %v4299_v15 = vmul.f32 %v5346_v40, %v4291_v45 }
0x11d3   : > { %v4306_v29 = vmul.f32 %v4582_v31, %v4299_v15 }
0x11d5   : > { %v4313_v34 = vadd.f32 %v4583_v47, %v4306_v29 }
0x11d7   : > { %4314 = vst.msk [vmem:[%s850_s1] sm:$0xff] %vm7295_vm6, %v4313_v34 }
0x11d8   : > { %5360 = shalt.err (!%p5357_p3)
}
0x11d9   : > { %s5361_s27 = scalar_lea.hbm %s7017_s30, 128  ;;  %s5365_s26 = scalar_lea.hbm %s7294_s10, 256 }
0x11da   : > { %p5362_p4 = scmp.ne.s32.totalorder %s7017_s30, %s5361_s27  ;;  %p5366_p9 = scmp.lt.u32.totalorder %s7017_s30, %s7294_s10 }
0x11db   : > { %p5367_p10 = scmp.lt.u32.totalorder %s5365_s26, %s5361_s27  ;;  %p5369_p12 = scmp.lt.u32.totalorder %s5361_s27, %s7017_s30 }
0x11dc   : > { %p5363_p7 = pnand %p5362_p4, %p5638_p5 }
0x11dd   : > { %p5368_p11 = por %p5367_p10, %p5366_p9 }
0x11de   : > { %p5364_p8 = pneg %p5363_p7 }
0x11df   : > { %p5370_p13 = por %p5369_p12, %p5368_p11 }
0x11e1   : > { %p5371_p0 = pnand %p5370_p13, %p5364_p8 }
0x11e3   : > { %5374 = shalt.err (!%p5371_p0)
}
0x11e4   : > { %5126 = dma.vmem_to_hbm [thread:$0]  (%p5638_p5), %s7019_s2, 128, %s7017_s30, %s4316_s7  }
0x11e5 PF: > { %s7296_s1 = sld [smem:[#allocation10_spill]]  ;;  %s7297_s5 = sld [smem:[#allocation8_spill]] }
0x11eb   : > { %p5132_p1 = scmp.ge.s32.totalorder %s7296_s1, 2  ;;  %s4341_s0 = sand.u32 1, %s7297_s5  }
0x11ec   : > { %s4342_s9 = scalar_lea.sflag [#allocation6], %s4341_s0 }
0x11ed   : > { %p5129_p2 = pnand %p5132_p1, %p5642_p6 }
0x11ef   : > { %5392 = dma.done.wait (!%p5129_p2), %s4342_s9, 128  }
0x11f0   : > { %5394 = vsyncadd (!%p5129_p2), %s4342_s9, 4294967168  ;;  %s7299_s30 = sld [smem:[#allocation11_spill]]  ;;  %s7300_s3 = sld [smem:[#allocation9_spill]] }
0x11f1   : > { %s7301_s8 = sld [smem:[#allocation12_spill]]  ;;  %s7302_s7 = smov %s5401_s4 }
0x11f6   : > { %p37_p3 = scmp.ge.s32.totalorder %s7299_s30, 4   ;;  %s7303_s4 = smov %s7300_s3 }
0x11f8   :  { %39 = sbr.rel (!%p37_p3) target bundleno = 20 (0x14), region = 172 }
0x11ff   :  { %4347 = vsyncpa [#allocation6], 1 }
0x1200   :  { %4349 = vsyncpa [#allocation6 + $0x1], 1 }

</bundles_post_ra>
